<compile_context>
chip_gen: v7x
topology: tpu7x:2x2x1
jax: 0.10.0
libtpu: 0.0.40
codegen_flags: <defaults>
</compile_context>

<pallas_src>
import math

import jax
import jax.numpy as jnp
from jax import lax
from jax.experimental import pallas as pl
from jax.experimental.pallas import tpu as pltpu


# ---------------------------------------------------------------------------
# Small helpers: batch-block picking and VMEM budgeting.
# ---------------------------------------------------------------------------
def _pick_block(n, target=128):
    """Largest divisor of n that is <= target and a multiple of 8 (else n)."""
    if n <= target:
        return n
    for cand in range(target, 0, -8):
        if n % cand == 0:
            return cand
    return n


def _vmem_limit(nbytes):
    # 2x headroom for the pipeline's double buffering / compiler temporaries,
    # clamped so production tilings stay within v7x's 64 MiB physical VMEM.
    return int(min(max(2 * nbytes, 32 * 1024 * 1024), 64 * 1024 * 1024))


def _bigru_block_bytes(T, Bb, Di, Du, Hp):
    inp = T * Bb * Di * 2 + Bb * (Du * 2 + 4)
    out = 2 * T * Bb * Hp * 2 + 2 * Bb * Hp * 4
    scratch = 2 * T * Bb * 3 * Hp * 2
    wts = (Di + Du) * 3 * Hp * 2 * 2 + 2 * Hp * 6 * Hp * 2 + 12 * Hp * 4
    return 2 * (inp + out) + scratch + wts


def _attn_block_bytes(T, Bb, Hp, H, Di):
    inp = Bb * 2 * H * 4 + 2 * T * Bb * Hp * 2 + Bb * T * 4
    out = Bb * Di * 4 + Bb * T * 4
    wts = 2 * 2 * H * Hp * 4 + 2 * Hp * Di * 4 + Di * 4
    return 2 * (inp + out) + wts


# ---------------------------------------------------------------------------
# Kernel 1: masked bidirectional GRU (batch-gridded).
#   Phase 1: hoisted bf16 input projection (off the serial path).
#   Phase 2: single unrolled fwd/bwd interleaved recurrence with one fused
#            block-diagonal h@Whh matmul per step (pack_padded_sequence /
#            pad_packed_sequence semantics via per-step length masking).
# ---------------------------------------------------------------------------
def bigru_kernel(item_ref, user_ref, len_ref,
                 wif_ref, wuf_ref, bif_ref,
                 wib_ref, wub_ref, bib_ref,
                 whh_ref, bhh_ref,
                 enc_f_ref, enc_b_ref, hf_ref, hb_ref,
                 xgf_ref, xgb_ref):
    T, Bb, Di = item_ref.shape
    Hp3 = wif_ref.shape[1]                 # 3 * Hp (each gate lane-padded)
    Hp = Hp3 // 3

    # ---- Phase 1: input projection for all timesteps, both directions ------
    # bf16 operands, f32 accumulate.  The user embedding is time-invariant, so
    # its gate contribution is a single [Bb, Du] x [Du, 3Hp] matmul per
    # direction (the [B, T, Du] repeat from the reference never materializes).
    item_flat = item_ref[...].reshape(T * Bb, Di)                    # bf16
    user_e = user_ref[...]                                           # bf16

    xg_user_f = (jnp.dot(user_e, wuf_ref[...],
                         preferred_element_type=jnp.float32) + bif_ref[...])
    xg_item_f = jnp.dot(item_flat, wif_ref[...],
                        preferred_element_type=jnp.float32)          # [T*Bb, 3Hp]
    xgf_ref[...] = (xg_item_f.reshape(T, Bb, Hp3)
                    + xg_user_f[None]).astype(xgf_ref.dtype)

    xg_user_b = (jnp.dot(user_e, wub_ref[...],
                         preferred_element_type=jnp.float32) + bib_ref[...])
    xg_item_b = jnp.dot(item_flat, wib_ref[...],
                        preferred_element_type=jnp.float32)
    xgb_ref[...] = (xg_item_b.reshape(T, Bb, Hp3)
                    + xg_user_b[None]).astype(xgb_ref.dtype)

    whh = whh_ref[...]                     # bf16 [2Hp, 6Hp] block-diagonal
    bhh = bhh_ref[...]                     # f32  [1, 6Hp]
    len_col = len_ref[...]                 # int32 [Bb, 1]

    def gru(xg, hg, h):
        # PyTorch GRU cell, gate order (r, z, n); bhh_n stays inside hg so it
        # is multiplied by r, matching torch exactly.  All slices 128-aligned.
        r = jax.nn.sigmoid(xg[:, 0:Hp] + hg[:, 0:Hp])
        z = jax.nn.sigmoid(xg[:, Hp:2 * Hp] + hg[:, Hp:2 * Hp])
        n = jnp.tanh(xg[:, 2 * Hp:3 * Hp] + r * hg[:, 2 * Hp:3 * Hp])
        return (1.0 - z) * n + z * h

    # ---- Phase 2: one loop, fwd and bwd directions interleaved -------------
    def step(i, h_cat):
        t_f = i
        t_b = T - 1 - i
        # One fused MXU matmul per step for BOTH directions (block-diag Whh).
        hg = jnp.dot(h_cat.astype(jnp.bfloat16), whh,
                     preferred_element_type=jnp.float32) + bhh       # [Bb, 6Hp]
        h_f = h_cat[:, 0:Hp]
        h_b = h_cat[:, Hp:2 * Hp]
        hf_new = gru(xgf_ref[t_f], hg[:, 0:Hp3], h_f)
        hb_new = gru(xgb_ref[t_b], hg[:, Hp3:2 * Hp3], h_b)
        v_f = t_f < len_col                                          # [Bb, 1]
        v_b = t_b < len_col
        # pad_packed_sequence semantics: padded steps emit zeros and do not
        # advance the hidden state.
        enc_f_ref[t_f] = jnp.where(v_f, hf_new, 0.0).astype(enc_f_ref.dtype)
        enc_b_ref[t_b] = jnp.where(v_b, hb_new, 0.0).astype(enc_b_ref.dtype)
        return jnp.concatenate([jnp.where(v_f, hf_new, h_f),
                                jnp.where(v_b, hb_new, h_b)], axis=1)

    # unroll=True gives the LLO scheduler visibility across iterations
    # (T is static).  For very long production T, switch to unroll=2.
    h_cat = lax.fori_loop(0, T, step, jnp.zeros((Bb, 2 * Hp), jnp.float32),
                          unroll=True)
    hf_ref[...] = h_cat[:, 0:Hp]
    hb_ref[...] = h_cat[:, Hp:2 * Hp]


# ---------------------------------------------------------------------------
# Kernel 2: bilinear attention (length-1 query) + hidden_to_item projection.
# Batch-gridded; attention emitted lane-dense as [B, T].
# ---------------------------------------------------------------------------
def attn_proj_kernel(q_ref, enc_f_ref, enc_b_ref, mask_ref,
                     wattf_ref, wattb_ref, woutf_ref, woutb_ref, bout_ref,
                     gp_ref, attn_ref):
    enc_f = enc_f_ref[...]                                           # [T, Bb, Hp] bf16
    enc_b = enc_b_ref[...]

    # scores = (q @ W) . enc with a length-1 query: broadcast-multiply + lane
    # reduce on the VPU/XLU instead of M=1 MXU einsums.
    qWf = jnp.dot(q_ref[...], wattf_ref[...],
                  preferred_element_type=jnp.float32)                # [Bb, Hp]
    qWb = jnp.dot(q_ref[...], wattb_ref[...],
                  preferred_element_type=jnp.float32)
    scores_tb = (jnp.sum(enc_f * qWf[None, :, :], axis=-1)
                 + jnp.sum(enc_b * qWb[None, :, :], axis=-1))        # [T, Bb] f32

    # Masked softmax in batch-major layout -> the attention store is
    # lane-dense [Bb, T] (no [T, B, 1] width-1 partial stores).
    scores_bt = scores_tb.T                                          # [Bb, T]
    scores_bt = jnp.where(mask_ref[...] > 0.0, scores_bt, jnp.float32(-1e30))
    m = jnp.max(scores_bt, axis=-1, keepdims=True)
    e = jnp.exp(scores_bt - m)
    denom = jnp.sum(e, axis=-1, keepdims=True)
    attn_bt = e * pl.reciprocal(denom, approx=True)                  # [Bb, T]
    attn_ref[...] = attn_bt

    attn_tb = attn_bt.T[:, :, None]                                  # [T, Bb, 1]
    ctx_f = jnp.sum(attn_tb * enc_f, axis=0)                         # [Bb, Hp] f32
    ctx_b = jnp.sum(attn_tb * enc_b, axis=0)
    gp_ref[...] = (jnp.dot(ctx_f, woutf_ref[...], preferred_element_type=jnp.float32)
                   + jnp.dot(ctx_b, woutb_ref[...], preferred_element_type=jnp.float32)
                   + bout_ref[...])                                  # [Bb, Di]


# ---------------------------------------------------------------------------
# Kernel 3: item logits  gp[B, Di] @ item_emb.T[Di, V]  gridded over V.
# ---------------------------------------------------------------------------
def logits_kernel(gp_ref, itemT_ref, out_ref):
    out_ref[...] = jnp.dot(gp_ref[...], itemT_ref[...],
                           preferred_element_type=jnp.float32)


# ---------------------------------------------------------------------------
# One-time parameter layout preparation (transposed / gate-padded / block-diag
# / bf16).  Each r/z/n gate block is zero-padded to Hp = 128-multiple lanes so
# every per-step slice and store in the kernels is full-lane; padded lanes of
# the hidden state provably stay zero (zero weight cols/rows + zero init).
# ---------------------------------------------------------------------------
def _pad_gate_cols(w, H, Hp):
    """w: [..., 3H] gate-ordered (r,z,n) -> [..., 3Hp], each gate padded to Hp."""
    pad = Hp - H
    r, z, n = w[..., 0:H], w[..., H:2 * H], w[..., 2 * H:3 * H]
    zp = jnp.zeros(w.shape[:-1] + (pad,), w.dtype)
    return jnp.concatenate([r, zp, z, zp, n, zp], axis=-1)


def prepare_params(params, max_tile_v=2048):
    H = params['whh_f'].shape[1]
    V, Di = params['item_emb'].shape
    Du = params['user_emb'].shape[1]
    Hp = 128 * ((H + 127) // 128)

    def split_wih(wih, bih):
        w_t = _pad_gate_cols(wih.T, H, Hp)                           # [Din, 3Hp]
        b = _pad_gate_cols(bih[None, :], H, Hp).astype(jnp.float32)  # [1, 3Hp]
        return (w_t[:Di].astype(jnp.bfloat16),                       # item rows
                w_t[Di:].astype(jnp.bfloat16),                       # user rows
                b)

    wif, wuf, bif = split_wih(params['wih_f'], params['bih_f'])
    wib, wub, bib = split_wih(params['wih_b'], params['bih_b'])

    def pad_whh(whh):
        w_t = _pad_gate_cols(whh.T, H, Hp)                           # [H, 3Hp]
        return jnp.pad(w_t, ((0, Hp - H), (0, 0)))                   # [Hp, 3Hp]

    # Block-diagonal Whh so the fwd+bwd recurrence is ONE MXU matmul per step.
    whh_cat = jnp.zeros((2 * Hp, 6 * Hp), jnp.float32)
    whh_cat = whh_cat.at[:Hp, :3 * Hp].set(pad_whh(params['whh_f']))
    whh_cat = whh_cat.at[Hp:, 3 * Hp:].set(pad_whh(params['whh_b']))
    whh_cat = whh_cat.astype(jnp.bfloat16)
    bhh_cat = jnp.concatenate(
        [_pad_gate_cols(params['bhh_f'][None, :], H, Hp),
         _pad_gate_cols(params['bhh_b'][None, :], H, Hp)], axis=-1)  # [1, 6Hp]

    watt = params['watt']                                            # [2H, 2H]
    watt_f = jnp.pad(watt[:, :H], ((0, 0), (0, Hp - H)))             # [2H, Hp]
    watt_b = jnp.pad(watt[:, H:], ((0, 0), (0, Hp - H)))
    wout_t = params['wout'].T                                        # [2H, Di]
    wout_f = jnp.pad(wout_t[:H], ((0, Hp - H), (0, 0)))              # [Hp, Di]
    wout_b = jnp.pad(wout_t[H:], ((0, Hp - H), (0, 0)))

    # bf16, transposed item table, zero-padded to a multiple of the V tile
    # (128-lane aligned so the logits output is lane-dense).
    tile_v = max_tile_v if V > max_tile_v else 128 * ((V + 127) // 128)
    v_pad = tile_v * ((V + tile_v - 1) // tile_v)
    item_t = params['item_emb'].T.astype(jnp.bfloat16)               # [Di, V]
    if v_pad != V:
        item_t = jnp.pad(item_t, ((0, 0), (0, v_pad - V)))

    return {
        'item_emb_bf16': params['item_emb'].astype(jnp.bfloat16),
        'user_emb_bf16': params['user_emb'].astype(jnp.bfloat16),
        'wif': wif, 'wuf': wuf, 'bif': bif,
        'wib': wib, 'wub': wub, 'bib': bib,
        'whh_cat': whh_cat, 'bhh_cat': bhh_cat,
        'watt_f': watt_f, 'watt_b': watt_b,
        'wout_f': wout_f, 'wout_b': wout_b,
        'bout': params['bout'][None, :],
        'item_t_bf16': item_t,
        'item_num': V, 'tile_v': tile_v, 'v_pad': v_pad,
        'H': H, 'Hp': Hp, 'Di': Di, 'Du': Du,
    }


# ---------------------------------------------------------------------------
# Forward wrapper (embedding gathers / query reshape / top-k are JAX glue).
# ---------------------------------------------------------------------------
def bsr_user_forward(prep, item_x, user_id, recommendation_len):
    B, T = item_x.shape
    H, Hp, Di, Du = prep['H'], prep['Hp'], prep['Di'], prep['Du']
    V, tile_v, v_pad = prep['item_num'], prep['tile_v'], prep['v_pad']

    mask_b = item_x != 0
    lengths = mask_b.sum(axis=-1).astype(jnp.int32)
    len_col = lengths[:, None]                                       # [B, 1]
    mask_f = mask_b.astype(jnp.float32)                              # [B, T]

    # Embedding lookups (glue); dropout is identity in eval mode.  Gathered
    # directly in time-major bf16 (halves HBM->VMEM traffic for the GRU).
    item_e_tm = jnp.take(prep['item_emb_bf16'], item_x.T, axis=0)    # [T, B, Di]
    user_e = jnp.take(prep['user_emb_bf16'], user_id, axis=0)        # [B, Du]

    Bb = _pick_block(B)
    nblk = B // Bb
    w0_2 = lambda i: (0, 0)

    # --- Kernel 1: bidirectional GRU, gridded over batch --------------------
    enc_f, enc_b, h_f, h_b = pl.pallas_call(
        bigru_kernel,
        out_shape=(
            jax.ShapeDtypeStruct((T, B, Hp), jnp.bfloat16),
            jax.ShapeDtypeStruct((T, B, Hp), jnp.bfloat16),
            jax.ShapeDtypeStruct((B, Hp), jnp.float32),
            jax.ShapeDtypeStruct((B, Hp), jnp.float32),
        ),
        grid=(nblk,),
        in_specs=[
            pl.BlockSpec((T, Bb, Di), lambda i: (0, i, 0)),          # item emb block
            pl.BlockSpec((Bb, Du), lambda i: (i, 0)),                # user emb block
            pl.BlockSpec((Bb, 1), lambda i: (i, 0)),                 # lengths
            pl.BlockSpec((Di, 3 * Hp), w0_2),                        # resident weights
            pl.BlockSpec((Du, 3 * Hp), w0_2),
            pl.BlockSpec((1, 3 * Hp), w0_2),
            pl.BlockSpec((Di, 3 * Hp), w0_2),
            pl.BlockSpec((Du, 3 * Hp), w0_2),
            pl.BlockSpec((1, 3 * Hp), w0_2),
            pl.BlockSpec((2 * Hp, 6 * Hp), w0_2),
            pl.BlockSpec((1, 6 * Hp), w0_2),
        ],
        out_specs=(
            pl.BlockSpec((T, Bb, Hp), lambda i: (0, i, 0)),
            pl.BlockSpec((T, Bb, Hp), lambda i: (0, i, 0)),
            pl.BlockSpec((Bb, Hp), lambda i: (i, 0)),
            pl.BlockSpec((Bb, Hp), lambda i: (i, 0)),
        ),
        scratch_shapes=[
            pltpu.VMEM((T, Bb, 3 * Hp), jnp.bfloat16),   # hoisted fwd gate inputs
            pltpu.VMEM((T, Bb, 3 * Hp), jnp.bfloat16),   # hoisted bwd gate inputs
        ],
        compiler_params=pltpu.CompilerParams(
            dimension_semantics=("parallel",),
            vmem_limit_bytes=_vmem_limit(_bigru_block_bytes(T, Bb, Di, Du, Hp))),
    )(item_e_tm, user_e, len_col,
      prep['wif'], prep['wuf'], prep['bif'],
      prep['wib'], prep['wub'], prep['bib'],
      prep['whh_cat'], prep['bhh_cat'])

    # Reproduce torch's item_enc_hidden([2, B, H]).reshape(B, -1) EXACTLY (a
    # row-major reshape of the direction-major stack; for B > 1 this mixes
    # batch rows — it is what the reference module does).  Cross-batch, so it
    # stays in the wrapper; it is tiny.
    query = jnp.stack([h_f[:, :H], h_b[:, :H]], axis=0).reshape(B, 2 * H)

    # --- Kernel 2: bilinear attention + hidden_to_item, gridded over batch ---
    gp, attn = pl.pallas_call(
        attn_proj_kernel,
        out_shape=(
            jax.ShapeDtypeStruct((B, Di), jnp.float32),
            jax.ShapeDtypeStruct((B, T), jnp.float32),
        ),
        grid=(nblk,),
        in_specs=[
            pl.BlockSpec((Bb, 2 * H), lambda i: (i, 0)),             # query block
            pl.BlockSpec((T, Bb, Hp), lambda i: (0, i, 0)),          # enc fwd block
            pl.BlockSpec((T, Bb, Hp), lambda i: (0, i, 0)),          # enc bwd block
            pl.BlockSpec((Bb, T), lambda i: (i, 0)),                 # mask block
            pl.BlockSpec((2 * H, Hp), w0_2),                         # resident weights
            pl.BlockSpec((2 * H, Hp), w0_2),
            pl.BlockSpec((Hp, Di), w0_2),
            pl.BlockSpec((Hp, Di), w0_2),
            pl.BlockSpec((1, Di), w0_2),
        ],
        out_specs=(
            pl.BlockSpec((Bb, Di), lambda i: (i, 0)),
            pl.BlockSpec((Bb, T), lambda i: (i, 0)),
        ),
        compiler_params=pltpu.CompilerParams(
            dimension_semantics=("parallel",),
            vmem_limit_bytes=_vmem_limit(_attn_block_bytes(T, Bb, Hp, H, Di))),
    )(query, enc_f, enc_b, mask_f,
      prep['watt_f'], prep['watt_b'], prep['wout_f'], prep['wout_b'],
      prep['bout'])

    # --- Kernel 3: item logits, streamed over the vocabulary ----------------
    gp_bf16 = gp.astype(jnp.bfloat16)
    k3_bytes = 2 * (B * Di * 2 + Di * tile_v * 2 + B * tile_v * 4)
    logits_pad = pl.pallas_call(
        logits_kernel,
        out_shape=jax.ShapeDtypeStruct((B, v_pad), jnp.float32),
        grid=(v_pad // tile_v,),
        in_specs=[
            pl.BlockSpec((B, Di), lambda j: (0, 0)),                 # stays resident
            pl.BlockSpec((Di, tile_v), lambda j: (0, j)),            # streamed tiles
        ],
        out_specs=pl.BlockSpec((B, tile_v), lambda j: (0, j)),
        compiler_params=pltpu.CompilerParams(
            dimension_semantics=("parallel",),
            vmem_limit_bytes=_vmem_limit(k3_bytes)),
    )(gp_bf16, prep['item_t_bf16'])
    logits = logits_pad[:, :V]

    # Eval-mode head (glue): softmax + top-k recommendation list.
    probs = jax.nn.softmax(logits, axis=-1)
    _, preds = lax.top_k(probs, recommendation_len)

    return {
        'preds': preds,                          # [B, recommendation_len]
        'logits': logits,                        # [B, item_num]
        'attention': attn,                       # [B, T] (== norm_attn.view(B, -1))
        'context_logits': None,
        'context_preds': None,
    }


# ---------------------------------------------------------------------------
# Deterministic parameter initialization (PyTorch layouts, as in __init__).
# ---------------------------------------------------------------------------
def init_params(key, item_num, user_num, num_item_units, num_user_units, num_gru_units):
    H = num_gru_units
    Din = num_item_units + num_user_units
    D2 = 2 * H
    ks = jax.random.split(key, 16)

    def u(k, shape, scale):
        return jax.random.uniform(k, shape, jnp.float32, -scale, scale)

    s = 1.0 / math.sqrt(H)
    item_emb = u(ks[0], (item_num, num_item_units), 0.1).at[0].set(0.0)   # padding_idx=0
    user_emb = u(ks[1], (user_num, num_user_units), 0.1).at[0].set(0.0)   # padding_idx=0
    return {
        'item_emb': item_emb,
        'user_emb': user_emb,
        'wih_f': u(ks[2], (3 * H, Din), s), 'whh_f': u(ks[3], (3 * H, H), s),
        'bih_f': u(ks[4], (3 * H,), s),     'bhh_f': u(ks[5], (3 * H,), s),
        'wih_b': u(ks[6], (3 * H, Din), s), 'whh_b': u(ks[7], (3 * H, H), s),
        'bih_b': u(ks[8], (3 * H,), s),     'bhh_b': u(ks[9], (3 * H,), s),
        'watt': u(ks[10], (D2, D2), 0.1),                                  # bilinear attention W
        'wout': u(ks[11], (num_item_units, D2), 1.0 / math.sqrt(D2)),      # hidden_to_item_tfm
        'bout': u(ks[12], (num_item_units,), 1.0 / math.sqrt(D2)),
    }


if __name__ == "__main__":
    # Small shapes consistent with the module's forward.
    B, T = 4, 8
    item_num, user_num = 256, 16
    num_item_units, num_user_units, num_gru_units = 32, 32, 16
    recommendation_len = 5

    key = jax.random.PRNGKey(0)
    kp, kx, ku = jax.random.split(key, 3)

    params = init_params(kp, item_num, user_num,
                         num_item_units, num_user_units, num_gru_units)
    prep = prepare_params(params)          # one-time layout / padding / bf16

    # item_x: right-padded sequences (0 = padding), lengths >= 1.
    lengths = jnp.array([8, 5, 3, 6], dtype=jnp.int32)
    raw = jax.random.randint(kx, (B, T), 1, item_num, dtype=jnp.int32)
    pos = jnp.arange(T, dtype=jnp.int32)[None, :]
    item_x = jnp.where(pos < lengths[:, None], raw, 0).astype(jnp.int32)
    user_id = jax.random.randint(ku, (B,), 1, user_num, dtype=jnp.int32)

    out = bsr_user_forward(prep, item_x, user_id, recommendation_len)
    jax.block_until_ready((out['preds'], out['logits'], out['attention']))
    print("KERNEL_OK")
</pallas_src>

<mosaic_0001>
module attributes {stable_mosaic.version = 11 : i64} {
  func.func @bigru_kernel(%arg0: i32, %arg1: memref<8x4x32xbf16, #tpu.memory_space<vmem>>, %arg2: memref<4x32xbf16, #tpu.memory_space<vmem>>, %arg3: memref<4x1xi32, #tpu.memory_space<vmem>>, %arg4: memref<32x384xbf16, #tpu.memory_space<vmem>>, %arg5: memref<32x384xbf16, #tpu.memory_space<vmem>>, %arg6: memref<1x384xf32, #tpu.memory_space<vmem>>, %arg7: memref<32x384xbf16, #tpu.memory_space<vmem>>, %arg8: memref<32x384xbf16, #tpu.memory_space<vmem>>, %arg9: memref<1x384xf32, #tpu.memory_space<vmem>>, %arg10: memref<256x768xbf16, #tpu.memory_space<vmem>>, %arg11: memref<1x768xf32, #tpu.memory_space<vmem>>, %arg12: memref<8x4x128xbf16, #tpu.memory_space<vmem>>, %arg13: memref<8x4x128xbf16, #tpu.memory_space<vmem>>, %arg14: memref<4x128xf32, #tpu.memory_space<vmem>>, %arg15: memref<4x128xf32, #tpu.memory_space<vmem>>, %arg16: memref<8x4x384xbf16, #tpu.memory_space<vmem>>, %arg17: memref<8x4x384xbf16, #tpu.memory_space<vmem>>) attributes {dimension_semantics = [#tpu.dimension_semantics<parallel>], iteration_bounds = array<i64: 1>, scalar_prefetch = 0 : i64, scratch_operands = 2 : i64, tpu.core_type = #tpu.core_type<tc>, window_params = [{transform_indices = @transform_0, window_bounds = array<i64: 8, 4, 32>}, {transform_indices = @transform_1, window_bounds = array<i64: 4, 32>}, {transform_indices = @transform_2, window_bounds = array<i64: 4, 1>}, {pipeline_mode = #tpu.pipeline_mode<synchronous>, transform_indices = @transform_3, window_bounds = array<i64: 32, 384>}, {pipeline_mode = #tpu.pipeline_mode<synchronous>, transform_indices = @transform_4, window_bounds = array<i64: 32, 384>}, {pipeline_mode = #tpu.pipeline_mode<synchronous>, transform_indices = @transform_5, window_bounds = array<i64: 1, 384>}, {pipeline_mode = #tpu.pipeline_mode<synchronous>, transform_indices = @transform_6, window_bounds = array<i64: 32, 384>}, {pipeline_mode = #tpu.pipeline_mode<synchronous>, transform_indices = @transform_7, window_bounds = array<i64: 32, 384>}, {pipeline_mode = #tpu.pipeline_mode<synchronous>, transform_indices = @transform_8, window_bounds = array<i64: 1, 384>}, {pipeline_mode = #tpu.pipeline_mode<synchronous>, transform_indices = @transform_9, window_bounds = array<i64: 256, 768>}, {pipeline_mode = #tpu.pipeline_mode<synchronous>, transform_indices = @transform_10, window_bounds = array<i64: 1, 768>}, {transform_indices = @transform_11, window_bounds = array<i64: 8, 4, 128>}, {transform_indices = @transform_12, window_bounds = array<i64: 8, 4, 128>}, {transform_indices = @transform_13, window_bounds = array<i64: 4, 128>}, {transform_indices = @transform_14, window_bounds = array<i64: 4, 128>}]} {
    %c0 = arith.constant 0 : index
    %c0_0 = arith.constant 0 : index
    %c0_1 = arith.constant 0 : index
    %0 = vector.load %arg1[%c0, %c0_0, %c0_1] : memref<8x4x32xbf16, #tpu.memory_space<vmem>>, vector<8x4x32xbf16>
    %1 = vector.shape_cast %0 : vector<8x4x32xbf16> to vector<32x32xbf16>
    %c0_2 = arith.constant 0 : index
    %c0_3 = arith.constant 0 : index
    %2 = vector.load %arg2[%c0_2, %c0_3] : memref<4x32xbf16, #tpu.memory_space<vmem>>, vector<4x32xbf16>
    %c0_4 = arith.constant 0 : index
    %c0_5 = arith.constant 0 : index
    %3 = vector.load %arg5[%c0_4, %c0_5] : memref<32x384xbf16, #tpu.memory_space<vmem>>, vector<32x384xbf16>
    %cst = arith.constant dense<0.000000e+00> : vector<4x384xf32>
    %4 = tpu.matmul %2, %3, %cst {dimension_numbers = #tpu.dot_dimension_numbers<[1], [0], [0], [1], [0, 0, 1, 1], [], []>} : vector<4x32xbf16>, vector<32x384xbf16>, vector<4x384xf32> -> vector<4x384xf32>
    %c0_6 = arith.constant 0 : index
    %c0_7 = arith.constant 0 : index
    %5 = vector.load %arg6[%c0_6, %c0_7] : memref<1x384xf32, #tpu.memory_space<vmem>>, vector<1x384xf32>
    %6 = vector.broadcast %5 : vector<1x384xf32> to vector<4x384xf32>
    %7 = arith.addf %4, %6 : vector<4x384xf32>
    %c0_8 = arith.constant 0 : index
    %c0_9 = arith.constant 0 : index
    %8 = vector.load %arg4[%c0_8, %c0_9] : memref<32x384xbf16, #tpu.memory_space<vmem>>, vector<32x384xbf16>
    %cst_10 = arith.constant dense<0.000000e+00> : vector<32x384xf32>
    %9 = tpu.matmul %1, %8, %cst_10 {dimension_numbers = #tpu.dot_dimension_numbers<[1], [0], [0], [1], [0, 0, 1, 1], [], []>} : vector<32x32xbf16>, vector<32x384xbf16>, vector<32x384xf32> -> vector<32x384xf32>
    %10 = vector.shape_cast %9 : vector<32x384xf32> to vector<8x4x384xf32>
    %11 = vector.shape_cast %7 : vector<4x384xf32> to vector<1x4x384xf32>
    %12 = vector.broadcast %11 : vector<1x4x384xf32> to vector<8x4x384xf32>
    %13 = arith.addf %10, %12 : vector<8x4x384xf32>
    %14 = arith.truncf %13 : vector<8x4x384xf32> to vector<8x4x384xbf16>
    %c0_11 = arith.constant 0 : index
    %c0_12 = arith.constant 0 : index
    %c0_13 = arith.constant 0 : index
    %15 = vector.load %arg16[%c0_11, %c0_12, %c0_13] : memref<8x4x384xbf16, #tpu.memory_space<vmem>>, vector<8x4x384xbf16>
    tpu.vector_store %arg16[%c0_11, %c0_12, %c0_13], %14 {strides = array<i32>} : memref<8x4x384xbf16, #tpu.memory_space<vmem>>, vector<8x4x384xbf16>,
    %c0_14 = arith.constant 0 : index
    %c0_15 = arith.constant 0 : index
    %16 = vector.load %arg8[%c0_14, %c0_15] : memref<32x384xbf16, #tpu.memory_space<vmem>>, vector<32x384xbf16>
    %cst_16 = arith.constant dense<0.000000e+00> : vector<4x384xf32>
    %17 = tpu.matmul %2, %16, %cst_16 {dimension_numbers = #tpu.dot_dimension_numbers<[1], [0], [0], [1], [0, 0, 1, 1], [], []>} : vector<4x32xbf16>, vector<32x384xbf16>, vector<4x384xf32> -> vector<4x384xf32>
    %c0_17 = arith.constant 0 : index
    %c0_18 = arith.constant 0 : index
    %18 = vector.load %arg9[%c0_17, %c0_18] : memref<1x384xf32, #tpu.memory_space<vmem>>, vector<1x384xf32>
    %19 = vector.broadcast %18 : vector<1x384xf32> to vector<4x384xf32>
    %20 = arith.addf %17, %19 : vector<4x384xf32>
    %c0_19 = arith.constant 0 : index
    %c0_20 = arith.constant 0 : index
    %21 = vector.load %arg7[%c0_19, %c0_20] : memref<32x384xbf16, #tpu.memory_space<vmem>>, vector<32x384xbf16>
    %cst_21 = arith.constant dense<0.000000e+00> : vector<32x384xf32>
    %22 = tpu.matmul %1, %21, %cst_21 {dimension_numbers = #tpu.dot_dimension_numbers<[1], [0], [0], [1], [0, 0, 1, 1], [], []>} : vector<32x32xbf16>, vector<32x384xbf16>, vector<32x384xf32> -> vector<32x384xf32>
    %23 = vector.shape_cast %22 : vector<32x384xf32> to vector<8x4x384xf32>
    %24 = vector.shape_cast %20 : vector<4x384xf32> to vector<1x4x384xf32>
    %25 = vector.broadcast %24 : vector<1x4x384xf32> to vector<8x4x384xf32>
    %26 = arith.addf %23, %25 : vector<8x4x384xf32>
    %27 = arith.truncf %26 : vector<8x4x384xf32> to vector<8x4x384xbf16>
    %c0_22 = arith.constant 0 : index
    %c0_23 = arith.constant 0 : index
    %c0_24 = arith.constant 0 : index
    %28 = vector.load %arg17[%c0_22, %c0_23, %c0_24] : memref<8x4x384xbf16, #tpu.memory_space<vmem>>, vector<8x4x384xbf16>
    tpu.vector_store %arg17[%c0_22, %c0_23, %c0_24], %27 {strides = array<i32>} : memref<8x4x384xbf16, #tpu.memory_space<vmem>>, vector<8x4x384xbf16>,
    %c0_25 = arith.constant 0 : index
    %c0_26 = arith.constant 0 : index
    %29 = vector.load %arg10[%c0_25, %c0_26] : memref<256x768xbf16, #tpu.memory_space<vmem>>, vector<256x768xbf16>
    %c0_27 = arith.constant 0 : index
    %c0_28 = arith.constant 0 : index
    %30 = vector.load %arg11[%c0_27, %c0_28] : memref<1x768xf32, #tpu.memory_space<vmem>>, vector<1x768xf32>
    %c0_29 = arith.constant 0 : index
    %c0_30 = arith.constant 0 : index
    %31 = vector.load %arg3[%c0_29, %c0_30] : memref<4x1xi32, #tpu.memory_space<vmem>>, vector<4x1xi32>
    %cst_31 = arith.constant 0.000000e+00 : f32
    %32 = vector.broadcast %cst_31 : f32 to vector<4x256xf32>
    %c0_i32 = arith.constant 0 : i32
    %c7_i32 = arith.constant 7 : i32
    %33 = arith.subi %c7_i32, %c0_i32 : i32
    %34 = arith.truncf %32 : vector<4x256xf32> to vector<4x256xbf16>
    %cst_32 = arith.constant dense<0.000000e+00> : vector<4x768xf32>
    %35 = tpu.matmul %34, %29, %cst_32 {dimension_numbers = #tpu.dot_dimension_numbers<[1], [0], [0], [1], [0, 0, 1, 1], [], []>} : vector<4x256xbf16>, vector<256x768xbf16>, vector<4x768xf32> -> vector<4x768xf32>
    %36 = vector.broadcast %30 : vector<1x768xf32> to vector<4x768xf32>
    %37 = arith.addf %35, %36 : vector<4x768xf32>
    %38 = vector.extract_strided_slice %32 {offsets = [0, 0], sizes = [4, 128], strides = [1, 1]} : vector<4x256xf32> to vector<4x128xf32>
    %39 = vector.extract_strided_slice %32 {offsets = [0, 128], sizes = [4, 128], strides = [1, 1]} : vector<4x256xf32> to vector<4x128xf32>
    %40 = arith.index_cast %c0_i32 : i32 to index
    %c0_33 = arith.constant 0 : index
    %c0_34 = arith.constant 0 : index
    %41 = vector.load %arg16[%40, %c0_33, %c0_34] : memref<8x4x384xbf16, #tpu.memory_space<vmem>>, vector<1x4x384xbf16>
    %42 = vector.shape_cast %41 : vector<1x4x384xbf16> to vector<4x384xbf16>
    %43 = vector.extract_strided_slice %37 {offsets = [0, 0], sizes = [4, 384], strides = [1, 1]} : vector<4x768xf32> to vector<4x384xf32>
    %44 = vector.extract_strided_slice %42 {offsets = [0, 0], sizes = [4, 128], strides = [1, 1]} : vector<4x384xbf16> to vector<4x128xbf16>
    %45 = vector.extract_strided_slice %43 {offsets = [0, 0], sizes = [4, 128], strides = [1, 1]} : vector<4x384xf32> to vector<4x128xf32>
    %46 = arith.extf %44 : vector<4x128xbf16> to vector<4x128xf32>
    %47 = arith.addf %46, %45 : vector<4x128xf32>
    %48 = arith.negf %47 : vector<4x128xf32>
    %49 = math.exp %48 : vector<4x128xf32>
    %cst_35 = arith.constant 1.000000e+00 : f32
    %50 = vector.broadcast %cst_35 : f32 to vector<4x128xf32>
    %51 = arith.addf %50, %49 : vector<4x128xf32>
    %52 = arith.divf %50, %51 : vector<4x128xf32>
    %53 = vector.extract_strided_slice %42 {offsets = [0, 128], sizes = [4, 128], strides = [1, 1]} : vector<4x384xbf16> to vector<4x128xbf16>
    %54 = vector.extract_strided_slice %43 {offsets = [0, 128], sizes = [4, 128], strides = [1, 1]} : vector<4x384xf32> to vector<4x128xf32>
    %55 = arith.extf %53 : vector<4x128xbf16> to vector<4x128xf32>
    %56 = arith.addf %55, %54 : vector<4x128xf32>
    %57 = arith.negf %56 : vector<4x128xf32>
    %58 = math.exp %57 : vector<4x128xf32>
    %cst_36 = arith.constant 1.000000e+00 : f32
    %59 = vector.broadcast %cst_36 : f32 to vector<4x128xf32>
    %60 = arith.addf %59, %58 : vector<4x128xf32>
    %61 = arith.divf %59, %60 : vector<4x128xf32>
    %62 = vector.extract_strided_slice %42 {offsets = [0, 256], sizes = [4, 128], strides = [1, 1]} : vector<4x384xbf16> to vector<4x128xbf16>
    %63 = vector.extract_strided_slice %43 {offsets = [0, 256], sizes = [4, 128], strides = [1, 1]} : vector<4x384xf32> to vector<4x128xf32>
    %64 = arith.mulf %52, %63 : vector<4x128xf32>
    %65 = arith.extf %62 : vector<4x128xbf16> to vector<4x128xf32>
    %66 = arith.addf %65, %64 : vector<4x128xf32>
    %67 = math.tanh %66 : vector<4x128xf32>
    %cst_37 = arith.constant 1.000000e+00 : f32
    %68 = vector.broadcast %cst_37 : f32 to vector<4x128xf32>
    %69 = arith.subf %68, %61 : vector<4x128xf32>
    %70 = arith.mulf %69, %67 : vector<4x128xf32>
    %71 = arith.mulf %61, %38 : vector<4x128xf32>
    %72 = arith.addf %70, %71 : vector<4x128xf32>
    %73 = arith.index_cast %33 : i32 to index
    %c0_38 = arith.constant 0 : index
    %c0_39 = arith.constant 0 : index
    %74 = vector.load %arg17[%73, %c0_38, %c0_39] : memref<8x4x384xbf16, #tpu.memory_space<vmem>>, vector<1x4x384xbf16>
    %75 = vector.shape_cast %74 : vector<1x4x384xbf16> to vector<4x384xbf16>
    %76 = vector.extract_strided_slice %37 {offsets = [0, 384], sizes = [4, 384], strides = [1, 1]} : vector<4x768xf32> to vector<4x384xf32>
    %77 = vector.extract_strided_slice %75 {offsets = [0, 0], sizes = [4, 128], strides = [1, 1]} : vector<4x384xbf16> to vector<4x128xbf16>
    %78 = vector.extract_strided_slice %76 {offsets = [0, 0], sizes = [4, 128], strides = [1, 1]} : vector<4x384xf32> to vector<4x128xf32>
    %79 = arith.extf %77 : vector<4x128xbf16> to vector<4x128xf32>
    %80 = arith.addf %79, %78 : vector<4x128xf32>
    %81 = arith.negf %80 : vector<4x128xf32>
    %82 = math.exp %81 : vector<4x128xf32>
    %cst_40 = arith.constant 1.000000e+00 : f32
    %83 = vector.broadcast %cst_40 : f32 to vector<4x128xf32>
    %84 = arith.addf %83, %82 : vector<4x128xf32>
    %85 = arith.divf %83, %84 : vector<4x128xf32>
    %86 = vector.extract_strided_slice %75 {offsets = [0, 128], sizes = [4, 128], strides = [1, 1]} : vector<4x384xbf16> to vector<4x128xbf16>
    %87 = vector.extract_strided_slice %76 {offsets = [0, 128], sizes = [4, 128], strides = [1, 1]} : vector<4x384xf32> to vector<4x128xf32>
    %88 = arith.extf %86 : vector<4x128xbf16> to vector<4x128xf32>
    %89 = arith.addf %88, %87 : vector<4x128xf32>
    %90 = arith.negf %89 : vector<4x128xf32>
    %91 = math.exp %90 : vector<4x128xf32>
    %cst_41 = arith.constant 1.000000e+00 : f32
    %92 = vector.broadcast %cst_41 : f32 to vector<4x128xf32>
    %93 = arith.addf %92, %91 : vector<4x128xf32>
    %94 = arith.divf %92, %93 : vector<4x128xf32>
    %95 = vector.extract_strided_slice %75 {offsets = [0, 256], sizes = [4, 128], strides = [1, 1]} : vector<4x384xbf16> to vector<4x128xbf16>
    %96 = vector.extract_strided_slice %76 {offsets = [0, 256], sizes = [4, 128], strides = [1, 1]} : vector<4x384xf32> to vector<4x128xf32>
    %97 = arith.mulf %85, %96 : vector<4x128xf32>
    %98 = arith.extf %95 : vector<4x128xbf16> to vector<4x128xf32>
    %99 = arith.addf %98, %97 : vector<4x128xf32>
    %100 = math.tanh %99 : vector<4x128xf32>
    %cst_42 = arith.constant 1.000000e+00 : f32
    %101 = vector.broadcast %cst_42 : f32 to vector<4x128xf32>
    %102 = arith.subf %101, %94 : vector<4x128xf32>
    %103 = arith.mulf %102, %100 : vector<4x128xf32>
    %104 = arith.mulf %94, %39 : vector<4x128xf32>
    %105 = arith.addf %103, %104 : vector<4x128xf32>
    %106 = vector.broadcast %c0_i32 : i32 to vector<4x1xi32>
    %107 = arith.cmpi slt, %106, %31 : vector<4x1xi32>
    %108 = vector.broadcast %33 : i32 to vector<4x1xi32>
    %109 = arith.cmpi slt, %108, %31 : vector<4x1xi32>
    %cst_43 = arith.constant 0.000000e+00 : f32
    %110 = vector.shape_cast %107 : vector<4x1xi1> to vector<4x1xi1>
    %111 = vector.broadcast %110 : vector<4x1xi1> to vector<4x128xi1>
    %112 = vector.broadcast %cst_43 : f32 to vector<4x128xf32>
    %113 = arith.select %111, %72, %112 : vector<4x128xi1>, vector<4x128xf32>
    %114 = arith.truncf %113 : vector<4x128xf32> to vector<4x128xbf16>
    %115 = arith.index_cast %c0_i32 : i32 to index
    %c0_44 = arith.constant 0 : index
    %c0_45 = arith.constant 0 : index
    %116 = vector.load %arg12[%115, %c0_44, %c0_45] : memref<8x4x128xbf16, #tpu.memory_space<vmem>>, vector<1x4x128xbf16>
    %117 = vector.shape_cast %116 : vector<1x4x128xbf16> to vector<4x128xbf16>
    %118 = vector.shape_cast %114 : vector<4x128xbf16> to vector<1x4x128xbf16>
    tpu.vector_store %arg12[%115, %c0_44, %c0_45], %118 {strides = array<i32>} : memref<8x4x128xbf16, #tpu.memory_space<vmem>>, vector<1x4x128xbf16>,
    %cst_46 = arith.constant 0.000000e+00 : f32
    %119 = vector.shape_cast %109 : vector<4x1xi1> to vector<4x1xi1>
    %120 = vector.broadcast %119 : vector<4x1xi1> to vector<4x128xi1>
    %121 = vector.broadcast %cst_46 : f32 to vector<4x128xf32>
    %122 = arith.select %120, %105, %121 : vector<4x128xi1>, vector<4x128xf32>
    %123 = arith.truncf %122 : vector<4x128xf32> to vector<4x128xbf16>
    %124 = arith.index_cast %33 : i32 to index
    %c0_47 = arith.constant 0 : index
    %c0_48 = arith.constant 0 : index
    %125 = vector.load %arg13[%124, %c0_47, %c0_48] : memref<8x4x128xbf16, #tpu.memory_space<vmem>>, vector<1x4x128xbf16>
    %126 = vector.shape_cast %125 : vector<1x4x128xbf16> to vector<4x128xbf16>
    %127 = vector.shape_cast %123 : vector<4x128xbf16> to vector<1x4x128xbf16>
    tpu.vector_store %arg13[%124, %c0_47, %c0_48], %127 {strides = array<i32>} : memref<8x4x128xbf16, #tpu.memory_space<vmem>>, vector<1x4x128xbf16>,
    %128 = vector.shape_cast %107 : vector<4x1xi1> to vector<4x1xi1>
    %129 = vector.broadcast %128 : vector<4x1xi1> to vector<4x128xi1>
    %130 = arith.select %129, %72, %38 : vector<4x128xi1>, vector<4x128xf32>
    %131 = vector.shape_cast %109 : vector<4x1xi1> to vector<4x1xi1>
    %132 = vector.broadcast %131 : vector<4x1xi1> to vector<4x128xi1>
    %133 = arith.select %132, %105, %39 : vector<4x128xi1>, vector<4x128xf32>
    %134 = tpu.concatenate %130, %133 in 1 : vector<4x128xf32>, vector<4x128xf32> -> vector<4x256xf32>
    %c1_i32 = arith.constant 1 : i32
    %c7_i32_49 = arith.constant 7 : i32
    %135 = arith.subi %c7_i32_49, %c1_i32 : i32
    %136 = arith.truncf %134 : vector<4x256xf32> to vector<4x256xbf16>
    %cst_50 = arith.constant dense<0.000000e+00> : vector<4x768xf32>
    %137 = tpu.matmul %136, %29, %cst_50 {dimension_numbers = #tpu.dot_dimension_numbers<[1], [0], [0], [1], [0, 0, 1, 1], [], []>} : vector<4x256xbf16>, vector<256x768xbf16>, vector<4x768xf32> -> vector<4x768xf32>
    %138 = vector.broadcast %30 : vector<1x768xf32> to vector<4x768xf32>
    %139 = arith.addf %137, %138 : vector<4x768xf32>
    %140 = vector.extract_strided_slice %134 {offsets = [0, 0], sizes = [4, 128], strides = [1, 1]} : vector<4x256xf32> to vector<4x128xf32>
    %141 = vector.extract_strided_slice %134 {offsets = [0, 128], sizes = [4, 128], strides = [1, 1]} : vector<4x256xf32> to vector<4x128xf32>
    %142 = arith.index_cast %c1_i32 : i32 to index
    %c0_51 = arith.constant 0 : index
    %c0_52 = arith.constant 0 : index
    %143 = vector.load %arg16[%142, %c0_51, %c0_52] : memref<8x4x384xbf16, #tpu.memory_space<vmem>>, vector<1x4x384xbf16>
    %144 = vector.shape_cast %143 : vector<1x4x384xbf16> to vector<4x384xbf16>
    %145 = vector.extract_strided_slice %139 {offsets = [0, 0], sizes = [4, 384], strides = [1, 1]} : vector<4x768xf32> to vector<4x384xf32>
    %146 = vector.extract_strided_slice %144 {offsets = [0, 0], sizes = [4, 128], strides = [1, 1]} : vector<4x384xbf16> to vector<4x128xbf16>
    %147 = vector.extract_strided_slice %145 {offsets = [0, 0], sizes = [4, 128], strides = [1, 1]} : vector<4x384xf32> to vector<4x128xf32>
    %148 = arith.extf %146 : vector<4x128xbf16> to vector<4x128xf32>
    %149 = arith.addf %148, %147 : vector<4x128xf32>
    %150 = arith.negf %149 : vector<4x128xf32>
    %151 = math.exp %150 : vector<4x128xf32>
    %cst_53 = arith.constant 1.000000e+00 : f32
    %152 = vector.broadcast %cst_53 : f32 to vector<4x128xf32>
    %153 = arith.addf %152, %151 : vector<4x128xf32>
    %154 = arith.divf %152, %153 : vector<4x128xf32>
    %155 = vector.extract_strided_slice %144 {offsets = [0, 128], sizes = [4, 128], strides = [1, 1]} : vector<4x384xbf16> to vector<4x128xbf16>
    %156 = vector.extract_strided_slice %145 {offsets = [0, 128], sizes = [4, 128], strides = [1, 1]} : vector<4x384xf32> to vector<4x128xf32>
    %157 = arith.extf %155 : vector<4x128xbf16> to vector<4x128xf32>
    %158 = arith.addf %157, %156 : vector<4x128xf32>
    %159 = arith.negf %158 : vector<4x128xf32>
    %160 = math.exp %159 : vector<4x128xf32>
    %cst_54 = arith.constant 1.000000e+00 : f32
    %161 = vector.broadcast %cst_54 : f32 to vector<4x128xf32>
    %162 = arith.addf %161, %160 : vector<4x128xf32>
    %163 = arith.divf %161, %162 : vector<4x128xf32>
    %164 = vector.extract_strided_slice %144 {offsets = [0, 256], sizes = [4, 128], strides = [1, 1]} : vector<4x384xbf16> to vector<4x128xbf16>
    %165 = vector.extract_strided_slice %145 {offsets = [0, 256], sizes = [4, 128], strides = [1, 1]} : vector<4x384xf32> to vector<4x128xf32>
    %166 = arith.mulf %154, %165 : vector<4x128xf32>
    %167 = arith.extf %164 : vector<4x128xbf16> to vector<4x128xf32>
    %168 = arith.addf %167, %166 : vector<4x128xf32>
    %169 = math.tanh %168 : vector<4x128xf32>
    %cst_55 = arith.constant 1.000000e+00 : f32
    %170 = vector.broadcast %cst_55 : f32 to vector<4x128xf32>
    %171 = arith.subf %170, %163 : vector<4x128xf32>
    %172 = arith.mulf %171, %169 : vector<4x128xf32>
    %173 = arith.mulf %163, %140 : vector<4x128xf32>
    %174 = arith.addf %172, %173 : vector<4x128xf32>
    %175 = arith.index_cast %135 : i32 to index
    %c0_56 = arith.constant 0 : index
    %c0_57 = arith.constant 0 : index
    %176 = vector.load %arg17[%175, %c0_56, %c0_57] : memref<8x4x384xbf16, #tpu.memory_space<vmem>>, vector<1x4x384xbf16>
    %177 = vector.shape_cast %176 : vector<1x4x384xbf16> to vector<4x384xbf16>
    %178 = vector.extract_strided_slice %139 {offsets = [0, 384], sizes = [4, 384], strides = [1, 1]} : vector<4x768xf32> to vector<4x384xf32>
    %179 = vector.extract_strided_slice %177 {offsets = [0, 0], sizes = [4, 128], strides = [1, 1]} : vector<4x384xbf16> to vector<4x128xbf16>
    %180 = vector.extract_strided_slice %178 {offsets = [0, 0], sizes = [4, 128], strides = [1, 1]} : vector<4x384xf32> to vector<4x128xf32>
    %181 = arith.extf %179 : vector<4x128xbf16> to vector<4x128xf32>
    %182 = arith.addf %181, %180 : vector<4x128xf32>
    %183 = arith.negf %182 : vector<4x128xf32>
    %184 = math.exp %183 : vector<4x128xf32>
    %cst_58 = arith.constant 1.000000e+00 : f32
    %185 = vector.broadcast %cst_58 : f32 to vector<4x128xf32>
    %186 = arith.addf %185, %184 : vector<4x128xf32>
    %187 = arith.divf %185, %186 : vector<4x128xf32>
    %188 = vector.extract_strided_slice %177 {offsets = [0, 128], sizes = [4, 128], strides = [1, 1]} : vector<4x384xbf16> to vector<4x128xbf16>
    %189 = vector.extract_strided_slice %178 {offsets = [0, 128], sizes = [4, 128], strides = [1, 1]} : vector<4x384xf32> to vector<4x128xf32>
    %190 = arith.extf %188 : vector<4x128xbf16> to vector<4x128xf32>
    %191 = arith.addf %190, %189 : vector<4x128xf32>
    %192 = arith.negf %191 : vector<4x128xf32>
    %193 = math.exp %192 : vector<4x128xf32>
    %cst_59 = arith.constant 1.000000e+00 : f32
    %194 = vector.broadcast %cst_59 : f32 to vector<4x128xf32>
    %195 = arith.addf %194, %193 : vector<4x128xf32>
    %196 = arith.divf %194, %195 : vector<4x128xf32>
    %197 = vector.extract_strided_slice %177 {offsets = [0, 256], sizes = [4, 128], strides = [1, 1]} : vector<4x384xbf16> to vector<4x128xbf16>
    %198 = vector.extract_strided_slice %178 {offsets = [0, 256], sizes = [4, 128], strides = [1, 1]} : vector<4x384xf32> to vector<4x128xf32>
    %199 = arith.mulf %187, %198 : vector<4x128xf32>
    %200 = arith.extf %197 : vector<4x128xbf16> to vector<4x128xf32>
    %201 = arith.addf %200, %199 : vector<4x128xf32>
    %202 = math.tanh %201 : vector<4x128xf32>
    %cst_60 = arith.constant 1.000000e+00 : f32
    %203 = vector.broadcast %cst_60 : f32 to vector<4x128xf32>
    %204 = arith.subf %203, %196 : vector<4x128xf32>
    %205 = arith.mulf %204, %202 : vector<4x128xf32>
    %206 = arith.mulf %196, %141 : vector<4x128xf32>
    %207 = arith.addf %205, %206 : vector<4x128xf32>
    %208 = vector.broadcast %c1_i32 : i32 to vector<4x1xi32>
    %209 = arith.cmpi slt, %208, %31 : vector<4x1xi32>
    %210 = vector.broadcast %135 : i32 to vector<4x1xi32>
    %211 = arith.cmpi slt, %210, %31 : vector<4x1xi32>
    %cst_61 = arith.constant 0.000000e+00 : f32
    %212 = vector.shape_cast %209 : vector<4x1xi1> to vector<4x1xi1>
    %213 = vector.broadcast %212 : vector<4x1xi1> to vector<4x128xi1>
    %214 = vector.broadcast %cst_61 : f32 to vector<4x128xf32>
    %215 = arith.select %213, %174, %214 : vector<4x128xi1>, vector<4x128xf32>
    %216 = arith.truncf %215 : vector<4x128xf32> to vector<4x128xbf16>
    %217 = arith.index_cast %c1_i32 : i32 to index
    %c0_62 = arith.constant 0 : index
    %c0_63 = arith.constant 0 : index
    %218 = vector.load %arg12[%217, %c0_62, %c0_63] : memref<8x4x128xbf16, #tpu.memory_space<vmem>>, vector<1x4x128xbf16>
    %219 = vector.shape_cast %218 : vector<1x4x128xbf16> to vector<4x128xbf16>
    %220 = vector.shape_cast %216 : vector<4x128xbf16> to vector<1x4x128xbf16>
    tpu.vector_store %arg12[%217, %c0_62, %c0_63], %220 {strides = array<i32>} : memref<8x4x128xbf16, #tpu.memory_space<vmem>>, vector<1x4x128xbf16>,
    %cst_64 = arith.constant 0.000000e+00 : f32
    %221 = vector.shape_cast %211 : vector<4x1xi1> to vector<4x1xi1>
    %222 = vector.broadcast %221 : vector<4x1xi1> to vector<4x128xi1>
    %223 = vector.broadcast %cst_64 : f32 to vector<4x128xf32>
    %224 = arith.select %222, %207, %223 : vector<4x128xi1>, vector<4x128xf32>
    %225 = arith.truncf %224 : vector<4x128xf32> to vector<4x128xbf16>
    %226 = arith.index_cast %135 : i32 to index
    %c0_65 = arith.constant 0 : index
    %c0_66 = arith.constant 0 : index
    %227 = vector.load %arg13[%226, %c0_65, %c0_66] : memref<8x4x128xbf16, #tpu.memory_space<vmem>>, vector<1x4x128xbf16>
    %228 = vector.shape_cast %227 : vector<1x4x128xbf16> to vector<4x128xbf16>
    %229 = vector.shape_cast %225 : vector<4x128xbf16> to vector<1x4x128xbf16>
    tpu.vector_store %arg13[%226, %c0_65, %c0_66], %229 {strides = array<i32>} : memref<8x4x128xbf16, #tpu.memory_space<vmem>>, vector<1x4x128xbf16>,
    %230 = vector.shape_cast %209 : vector<4x1xi1> to vector<4x1xi1>
    %231 = vector.broadcast %230 : vector<4x1xi1> to vector<4x128xi1>
    %232 = arith.select %231, %174, %140 : vector<4x128xi1>, vector<4x128xf32>
    %233 = vector.shape_cast %211 : vector<4x1xi1> to vector<4x1xi1>
    %234 = vector.broadcast %233 : vector<4x1xi1> to vector<4x128xi1>
    %235 = arith.select %234, %207, %141 : vector<4x128xi1>, vector<4x128xf32>
    %236 = tpu.concatenate %232, %235 in 1 : vector<4x128xf32>, vector<4x128xf32> -> vector<4x256xf32>
    %c2_i32 = arith.constant 2 : i32
    %c7_i32_67 = arith.constant 7 : i32
    %237 = arith.subi %c7_i32_67, %c2_i32 : i32
    %238 = arith.truncf %236 : vector<4x256xf32> to vector<4x256xbf16>
    %cst_68 = arith.constant dense<0.000000e+00> : vector<4x768xf32>
    %239 = tpu.matmul %238, %29, %cst_68 {dimension_numbers = #tpu.dot_dimension_numbers<[1], [0], [0], [1], [0, 0, 1, 1], [], []>} : vector<4x256xbf16>, vector<256x768xbf16>, vector<4x768xf32> -> vector<4x768xf32>
    %240 = vector.broadcast %30 : vector<1x768xf32> to vector<4x768xf32>
    %241 = arith.addf %239, %240 : vector<4x768xf32>
    %242 = vector.extract_strided_slice %236 {offsets = [0, 0], sizes = [4, 128], strides = [1, 1]} : vector<4x256xf32> to vector<4x128xf32>
    %243 = vector.extract_strided_slice %236 {offsets = [0, 128], sizes = [4, 128], strides = [1, 1]} : vector<4x256xf32> to vector<4x128xf32>
    %244 = arith.index_cast %c2_i32 : i32 to index
    %c0_69 = arith.constant 0 : index
    %c0_70 = arith.constant 0 : index
    %245 = vector.load %arg16[%244, %c0_69, %c0_70] : memref<8x4x384xbf16, #tpu.memory_space<vmem>>, vector<1x4x384xbf16>
    %246 = vector.shape_cast %245 : vector<1x4x384xbf16> to vector<4x384xbf16>
    %247 = vector.extract_strided_slice %241 {offsets = [0, 0], sizes = [4, 384], strides = [1, 1]} : vector<4x768xf32> to vector<4x384xf32>
    %248 = vector.extract_strided_slice %246 {offsets = [0, 0], sizes = [4, 128], strides = [1, 1]} : vector<4x384xbf16> to vector<4x128xbf16>
    %249 = vector.extract_strided_slice %247 {offsets = [0, 0], sizes = [4, 128], strides = [1, 1]} : vector<4x384xf32> to vector<4x128xf32>
    %250 = arith.extf %248 : vector<4x128xbf16> to vector<4x128xf32>
    %251 = arith.addf %250, %249 : vector<4x128xf32>
    %252 = arith.negf %251 : vector<4x128xf32>
    %253 = math.exp %252 : vector<4x128xf32>
    %cst_71 = arith.constant 1.000000e+00 : f32
    %254 = vector.broadcast %cst_71 : f32 to vector<4x128xf32>
    %255 = arith.addf %254, %253 : vector<4x128xf32>
    %256 = arith.divf %254, %255 : vector<4x128xf32>
    %257 = vector.extract_strided_slice %246 {offsets = [0, 128], sizes = [4, 128], strides = [1, 1]} : vector<4x384xbf16> to vector<4x128xbf16>
    %258 = vector.extract_strided_slice %247 {offsets = [0, 128], sizes = [4, 128], strides = [1, 1]} : vector<4x384xf32> to vector<4x128xf32>
    %259 = arith.extf %257 : vector<4x128xbf16> to vector<4x128xf32>
    %260 = arith.addf %259, %258 : vector<4x128xf32>
    %261 = arith.negf %260 : vector<4x128xf32>
    %262 = math.exp %261 : vector<4x128xf32>
    %cst_72 = arith.constant 1.000000e+00 : f32
    %263 = vector.broadcast %cst_72 : f32 to vector<4x128xf32>
    %264 = arith.addf %263, %262 : vector<4x128xf32>
    %265 = arith.divf %263, %264 : vector<4x128xf32>
    %266 = vector.extract_strided_slice %246 {offsets = [0, 256], sizes = [4, 128], strides = [1, 1]} : vector<4x384xbf16> to vector<4x128xbf16>
    %267 = vector.extract_strided_slice %247 {offsets = [0, 256], sizes = [4, 128], strides = [1, 1]} : vector<4x384xf32> to vector<4x128xf32>
    %268 = arith.mulf %256, %267 : vector<4x128xf32>
    %269 = arith.extf %266 : vector<4x128xbf16> to vector<4x128xf32>
    %270 = arith.addf %269, %268 : vector<4x128xf32>
    %271 = math.tanh %270 : vector<4x128xf32>
    %cst_73 = arith.constant 1.000000e+00 : f32
    %272 = vector.broadcast %cst_73 : f32 to vector<4x128xf32>
    %273 = arith.subf %272, %265 : vector<4x128xf32>
    %274 = arith.mulf %273, %271 : vector<4x128xf32>
    %275 = arith.mulf %265, %242 : vector<4x128xf32>
    %276 = arith.addf %274, %275 : vector<4x128xf32>
    %277 = arith.index_cast %237 : i32 to index
    %c0_74 = arith.constant 0 : index
    %c0_75 = arith.constant 0 : index
    %278 = vector.load %arg17[%277, %c0_74, %c0_75] : memref<8x4x384xbf16, #tpu.memory_space<vmem>>, vector<1x4x384xbf16>
    %279 = vector.shape_cast %278 : vector<1x4x384xbf16> to vector<4x384xbf16>
    %280 = vector.extract_strided_slice %241 {offsets = [0, 384], sizes = [4, 384], strides = [1, 1]} : vector<4x768xf32> to vector<4x384xf32>
    %281 = vector.extract_strided_slice %279 {offsets = [0, 0], sizes = [4, 128], strides = [1, 1]} : vector<4x384xbf16> to vector<4x128xbf16>
    %282 = vector.extract_strided_slice %280 {offsets = [0, 0], sizes = [4, 128], strides = [1, 1]} : vector<4x384xf32> to vector<4x128xf32>
    %283 = arith.extf %281 : vector<4x128xbf16> to vector<4x128xf32>
    %284 = arith.addf %283, %282 : vector<4x128xf32>
    %285 = arith.negf %284 : vector<4x128xf32>
    %286 = math.exp %285 : vector<4x128xf32>
    %cst_76 = arith.constant 1.000000e+00 : f32
    %287 = vector.broadcast %cst_76 : f32 to vector<4x128xf32>
    %288 = arith.addf %287, %286 : vector<4x128xf32>
    %289 = arith.divf %287, %288 : vector<4x128xf32>
    %290 = vector.extract_strided_slice %279 {offsets = [0, 128], sizes = [4, 128], strides = [1, 1]} : vector<4x384xbf16> to vector<4x128xbf16>
    %291 = vector.extract_strided_slice %280 {offsets = [0, 128], sizes = [4, 128], strides = [1, 1]} : vector<4x384xf32> to vector<4x128xf32>
    %292 = arith.extf %290 : vector<4x128xbf16> to vector<4x128xf32>
    %293 = arith.addf %292, %291 : vector<4x128xf32>
    %294 = arith.negf %293 : vector<4x128xf32>
    %295 = math.exp %294 : vector<4x128xf32>
    %cst_77 = arith.constant 1.000000e+00 : f32
    %296 = vector.broadcast %cst_77 : f32 to vector<4x128xf32>
    %297 = arith.addf %296, %295 : vector<4x128xf32>
    %298 = arith.divf %296, %297 : vector<4x128xf32>
    %299 = vector.extract_strided_slice %279 {offsets = [0, 256], sizes = [4, 128], strides = [1, 1]} : vector<4x384xbf16> to vector<4x128xbf16>
    %300 = vector.extract_strided_slice %280 {offsets = [0, 256], sizes = [4, 128], strides = [1, 1]} : vector<4x384xf32> to vector<4x128xf32>
    %301 = arith.mulf %289, %300 : vector<4x128xf32>
    %302 = arith.extf %299 : vector<4x128xbf16> to vector<4x128xf32>
    %303 = arith.addf %302, %301 : vector<4x128xf32>
    %304 = math.tanh %303 : vector<4x128xf32>
    %cst_78 = arith.constant 1.000000e+00 : f32
    %305 = vector.broadcast %cst_78 : f32 to vector<4x128xf32>
    %306 = arith.subf %305, %298 : vector<4x128xf32>
    %307 = arith.mulf %306, %304 : vector<4x128xf32>
    %308 = arith.mulf %298, %243 : vector<4x128xf32>
    %309 = arith.addf %307, %308 : vector<4x128xf32>
    %310 = vector.broadcast %c2_i32 : i32 to vector<4x1xi32>
    %311 = arith.cmpi slt, %310, %31 : vector<4x1xi32>
    %312 = vector.broadcast %237 : i32 to vector<4x1xi32>
    %313 = arith.cmpi slt, %312, %31 : vector<4x1xi32>
    %cst_79 = arith.constant 0.000000e+00 : f32
    %314 = vector.shape_cast %311 : vector<4x1xi1> to vector<4x1xi1>
    %315 = vector.broadcast %314 : vector<4x1xi1> to vector<4x128xi1>
    %316 = vector.broadcast %cst_79 : f32 to vector<4x128xf32>
    %317 = arith.select %315, %276, %316 : vector<4x128xi1>, vector<4x128xf32>
    %318 = arith.truncf %317 : vector<4x128xf32> to vector<4x128xbf16>
    %319 = arith.index_cast %c2_i32 : i32 to index
    %c0_80 = arith.constant 0 : index
    %c0_81 = arith.constant 0 : index
    %320 = vector.load %arg12[%319, %c0_80, %c0_81] : memref<8x4x128xbf16, #tpu.memory_space<vmem>>, vector<1x4x128xbf16>
    %321 = vector.shape_cast %320 : vector<1x4x128xbf16> to vector<4x128xbf16>
    %322 = vector.shape_cast %318 : vector<4x128xbf16> to vector<1x4x128xbf16>
    tpu.vector_store %arg12[%319, %c0_80, %c0_81], %322 {strides = array<i32>} : memref<8x4x128xbf16, #tpu.memory_space<vmem>>, vector<1x4x128xbf16>,
    %cst_82 = arith.constant 0.000000e+00 : f32
    %323 = vector.shape_cast %313 : vector<4x1xi1> to vector<4x1xi1>
    %324 = vector.broadcast %323 : vector<4x1xi1> to vector<4x128xi1>
    %325 = vector.broadcast %cst_82 : f32 to vector<4x128xf32>
    %326 = arith.select %324, %309, %325 : vector<4x128xi1>, vector<4x128xf32>
    %327 = arith.truncf %326 : vector<4x128xf32> to vector<4x128xbf16>
    %328 = arith.index_cast %237 : i32 to index
    %c0_83 = arith.constant 0 : index
    %c0_84 = arith.constant 0 : index
    %329 = vector.load %arg13[%328, %c0_83, %c0_84] : memref<8x4x128xbf16, #tpu.memory_space<vmem>>, vector<1x4x128xbf16>
    %330 = vector.shape_cast %329 : vector<1x4x128xbf16> to vector<4x128xbf16>
    %331 = vector.shape_cast %327 : vector<4x128xbf16> to vector<1x4x128xbf16>
    tpu.vector_store %arg13[%328, %c0_83, %c0_84], %331 {strides = array<i32>} : memref<8x4x128xbf16, #tpu.memory_space<vmem>>, vector<1x4x128xbf16>,
    %332 = vector.shape_cast %311 : vector<4x1xi1> to vector<4x1xi1>
    %333 = vector.broadcast %332 : vector<4x1xi1> to vector<4x128xi1>
    %334 = arith.select %333, %276, %242 : vector<4x128xi1>, vector<4x128xf32>
    %335 = vector.shape_cast %313 : vector<4x1xi1> to vector<4x1xi1>
    %336 = vector.broadcast %335 : vector<4x1xi1> to vector<4x128xi1>
    %337 = arith.select %336, %309, %243 : vector<4x128xi1>, vector<4x128xf32>
    %338 = tpu.concatenate %334, %337 in 1 : vector<4x128xf32>, vector<4x128xf32> -> vector<4x256xf32>
    %c3_i32 = arith.constant 3 : i32
    %c7_i32_85 = arith.constant 7 : i32
    %339 = arith.subi %c7_i32_85, %c3_i32 : i32
    %340 = arith.truncf %338 : vector<4x256xf32> to vector<4x256xbf16>
    %cst_86 = arith.constant dense<0.000000e+00> : vector<4x768xf32>
    %341 = tpu.matmul %340, %29, %cst_86 {dimension_numbers = #tpu.dot_dimension_numbers<[1], [0], [0], [1], [0, 0, 1, 1], [], []>} : vector<4x256xbf16>, vector<256x768xbf16>, vector<4x768xf32> -> vector<4x768xf32>
    %342 = vector.broadcast %30 : vector<1x768xf32> to vector<4x768xf32>
    %343 = arith.addf %341, %342 : vector<4x768xf32>
    %344 = vector.extract_strided_slice %338 {offsets = [0, 0], sizes = [4, 128], strides = [1, 1]} : vector<4x256xf32> to vector<4x128xf32>
    %345 = vector.extract_strided_slice %338 {offsets = [0, 128], sizes = [4, 128], strides = [1, 1]} : vector<4x256xf32> to vector<4x128xf32>
    %346 = arith.index_cast %c3_i32 : i32 to index
    %c0_87 = arith.constant 0 : index
    %c0_88 = arith.constant 0 : index
    %347 = vector.load %arg16[%346, %c0_87, %c0_88] : memref<8x4x384xbf16, #tpu.memory_space<vmem>>, vector<1x4x384xbf16>
    %348 = vector.shape_cast %347 : vector<1x4x384xbf16> to vector<4x384xbf16>
    %349 = vector.extract_strided_slice %343 {offsets = [0, 0], sizes = [4, 384], strides = [1, 1]} : vector<4x768xf32> to vector<4x384xf32>
    %350 = vector.extract_strided_slice %348 {offsets = [0, 0], sizes = [4, 128], strides = [1, 1]} : vector<4x384xbf16> to vector<4x128xbf16>
    %351 = vector.extract_strided_slice %349 {offsets = [0, 0], sizes = [4, 128], strides = [1, 1]} : vector<4x384xf32> to vector<4x128xf32>
    %352 = arith.extf %350 : vector<4x128xbf16> to vector<4x128xf32>
    %353 = arith.addf %352, %351 : vector<4x128xf32>
    %354 = arith.negf %353 : vector<4x128xf32>
    %355 = math.exp %354 : vector<4x128xf32>
    %cst_89 = arith.constant 1.000000e+00 : f32
    %356 = vector.broadcast %cst_89 : f32 to vector<4x128xf32>
    %357 = arith.addf %356, %355 : vector<4x128xf32>
    %358 = arith.divf %356, %357 : vector<4x128xf32>
    %359 = vector.extract_strided_slice %348 {offsets = [0, 128], sizes = [4, 128], strides = [1, 1]} : vector<4x384xbf16> to vector<4x128xbf16>
    %360 = vector.extract_strided_slice %349 {offsets = [0, 128], sizes = [4, 128], strides = [1, 1]} : vector<4x384xf32> to vector<4x128xf32>
    %361 = arith.extf %359 : vector<4x128xbf16> to vector<4x128xf32>
    %362 = arith.addf %361, %360 : vector<4x128xf32>
    %363 = arith.negf %362 : vector<4x128xf32>
    %364 = math.exp %363 : vector<4x128xf32>
    %cst_90 = arith.constant 1.000000e+00 : f32
    %365 = vector.broadcast %cst_90 : f32 to vector<4x128xf32>
    %366 = arith.addf %365, %364 : vector<4x128xf32>
    %367 = arith.divf %365, %366 : vector<4x128xf32>
    %368 = vector.extract_strided_slice %348 {offsets = [0, 256], sizes = [4, 128], strides = [1, 1]} : vector<4x384xbf16> to vector<4x128xbf16>
    %369 = vector.extract_strided_slice %349 {offsets = [0, 256], sizes = [4, 128], strides = [1, 1]} : vector<4x384xf32> to vector<4x128xf32>
    %370 = arith.mulf %358, %369 : vector<4x128xf32>
    %371 = arith.extf %368 : vector<4x128xbf16> to vector<4x128xf32>
    %372 = arith.addf %371, %370 : vector<4x128xf32>
    %373 = math.tanh %372 : vector<4x128xf32>
    %cst_91 = arith.constant 1.000000e+00 : f32
    %374 = vector.broadcast %cst_91 : f32 to vector<4x128xf32>
    %375 = arith.subf %374, %367 : vector<4x128xf32>
    %376 = arith.mulf %375, %373 : vector<4x128xf32>
    %377 = arith.mulf %367, %344 : vector<4x128xf32>
    %378 = arith.addf %376, %377 : vector<4x128xf32>
    %379 = arith.index_cast %339 : i32 to index
    %c0_92 = arith.constant 0 : index
    %c0_93 = arith.constant 0 : index
    %380 = vector.load %arg17[%379, %c0_92, %c0_93] : memref<8x4x384xbf16, #tpu.memory_space<vmem>>, vector<1x4x384xbf16>
    %381 = vector.shape_cast %380 : vector<1x4x384xbf16> to vector<4x384xbf16>
    %382 = vector.extract_strided_slice %343 {offsets = [0, 384], sizes = [4, 384], strides = [1, 1]} : vector<4x768xf32> to vector<4x384xf32>
    %383 = vector.extract_strided_slice %381 {offsets = [0, 0], sizes = [4, 128], strides = [1, 1]} : vector<4x384xbf16> to vector<4x128xbf16>
    %384 = vector.extract_strided_slice %382 {offsets = [0, 0], sizes = [4, 128], strides = [1, 1]} : vector<4x384xf32> to vector<4x128xf32>
    %385 = arith.extf %383 : vector<4x128xbf16> to vector<4x128xf32>
    %386 = arith.addf %385, %384 : vector<4x128xf32>
    %387 = arith.negf %386 : vector<4x128xf32>
    %388 = math.exp %387 : vector<4x128xf32>
    %cst_94 = arith.constant 1.000000e+00 : f32
    %389 = vector.broadcast %cst_94 : f32 to vector<4x128xf32>
    %390 = arith.addf %389, %388 : vector<4x128xf32>
    %391 = arith.divf %389, %390 : vector<4x128xf32>
    %392 = vector.extract_strided_slice %381 {offsets = [0, 128], sizes = [4, 128], strides = [1, 1]} : vector<4x384xbf16> to vector<4x128xbf16>
    %393 = vector.extract_strided_slice %382 {offsets = [0, 128], sizes = [4, 128], strides = [1, 1]} : vector<4x384xf32> to vector<4x128xf32>
    %394 = arith.extf %392 : vector<4x128xbf16> to vector<4x128xf32>
    %395 = arith.addf %394, %393 : vector<4x128xf32>
    %396 = arith.negf %395 : vector<4x128xf32>
    %397 = math.exp %396 : vector<4x128xf32>
    %cst_95 = arith.constant 1.000000e+00 : f32
    %398 = vector.broadcast %cst_95 : f32 to vector<4x128xf32>
    %399 = arith.addf %398, %397 : vector<4x128xf32>
    %400 = arith.divf %398, %399 : vector<4x128xf32>
    %401 = vector.extract_strided_slice %381 {offsets = [0, 256], sizes = [4, 128], strides = [1, 1]} : vector<4x384xbf16> to vector<4x128xbf16>
    %402 = vector.extract_strided_slice %382 {offsets = [0, 256], sizes = [4, 128], strides = [1, 1]} : vector<4x384xf32> to vector<4x128xf32>
    %403 = arith.mulf %391, %402 : vector<4x128xf32>
    %404 = arith.extf %401 : vector<4x128xbf16> to vector<4x128xf32>
    %405 = arith.addf %404, %403 : vector<4x128xf32>
    %406 = math.tanh %405 : vector<4x128xf32>
    %cst_96 = arith.constant 1.000000e+00 : f32
    %407 = vector.broadcast %cst_96 : f32 to vector<4x128xf32>
    %408 = arith.subf %407, %400 : vector<4x128xf32>
    %409 = arith.mulf %408, %406 : vector<4x128xf32>
    %410 = arith.mulf %400, %345 : vector<4x128xf32>
    %411 = arith.addf %409, %410 : vector<4x128xf32>
    %412 = vector.broadcast %c3_i32 : i32 to vector<4x1xi32>
    %413 = arith.cmpi slt, %412, %31 : vector<4x1xi32>
    %414 = vector.broadcast %339 : i32 to vector<4x1xi32>
    %415 = arith.cmpi slt, %414, %31 : vector<4x1xi32>
    %cst_97 = arith.constant 0.000000e+00 : f32
    %416 = vector.shape_cast %413 : vector<4x1xi1> to vector<4x1xi1>
    %417 = vector.broadcast %416 : vector<4x1xi1> to vector<4x128xi1>
    %418 = vector.broadcast %cst_97 : f32 to vector<4x128xf32>
    %419 = arith.select %417, %378, %418 : vector<4x128xi1>, vector<4x128xf32>
    %420 = arith.truncf %419 : vector<4x128xf32> to vector<4x128xbf16>
    %421 = arith.index_cast %c3_i32 : i32 to index
    %c0_98 = arith.constant 0 : index
    %c0_99 = arith.constant 0 : index
    %422 = vector.load %arg12[%421, %c0_98, %c0_99] : memref<8x4x128xbf16, #tpu.memory_space<vmem>>, vector<1x4x128xbf16>
    %423 = vector.shape_cast %422 : vector<1x4x128xbf16> to vector<4x128xbf16>
    %424 = vector.shape_cast %420 : vector<4x128xbf16> to vector<1x4x128xbf16>
    tpu.vector_store %arg12[%421, %c0_98, %c0_99], %424 {strides = array<i32>} : memref<8x4x128xbf16, #tpu.memory_space<vmem>>, vector<1x4x128xbf16>,
    %cst_100 = arith.constant 0.000000e+00 : f32
    %425 = vector.shape_cast %415 : vector<4x1xi1> to vector<4x1xi1>
    %426 = vector.broadcast %425 : vector<4x1xi1> to vector<4x128xi1>
    %427 = vector.broadcast %cst_100 : f32 to vector<4x128xf32>
    %428 = arith.select %426, %411, %427 : vector<4x128xi1>, vector<4x128xf32>
    %429 = arith.truncf %428 : vector<4x128xf32> to vector<4x128xbf16>
    %430 = arith.index_cast %339 : i32 to index
    %c0_101 = arith.constant 0 : index
    %c0_102 = arith.constant 0 : index
    %431 = vector.load %arg13[%430, %c0_101, %c0_102] : memref<8x4x128xbf16, #tpu.memory_space<vmem>>, vector<1x4x128xbf16>
    %432 = vector.shape_cast %431 : vector<1x4x128xbf16> to vector<4x128xbf16>
    %433 = vector.shape_cast %429 : vector<4x128xbf16> to vector<1x4x128xbf16>
    tpu.vector_store %arg13[%430, %c0_101, %c0_102], %433 {strides = array<i32>} : memref<8x4x128xbf16, #tpu.memory_space<vmem>>, vector<1x4x128xbf16>,
    %434 = vector.shape_cast %413 : vector<4x1xi1> to vector<4x1xi1>
    %435 = vector.broadcast %434 : vector<4x1xi1> to vector<4x128xi1>
    %436 = arith.select %435, %378, %344 : vector<4x128xi1>, vector<4x128xf32>
    %437 = vector.shape_cast %415 : vector<4x1xi1> to vector<4x1xi1>
    %438 = vector.broadcast %437 : vector<4x1xi1> to vector<4x128xi1>
    %439 = arith.select %438, %411, %345 : vector<4x128xi1>, vector<4x128xf32>
    %440 = tpu.concatenate %436, %439 in 1 : vector<4x128xf32>, vector<4x128xf32> -> vector<4x256xf32>
    %c4_i32 = arith.constant 4 : i32
    %c7_i32_103 = arith.constant 7 : i32
    %441 = arith.subi %c7_i32_103, %c4_i32 : i32
    %442 = arith.truncf %440 : vector<4x256xf32> to vector<4x256xbf16>
    %cst_104 = arith.constant dense<0.000000e+00> : vector<4x768xf32>
    %443 = tpu.matmul %442, %29, %cst_104 {dimension_numbers = #tpu.dot_dimension_numbers<[1], [0], [0], [1], [0, 0, 1, 1], [], []>} : vector<4x256xbf16>, vector<256x768xbf16>, vector<4x768xf32> -> vector<4x768xf32>
    %444 = vector.broadcast %30 : vector<1x768xf32> to vector<4x768xf32>
    %445 = arith.addf %443, %444 : vector<4x768xf32>
    %446 = vector.extract_strided_slice %440 {offsets = [0, 0], sizes = [4, 128], strides = [1, 1]} : vector<4x256xf32> to vector<4x128xf32>
    %447 = vector.extract_strided_slice %440 {offsets = [0, 128], sizes = [4, 128], strides = [1, 1]} : vector<4x256xf32> to vector<4x128xf32>
    %448 = arith.index_cast %c4_i32 : i32 to index
    %c0_105 = arith.constant 0 : index
    %c0_106 = arith.constant 0 : index
    %449 = vector.load %arg16[%448, %c0_105, %c0_106] : memref<8x4x384xbf16, #tpu.memory_space<vmem>>, vector<1x4x384xbf16>
    %450 = vector.shape_cast %449 : vector<1x4x384xbf16> to vector<4x384xbf16>
    %451 = vector.extract_strided_slice %445 {offsets = [0, 0], sizes = [4, 384], strides = [1, 1]} : vector<4x768xf32> to vector<4x384xf32>
    %452 = vector.extract_strided_slice %450 {offsets = [0, 0], sizes = [4, 128], strides = [1, 1]} : vector<4x384xbf16> to vector<4x128xbf16>
    %453 = vector.extract_strided_slice %451 {offsets = [0, 0], sizes = [4, 128], strides = [1, 1]} : vector<4x384xf32> to vector<4x128xf32>
    %454 = arith.extf %452 : vector<4x128xbf16> to vector<4x128xf32>
    %455 = arith.addf %454, %453 : vector<4x128xf32>
    %456 = arith.negf %455 : vector<4x128xf32>
    %457 = math.exp %456 : vector<4x128xf32>
    %cst_107 = arith.constant 1.000000e+00 : f32
    %458 = vector.broadcast %cst_107 : f32 to vector<4x128xf32>
    %459 = arith.addf %458, %457 : vector<4x128xf32>
    %460 = arith.divf %458, %459 : vector<4x128xf32>
    %461 = vector.extract_strided_slice %450 {offsets = [0, 128], sizes = [4, 128], strides = [1, 1]} : vector<4x384xbf16> to vector<4x128xbf16>
    %462 = vector.extract_strided_slice %451 {offsets = [0, 128], sizes = [4, 128], strides = [1, 1]} : vector<4x384xf32> to vector<4x128xf32>
    %463 = arith.extf %461 : vector<4x128xbf16> to vector<4x128xf32>
    %464 = arith.addf %463, %462 : vector<4x128xf32>
    %465 = arith.negf %464 : vector<4x128xf32>
    %466 = math.exp %465 : vector<4x128xf32>
    %cst_108 = arith.constant 1.000000e+00 : f32
    %467 = vector.broadcast %cst_108 : f32 to vector<4x128xf32>
    %468 = arith.addf %467, %466 : vector<4x128xf32>
    %469 = arith.divf %467, %468 : vector<4x128xf32>
    %470 = vector.extract_strided_slice %450 {offsets = [0, 256], sizes = [4, 128], strides = [1, 1]} : vector<4x384xbf16> to vector<4x128xbf16>
    %471 = vector.extract_strided_slice %451 {offsets = [0, 256], sizes = [4, 128], strides = [1, 1]} : vector<4x384xf32> to vector<4x128xf32>
    %472 = arith.mulf %460, %471 : vector<4x128xf32>
    %473 = arith.extf %470 : vector<4x128xbf16> to vector<4x128xf32>
    %474 = arith.addf %473, %472 : vector<4x128xf32>
    %475 = math.tanh %474 : vector<4x128xf32>
    %cst_109 = arith.constant 1.000000e+00 : f32
    %476 = vector.broadcast %cst_109 : f32 to vector<4x128xf32>
    %477 = arith.subf %476, %469 : vector<4x128xf32>
    %478 = arith.mulf %477, %475 : vector<4x128xf32>
    %479 = arith.mulf %469, %446 : vector<4x128xf32>
    %480 = arith.addf %478, %479 : vector<4x128xf32>
    %481 = arith.index_cast %441 : i32 to index
    %c0_110 = arith.constant 0 : index
    %c0_111 = arith.constant 0 : index
    %482 = vector.load %arg17[%481, %c0_110, %c0_111] : memref<8x4x384xbf16, #tpu.memory_space<vmem>>, vector<1x4x384xbf16>
    %483 = vector.shape_cast %482 : vector<1x4x384xbf16> to vector<4x384xbf16>
    %484 = vector.extract_strided_slice %445 {offsets = [0, 384], sizes = [4, 384], strides = [1, 1]} : vector<4x768xf32> to vector<4x384xf32>
    %485 = vector.extract_strided_slice %483 {offsets = [0, 0], sizes = [4, 128], strides = [1, 1]} : vector<4x384xbf16> to vector<4x128xbf16>
    %486 = vector.extract_strided_slice %484 {offsets = [0, 0], sizes = [4, 128], strides = [1, 1]} : vector<4x384xf32> to vector<4x128xf32>
    %487 = arith.extf %485 : vector<4x128xbf16> to vector<4x128xf32>
    %488 = arith.addf %487, %486 : vector<4x128xf32>
    %489 = arith.negf %488 : vector<4x128xf32>
    %490 = math.exp %489 : vector<4x128xf32>
    %cst_112 = arith.constant 1.000000e+00 : f32
    %491 = vector.broadcast %cst_112 : f32 to vector<4x128xf32>
    %492 = arith.addf %491, %490 : vector<4x128xf32>
    %493 = arith.divf %491, %492 : vector<4x128xf32>
    %494 = vector.extract_strided_slice %483 {offsets = [0, 128], sizes = [4, 128], strides = [1, 1]} : vector<4x384xbf16> to vector<4x128xbf16>
    %495 = vector.extract_strided_slice %484 {offsets = [0, 128], sizes = [4, 128], strides = [1, 1]} : vector<4x384xf32> to vector<4x128xf32>
    %496 = arith.extf %494 : vector<4x128xbf16> to vector<4x128xf32>
    %497 = arith.addf %496, %495 : vector<4x128xf32>
    %498 = arith.negf %497 : vector<4x128xf32>
    %499 = math.exp %498 : vector<4x128xf32>
    %cst_113 = arith.constant 1.000000e+00 : f32
    %500 = vector.broadcast %cst_113 : f32 to vector<4x128xf32>
    %501 = arith.addf %500, %499 : vector<4x128xf32>
    %502 = arith.divf %500, %501 : vector<4x128xf32>
    %503 = vector.extract_strided_slice %483 {offsets = [0, 256], sizes = [4, 128], strides = [1, 1]} : vector<4x384xbf16> to vector<4x128xbf16>
    %504 = vector.extract_strided_slice %484 {offsets = [0, 256], sizes = [4, 128], strides = [1, 1]} : vector<4x384xf32> to vector<4x128xf32>
    %505 = arith.mulf %493, %504 : vector<4x128xf32>
    %506 = arith.extf %503 : vector<4x128xbf16> to vector<4x128xf32>
    %507 = arith.addf %506, %505 : vector<4x128xf32>
    %508 = math.tanh %507 : vector<4x128xf32>
    %cst_114 = arith.constant 1.000000e+00 : f32
    %509 = vector.broadcast %cst_114 : f32 to vector<4x128xf32>
    %510 = arith.subf %509, %502 : vector<4x128xf32>
    %511 = arith.mulf %510, %508 : vector<4x128xf32>
    %512 = arith.mulf %502, %447 : vector<4x128xf32>
    %513 = arith.addf %511, %512 : vector<4x128xf32>
    %514 = vector.broadcast %c4_i32 : i32 to vector<4x1xi32>
    %515 = arith.cmpi slt, %514, %31 : vector<4x1xi32>
    %516 = vector.broadcast %441 : i32 to vector<4x1xi32>
    %517 = arith.cmpi slt, %516, %31 : vector<4x1xi32>
    %cst_115 = arith.constant 0.000000e+00 : f32
    %518 = vector.shape_cast %515 : vector<4x1xi1> to vector<4x1xi1>
    %519 = vector.broadcast %518 : vector<4x1xi1> to vector<4x128xi1>
    %520 = vector.broadcast %cst_115 : f32 to vector<4x128xf32>
    %521 = arith.select %519, %480, %520 : vector<4x128xi1>, vector<4x128xf32>
    %522 = arith.truncf %521 : vector<4x128xf32> to vector<4x128xbf16>
    %523 = arith.index_cast %c4_i32 : i32 to index
    %c0_116 = arith.constant 0 : index
    %c0_117 = arith.constant 0 : index
    %524 = vector.load %arg12[%523, %c0_116, %c0_117] : memref<8x4x128xbf16, #tpu.memory_space<vmem>>, vector<1x4x128xbf16>
    %525 = vector.shape_cast %524 : vector<1x4x128xbf16> to vector<4x128xbf16>
    %526 = vector.shape_cast %522 : vector<4x128xbf16> to vector<1x4x128xbf16>
    tpu.vector_store %arg12[%523, %c0_116, %c0_117], %526 {strides = array<i32>} : memref<8x4x128xbf16, #tpu.memory_space<vmem>>, vector<1x4x128xbf16>,
    %cst_118 = arith.constant 0.000000e+00 : f32
    %527 = vector.shape_cast %517 : vector<4x1xi1> to vector<4x1xi1>
    %528 = vector.broadcast %527 : vector<4x1xi1> to vector<4x128xi1>
    %529 = vector.broadcast %cst_118 : f32 to vector<4x128xf32>
    %530 = arith.select %528, %513, %529 : vector<4x128xi1>, vector<4x128xf32>
    %531 = arith.truncf %530 : vector<4x128xf32> to vector<4x128xbf16>
    %532 = arith.index_cast %441 : i32 to index
    %c0_119 = arith.constant 0 : index
    %c0_120 = arith.constant 0 : index
    %533 = vector.load %arg13[%532, %c0_119, %c0_120] : memref<8x4x128xbf16, #tpu.memory_space<vmem>>, vector<1x4x128xbf16>
    %534 = vector.shape_cast %533 : vector<1x4x128xbf16> to vector<4x128xbf16>
    %535 = vector.shape_cast %531 : vector<4x128xbf16> to vector<1x4x128xbf16>
    tpu.vector_store %arg13[%532, %c0_119, %c0_120], %535 {strides = array<i32>} : memref<8x4x128xbf16, #tpu.memory_space<vmem>>, vector<1x4x128xbf16>,
    %536 = vector.shape_cast %515 : vector<4x1xi1> to vector<4x1xi1>
    %537 = vector.broadcast %536 : vector<4x1xi1> to vector<4x128xi1>
    %538 = arith.select %537, %480, %446 : vector<4x128xi1>, vector<4x128xf32>
    %539 = vector.shape_cast %517 : vector<4x1xi1> to vector<4x1xi1>
    %540 = vector.broadcast %539 : vector<4x1xi1> to vector<4x128xi1>
    %541 = arith.select %540, %513, %447 : vector<4x128xi1>, vector<4x128xf32>
    %542 = tpu.concatenate %538, %541 in 1 : vector<4x128xf32>, vector<4x128xf32> -> vector<4x256xf32>
    %c5_i32 = arith.constant 5 : i32
    %c7_i32_121 = arith.constant 7 : i32
    %543 = arith.subi %c7_i32_121, %c5_i32 : i32
    %544 = arith.truncf %542 : vector<4x256xf32> to vector<4x256xbf16>
    %cst_122 = arith.constant dense<0.000000e+00> : vector<4x768xf32>
    %545 = tpu.matmul %544, %29, %cst_122 {dimension_numbers = #tpu.dot_dimension_numbers<[1], [0], [0], [1], [0, 0, 1, 1], [], []>} : vector<4x256xbf16>, vector<256x768xbf16>, vector<4x768xf32> -> vector<4x768xf32>
    %546 = vector.broadcast %30 : vector<1x768xf32> to vector<4x768xf32>
    %547 = arith.addf %545, %546 : vector<4x768xf32>
    %548 = vector.extract_strided_slice %542 {offsets = [0, 0], sizes = [4, 128], strides = [1, 1]} : vector<4x256xf32> to vector<4x128xf32>
    %549 = vector.extract_strided_slice %542 {offsets = [0, 128], sizes = [4, 128], strides = [1, 1]} : vector<4x256xf32> to vector<4x128xf32>
    %550 = arith.index_cast %c5_i32 : i32 to index
    %c0_123 = arith.constant 0 : index
    %c0_124 = arith.constant 0 : index
    %551 = vector.load %arg16[%550, %c0_123, %c0_124] : memref<8x4x384xbf16, #tpu.memory_space<vmem>>, vector<1x4x384xbf16>
    %552 = vector.shape_cast %551 : vector<1x4x384xbf16> to vector<4x384xbf16>
    %553 = vector.extract_strided_slice %547 {offsets = [0, 0], sizes = [4, 384], strides = [1, 1]} : vector<4x768xf32> to vector<4x384xf32>
    %554 = vector.extract_strided_slice %552 {offsets = [0, 0], sizes = [4, 128], strides = [1, 1]} : vector<4x384xbf16> to vector<4x128xbf16>
    %555 = vector.extract_strided_slice %553 {offsets = [0, 0], sizes = [4, 128], strides = [1, 1]} : vector<4x384xf32> to vector<4x128xf32>
    %556 = arith.extf %554 : vector<4x128xbf16> to vector<4x128xf32>
    %557 = arith.addf %556, %555 : vector<4x128xf32>
    %558 = arith.negf %557 : vector<4x128xf32>
    %559 = math.exp %558 : vector<4x128xf32>
    %cst_125 = arith.constant 1.000000e+00 : f32
    %560 = vector.broadcast %cst_125 : f32 to vector<4x128xf32>
    %561 = arith.addf %560, %559 : vector<4x128xf32>
    %562 = arith.divf %560, %561 : vector<4x128xf32>
    %563 = vector.extract_strided_slice %552 {offsets = [0, 128], sizes = [4, 128], strides = [1, 1]} : vector<4x384xbf16> to vector<4x128xbf16>
    %564 = vector.extract_strided_slice %553 {offsets = [0, 128], sizes = [4, 128], strides = [1, 1]} : vector<4x384xf32> to vector<4x128xf32>
    %565 = arith.extf %563 : vector<4x128xbf16> to vector<4x128xf32>
    %566 = arith.addf %565, %564 : vector<4x128xf32>
    %567 = arith.negf %566 : vector<4x128xf32>
    %568 = math.exp %567 : vector<4x128xf32>
    %cst_126 = arith.constant 1.000000e+00 : f32
    %569 = vector.broadcast %cst_126 : f32 to vector<4x128xf32>
    %570 = arith.addf %569, %568 : vector<4x128xf32>
    %571 = arith.divf %569, %570 : vector<4x128xf32>
    %572 = vector.extract_strided_slice %552 {offsets = [0, 256], sizes = [4, 128], strides = [1, 1]} : vector<4x384xbf16> to vector<4x128xbf16>
    %573 = vector.extract_strided_slice %553 {offsets = [0, 256], sizes = [4, 128], strides = [1, 1]} : vector<4x384xf32> to vector<4x128xf32>
    %574 = arith.mulf %562, %573 : vector<4x128xf32>
    %575 = arith.extf %572 : vector<4x128xbf16> to vector<4x128xf32>
    %576 = arith.addf %575, %574 : vector<4x128xf32>
    %577 = math.tanh %576 : vector<4x128xf32>
    %cst_127 = arith.constant 1.000000e+00 : f32
    %578 = vector.broadcast %cst_127 : f32 to vector<4x128xf32>
    %579 = arith.subf %578, %571 : vector<4x128xf32>
    %580 = arith.mulf %579, %577 : vector<4x128xf32>
    %581 = arith.mulf %571, %548 : vector<4x128xf32>
    %582 = arith.addf %580, %581 : vector<4x128xf32>
    %583 = arith.index_cast %543 : i32 to index
    %c0_128 = arith.constant 0 : index
    %c0_129 = arith.constant 0 : index
    %584 = vector.load %arg17[%583, %c0_128, %c0_129] : memref<8x4x384xbf16, #tpu.memory_space<vmem>>, vector<1x4x384xbf16>
    %585 = vector.shape_cast %584 : vector<1x4x384xbf16> to vector<4x384xbf16>
    %586 = vector.extract_strided_slice %547 {offsets = [0, 384], sizes = [4, 384], strides = [1, 1]} : vector<4x768xf32> to vector<4x384xf32>
    %587 = vector.extract_strided_slice %585 {offsets = [0, 0], sizes = [4, 128], strides = [1, 1]} : vector<4x384xbf16> to vector<4x128xbf16>
    %588 = vector.extract_strided_slice %586 {offsets = [0, 0], sizes = [4, 128], strides = [1, 1]} : vector<4x384xf32> to vector<4x128xf32>
    %589 = arith.extf %587 : vector<4x128xbf16> to vector<4x128xf32>
    %590 = arith.addf %589, %588 : vector<4x128xf32>
    %591 = arith.negf %590 : vector<4x128xf32>
    %592 = math.exp %591 : vector<4x128xf32>
    %cst_130 = arith.constant 1.000000e+00 : f32
    %593 = vector.broadcast %cst_130 : f32 to vector<4x128xf32>
    %594 = arith.addf %593, %592 : vector<4x128xf32>
    %595 = arith.divf %593, %594 : vector<4x128xf32>
    %596 = vector.extract_strided_slice %585 {offsets = [0, 128], sizes = [4, 128], strides = [1, 1]} : vector<4x384xbf16> to vector<4x128xbf16>
    %597 = vector.extract_strided_slice %586 {offsets = [0, 128], sizes = [4, 128], strides = [1, 1]} : vector<4x384xf32> to vector<4x128xf32>
    %598 = arith.extf %596 : vector<4x128xbf16> to vector<4x128xf32>
    %599 = arith.addf %598, %597 : vector<4x128xf32>
    %600 = arith.negf %599 : vector<4x128xf32>
    %601 = math.exp %600 : vector<4x128xf32>
    %cst_131 = arith.constant 1.000000e+00 : f32
    %602 = vector.broadcast %cst_131 : f32 to vector<4x128xf32>
    %603 = arith.addf %602, %601 : vector<4x128xf32>
    %604 = arith.divf %602, %603 : vector<4x128xf32>
    %605 = vector.extract_strided_slice %585 {offsets = [0, 256], sizes = [4, 128], strides = [1, 1]} : vector<4x384xbf16> to vector<4x128xbf16>
    %606 = vector.extract_strided_slice %586 {offsets = [0, 256], sizes = [4, 128], strides = [1, 1]} : vector<4x384xf32> to vector<4x128xf32>
    %607 = arith.mulf %595, %606 : vector<4x128xf32>
    %608 = arith.extf %605 : vector<4x128xbf16> to vector<4x128xf32>
    %609 = arith.addf %608, %607 : vector<4x128xf32>
    %610 = math.tanh %609 : vector<4x128xf32>
    %cst_132 = arith.constant 1.000000e+00 : f32
    %611 = vector.broadcast %cst_132 : f32 to vector<4x128xf32>
    %612 = arith.subf %611, %604 : vector<4x128xf32>
    %613 = arith.mulf %612, %610 : vector<4x128xf32>
    %614 = arith.mulf %604, %549 : vector<4x128xf32>
    %615 = arith.addf %613, %614 : vector<4x128xf32>
    %616 = vector.broadcast %c5_i32 : i32 to vector<4x1xi32>
    %617 = arith.cmpi slt, %616, %31 : vector<4x1xi32>
    %618 = vector.broadcast %543 : i32 to vector<4x1xi32>
    %619 = arith.cmpi slt, %618, %31 : vector<4x1xi32>
    %cst_133 = arith.constant 0.000000e+00 : f32
    %620 = vector.shape_cast %617 : vector<4x1xi1> to vector<4x1xi1>
    %621 = vector.broadcast %620 : vector<4x1xi1> to vector<4x128xi1>
    %622 = vector.broadcast %cst_133 : f32 to vector<4x128xf32>
    %623 = arith.select %621, %582, %622 : vector<4x128xi1>, vector<4x128xf32>
    %624 = arith.truncf %623 : vector<4x128xf32> to vector<4x128xbf16>
    %625 = arith.index_cast %c5_i32 : i32 to index
    %c0_134 = arith.constant 0 : index
    %c0_135 = arith.constant 0 : index
    %626 = vector.load %arg12[%625, %c0_134, %c0_135] : memref<8x4x128xbf16, #tpu.memory_space<vmem>>, vector<1x4x128xbf16>
    %627 = vector.shape_cast %626 : vector<1x4x128xbf16> to vector<4x128xbf16>
    %628 = vector.shape_cast %624 : vector<4x128xbf16> to vector<1x4x128xbf16>
    tpu.vector_store %arg12[%625, %c0_134, %c0_135], %628 {strides = array<i32>} : memref<8x4x128xbf16, #tpu.memory_space<vmem>>, vector<1x4x128xbf16>,
    %cst_136 = arith.constant 0.000000e+00 : f32
    %629 = vector.shape_cast %619 : vector<4x1xi1> to vector<4x1xi1>
    %630 = vector.broadcast %629 : vector<4x1xi1> to vector<4x128xi1>
    %631 = vector.broadcast %cst_136 : f32 to vector<4x128xf32>
    %632 = arith.select %630, %615, %631 : vector<4x128xi1>, vector<4x128xf32>
    %633 = arith.truncf %632 : vector<4x128xf32> to vector<4x128xbf16>
    %634 = arith.index_cast %543 : i32 to index
    %c0_137 = arith.constant 0 : index
    %c0_138 = arith.constant 0 : index
    %635 = vector.load %arg13[%634, %c0_137, %c0_138] : memref<8x4x128xbf16, #tpu.memory_space<vmem>>, vector<1x4x128xbf16>
    %636 = vector.shape_cast %635 : vector<1x4x128xbf16> to vector<4x128xbf16>
    %637 = vector.shape_cast %633 : vector<4x128xbf16> to vector<1x4x128xbf16>
    tpu.vector_store %arg13[%634, %c0_137, %c0_138], %637 {strides = array<i32>} : memref<8x4x128xbf16, #tpu.memory_space<vmem>>, vector<1x4x128xbf16>,
    %638 = vector.shape_cast %617 : vector<4x1xi1> to vector<4x1xi1>
    %639 = vector.broadcast %638 : vector<4x1xi1> to vector<4x128xi1>
    %640 = arith.select %639, %582, %548 : vector<4x128xi1>, vector<4x128xf32>
    %641 = vector.shape_cast %619 : vector<4x1xi1> to vector<4x1xi1>
    %642 = vector.broadcast %641 : vector<4x1xi1> to vector<4x128xi1>
    %643 = arith.select %642, %615, %549 : vector<4x128xi1>, vector<4x128xf32>
    %644 = tpu.concatenate %640, %643 in 1 : vector<4x128xf32>, vector<4x128xf32> -> vector<4x256xf32>
    %c6_i32 = arith.constant 6 : i32
    %c7_i32_139 = arith.constant 7 : i32
    %645 = arith.subi %c7_i32_139, %c6_i32 : i32
    %646 = arith.truncf %644 : vector<4x256xf32> to vector<4x256xbf16>
    %cst_140 = arith.constant dense<0.000000e+00> : vector<4x768xf32>
    %647 = tpu.matmul %646, %29, %cst_140 {dimension_numbers = #tpu.dot_dimension_numbers<[1], [0], [0], [1], [0, 0, 1, 1], [], []>} : vector<4x256xbf16>, vector<256x768xbf16>, vector<4x768xf32> -> vector<4x768xf32>
    %648 = vector.broadcast %30 : vector<1x768xf32> to vector<4x768xf32>
    %649 = arith.addf %647, %648 : vector<4x768xf32>
    %650 = vector.extract_strided_slice %644 {offsets = [0, 0], sizes = [4, 128], strides = [1, 1]} : vector<4x256xf32> to vector<4x128xf32>
    %651 = vector.extract_strided_slice %644 {offsets = [0, 128], sizes = [4, 128], strides = [1, 1]} : vector<4x256xf32> to vector<4x128xf32>
    %652 = arith.index_cast %c6_i32 : i32 to index
    %c0_141 = arith.constant 0 : index
    %c0_142 = arith.constant 0 : index
    %653 = vector.load %arg16[%652, %c0_141, %c0_142] : memref<8x4x384xbf16, #tpu.memory_space<vmem>>, vector<1x4x384xbf16>
    %654 = vector.shape_cast %653 : vector<1x4x384xbf16> to vector<4x384xbf16>
    %655 = vector.extract_strided_slice %649 {offsets = [0, 0], sizes = [4, 384], strides = [1, 1]} : vector<4x768xf32> to vector<4x384xf32>
    %656 = vector.extract_strided_slice %654 {offsets = [0, 0], sizes = [4, 128], strides = [1, 1]} : vector<4x384xbf16> to vector<4x128xbf16>
    %657 = vector.extract_strided_slice %655 {offsets = [0, 0], sizes = [4, 128], strides = [1, 1]} : vector<4x384xf32> to vector<4x128xf32>
    %658 = arith.extf %656 : vector<4x128xbf16> to vector<4x128xf32>
    %659 = arith.addf %658, %657 : vector<4x128xf32>
    %660 = arith.negf %659 : vector<4x128xf32>
    %661 = math.exp %660 : vector<4x128xf32>
    %cst_143 = arith.constant 1.000000e+00 : f32
    %662 = vector.broadcast %cst_143 : f32 to vector<4x128xf32>
    %663 = arith.addf %662, %661 : vector<4x128xf32>
    %664 = arith.divf %662, %663 : vector<4x128xf32>
    %665 = vector.extract_strided_slice %654 {offsets = [0, 128], sizes = [4, 128], strides = [1, 1]} : vector<4x384xbf16> to vector<4x128xbf16>
    %666 = vector.extract_strided_slice %655 {offsets = [0, 128], sizes = [4, 128], strides = [1, 1]} : vector<4x384xf32> to vector<4x128xf32>
    %667 = arith.extf %665 : vector<4x128xbf16> to vector<4x128xf32>
    %668 = arith.addf %667, %666 : vector<4x128xf32>
    %669 = arith.negf %668 : vector<4x128xf32>
    %670 = math.exp %669 : vector<4x128xf32>
    %cst_144 = arith.constant 1.000000e+00 : f32
    %671 = vector.broadcast %cst_144 : f32 to vector<4x128xf32>
    %672 = arith.addf %671, %670 : vector<4x128xf32>
    %673 = arith.divf %671, %672 : vector<4x128xf32>
    %674 = vector.extract_strided_slice %654 {offsets = [0, 256], sizes = [4, 128], strides = [1, 1]} : vector<4x384xbf16> to vector<4x128xbf16>
    %675 = vector.extract_strided_slice %655 {offsets = [0, 256], sizes = [4, 128], strides = [1, 1]} : vector<4x384xf32> to vector<4x128xf32>
    %676 = arith.mulf %664, %675 : vector<4x128xf32>
    %677 = arith.extf %674 : vector<4x128xbf16> to vector<4x128xf32>
    %678 = arith.addf %677, %676 : vector<4x128xf32>
    %679 = math.tanh %678 : vector<4x128xf32>
    %cst_145 = arith.constant 1.000000e+00 : f32
    %680 = vector.broadcast %cst_145 : f32 to vector<4x128xf32>
    %681 = arith.subf %680, %673 : vector<4x128xf32>
    %682 = arith.mulf %681, %679 : vector<4x128xf32>
    %683 = arith.mulf %673, %650 : vector<4x128xf32>
    %684 = arith.addf %682, %683 : vector<4x128xf32>
    %685 = arith.index_cast %645 : i32 to index
    %c0_146 = arith.constant 0 : index
    %c0_147 = arith.constant 0 : index
    %686 = vector.load %arg17[%685, %c0_146, %c0_147] : memref<8x4x384xbf16, #tpu.memory_space<vmem>>, vector<1x4x384xbf16>
    %687 = vector.shape_cast %686 : vector<1x4x384xbf16> to vector<4x384xbf16>
    %688 = vector.extract_strided_slice %649 {offsets = [0, 384], sizes = [4, 384], strides = [1, 1]} : vector<4x768xf32> to vector<4x384xf32>
    %689 = vector.extract_strided_slice %687 {offsets = [0, 0], sizes = [4, 128], strides = [1, 1]} : vector<4x384xbf16> to vector<4x128xbf16>
    %690 = vector.extract_strided_slice %688 {offsets = [0, 0], sizes = [4, 128], strides = [1, 1]} : vector<4x384xf32> to vector<4x128xf32>
    %691 = arith.extf %689 : vector<4x128xbf16> to vector<4x128xf32>
    %692 = arith.addf %691, %690 : vector<4x128xf32>
    %693 = arith.negf %692 : vector<4x128xf32>
    %694 = math.exp %693 : vector<4x128xf32>
    %cst_148 = arith.constant 1.000000e+00 : f32
    %695 = vector.broadcast %cst_148 : f32 to vector<4x128xf32>
    %696 = arith.addf %695, %694 : vector<4x128xf32>
    %697 = arith.divf %695, %696 : vector<4x128xf32>
    %698 = vector.extract_strided_slice %687 {offsets = [0, 128], sizes = [4, 128], strides = [1, 1]} : vector<4x384xbf16> to vector<4x128xbf16>
    %699 = vector.extract_strided_slice %688 {offsets = [0, 128], sizes = [4, 128], strides = [1, 1]} : vector<4x384xf32> to vector<4x128xf32>
    %700 = arith.extf %698 : vector<4x128xbf16> to vector<4x128xf32>
    %701 = arith.addf %700, %699 : vector<4x128xf32>
    %702 = arith.negf %701 : vector<4x128xf32>
    %703 = math.exp %702 : vector<4x128xf32>
    %cst_149 = arith.constant 1.000000e+00 : f32
    %704 = vector.broadcast %cst_149 : f32 to vector<4x128xf32>
    %705 = arith.addf %704, %703 : vector<4x128xf32>
    %706 = arith.divf %704, %705 : vector<4x128xf32>
    %707 = vector.extract_strided_slice %687 {offsets = [0, 256], sizes = [4, 128], strides = [1, 1]} : vector<4x384xbf16> to vector<4x128xbf16>
    %708 = vector.extract_strided_slice %688 {offsets = [0, 256], sizes = [4, 128], strides = [1, 1]} : vector<4x384xf32> to vector<4x128xf32>
    %709 = arith.mulf %697, %708 : vector<4x128xf32>
    %710 = arith.extf %707 : vector<4x128xbf16> to vector<4x128xf32>
    %711 = arith.addf %710, %709 : vector<4x128xf32>
    %712 = math.tanh %711 : vector<4x128xf32>
    %cst_150 = arith.constant 1.000000e+00 : f32
    %713 = vector.broadcast %cst_150 : f32 to vector<4x128xf32>
    %714 = arith.subf %713, %706 : vector<4x128xf32>
    %715 = arith.mulf %714, %712 : vector<4x128xf32>
    %716 = arith.mulf %706, %651 : vector<4x128xf32>
    %717 = arith.addf %715, %716 : vector<4x128xf32>
    %718 = vector.broadcast %c6_i32 : i32 to vector<4x1xi32>
    %719 = arith.cmpi slt, %718, %31 : vector<4x1xi32>
    %720 = vector.broadcast %645 : i32 to vector<4x1xi32>
    %721 = arith.cmpi slt, %720, %31 : vector<4x1xi32>
    %cst_151 = arith.constant 0.000000e+00 : f32
    %722 = vector.shape_cast %719 : vector<4x1xi1> to vector<4x1xi1>
    %723 = vector.broadcast %722 : vector<4x1xi1> to vector<4x128xi1>
    %724 = vector.broadcast %cst_151 : f32 to vector<4x128xf32>
    %725 = arith.select %723, %684, %724 : vector<4x128xi1>, vector<4x128xf32>
    %726 = arith.truncf %725 : vector<4x128xf32> to vector<4x128xbf16>
    %727 = arith.index_cast %c6_i32 : i32 to index
    %c0_152 = arith.constant 0 : index
    %c0_153 = arith.constant 0 : index
    %728 = vector.load %arg12[%727, %c0_152, %c0_153] : memref<8x4x128xbf16, #tpu.memory_space<vmem>>, vector<1x4x128xbf16>
    %729 = vector.shape_cast %728 : vector<1x4x128xbf16> to vector<4x128xbf16>
    %730 = vector.shape_cast %726 : vector<4x128xbf16> to vector<1x4x128xbf16>
    tpu.vector_store %arg12[%727, %c0_152, %c0_153], %730 {strides = array<i32>} : memref<8x4x128xbf16, #tpu.memory_space<vmem>>, vector<1x4x128xbf16>,
    %cst_154 = arith.constant 0.000000e+00 : f32
    %731 = vector.shape_cast %721 : vector<4x1xi1> to vector<4x1xi1>
    %732 = vector.broadcast %731 : vector<4x1xi1> to vector<4x128xi1>
    %733 = vector.broadcast %cst_154 : f32 to vector<4x128xf32>
    %734 = arith.select %732, %717, %733 : vector<4x128xi1>, vector<4x128xf32>
    %735 = arith.truncf %734 : vector<4x128xf32> to vector<4x128xbf16>
    %736 = arith.index_cast %645 : i32 to index
    %c0_155 = arith.constant 0 : index
    %c0_156 = arith.constant 0 : index
    %737 = vector.load %arg13[%736, %c0_155, %c0_156] : memref<8x4x128xbf16, #tpu.memory_space<vmem>>, vector<1x4x128xbf16>
    %738 = vector.shape_cast %737 : vector<1x4x128xbf16> to vector<4x128xbf16>
    %739 = vector.shape_cast %735 : vector<4x128xbf16> to vector<1x4x128xbf16>
    tpu.vector_store %arg13[%736, %c0_155, %c0_156], %739 {strides = array<i32>} : memref<8x4x128xbf16, #tpu.memory_space<vmem>>, vector<1x4x128xbf16>,
    %740 = vector.shape_cast %719 : vector<4x1xi1> to vector<4x1xi1>
    %741 = vector.broadcast %740 : vector<4x1xi1> to vector<4x128xi1>
    %742 = arith.select %741, %684, %650 : vector<4x128xi1>, vector<4x128xf32>
    %743 = vector.shape_cast %721 : vector<4x1xi1> to vector<4x1xi1>
    %744 = vector.broadcast %743 : vector<4x1xi1> to vector<4x128xi1>
    %745 = arith.select %744, %717, %651 : vector<4x128xi1>, vector<4x128xf32>
    %746 = tpu.concatenate %742, %745 in 1 : vector<4x128xf32>, vector<4x128xf32> -> vector<4x256xf32>
    %c7_i32_157 = arith.constant 7 : i32
    %c7_i32_158 = arith.constant 7 : i32
    %747 = arith.subi %c7_i32_158, %c7_i32_157 : i32
    %748 = arith.truncf %746 : vector<4x256xf32> to vector<4x256xbf16>
    %cst_159 = arith.constant dense<0.000000e+00> : vector<4x768xf32>
    %749 = tpu.matmul %748, %29, %cst_159 {dimension_numbers = #tpu.dot_dimension_numbers<[1], [0], [0], [1], [0, 0, 1, 1], [], []>} : vector<4x256xbf16>, vector<256x768xbf16>, vector<4x768xf32> -> vector<4x768xf32>
    %750 = vector.broadcast %30 : vector<1x768xf32> to vector<4x768xf32>
    %751 = arith.addf %749, %750 : vector<4x768xf32>
    %752 = vector.extract_strided_slice %746 {offsets = [0, 0], sizes = [4, 128], strides = [1, 1]} : vector<4x256xf32> to vector<4x128xf32>
    %753 = vector.extract_strided_slice %746 {offsets = [0, 128], sizes = [4, 128], strides = [1, 1]} : vector<4x256xf32> to vector<4x128xf32>
    %754 = arith.index_cast %c7_i32_157 : i32 to index
    %c0_160 = arith.constant 0 : index
    %c0_161 = arith.constant 0 : index
    %755 = vector.load %arg16[%754, %c0_160, %c0_161] : memref<8x4x384xbf16, #tpu.memory_space<vmem>>, vector<1x4x384xbf16>
    %756 = vector.shape_cast %755 : vector<1x4x384xbf16> to vector<4x384xbf16>
    %757 = vector.extract_strided_slice %751 {offsets = [0, 0], sizes = [4, 384], strides = [1, 1]} : vector<4x768xf32> to vector<4x384xf32>
    %758 = vector.extract_strided_slice %756 {offsets = [0, 0], sizes = [4, 128], strides = [1, 1]} : vector<4x384xbf16> to vector<4x128xbf16>
    %759 = vector.extract_strided_slice %757 {offsets = [0, 0], sizes = [4, 128], strides = [1, 1]} : vector<4x384xf32> to vector<4x128xf32>
    %760 = arith.extf %758 : vector<4x128xbf16> to vector<4x128xf32>
    %761 = arith.addf %760, %759 : vector<4x128xf32>
    %762 = arith.negf %761 : vector<4x128xf32>
    %763 = math.exp %762 : vector<4x128xf32>
    %cst_162 = arith.constant 1.000000e+00 : f32
    %764 = vector.broadcast %cst_162 : f32 to vector<4x128xf32>
    %765 = arith.addf %764, %763 : vector<4x128xf32>
    %766 = arith.divf %764, %765 : vector<4x128xf32>
    %767 = vector.extract_strided_slice %756 {offsets = [0, 128], sizes = [4, 128], strides = [1, 1]} : vector<4x384xbf16> to vector<4x128xbf16>
    %768 = vector.extract_strided_slice %757 {offsets = [0, 128], sizes = [4, 128], strides = [1, 1]} : vector<4x384xf32> to vector<4x128xf32>
    %769 = arith.extf %767 : vector<4x128xbf16> to vector<4x128xf32>
    %770 = arith.addf %769, %768 : vector<4x128xf32>
    %771 = arith.negf %770 : vector<4x128xf32>
    %772 = math.exp %771 : vector<4x128xf32>
    %cst_163 = arith.constant 1.000000e+00 : f32
    %773 = vector.broadcast %cst_163 : f32 to vector<4x128xf32>
    %774 = arith.addf %773, %772 : vector<4x128xf32>
    %775 = arith.divf %773, %774 : vector<4x128xf32>
    %776 = vector.extract_strided_slice %756 {offsets = [0, 256], sizes = [4, 128], strides = [1, 1]} : vector<4x384xbf16> to vector<4x128xbf16>
    %777 = vector.extract_strided_slice %757 {offsets = [0, 256], sizes = [4, 128], strides = [1, 1]} : vector<4x384xf32> to vector<4x128xf32>
    %778 = arith.mulf %766, %777 : vector<4x128xf32>
    %779 = arith.extf %776 : vector<4x128xbf16> to vector<4x128xf32>
    %780 = arith.addf %779, %778 : vector<4x128xf32>
    %781 = math.tanh %780 : vector<4x128xf32>
    %cst_164 = arith.constant 1.000000e+00 : f32
    %782 = vector.broadcast %cst_164 : f32 to vector<4x128xf32>
    %783 = arith.subf %782, %775 : vector<4x128xf32>
    %784 = arith.mulf %783, %781 : vector<4x128xf32>
    %785 = arith.mulf %775, %752 : vector<4x128xf32>
    %786 = arith.addf %784, %785 : vector<4x128xf32>
    %787 = arith.index_cast %747 : i32 to index
    %c0_165 = arith.constant 0 : index
    %c0_166 = arith.constant 0 : index
    %788 = vector.load %arg17[%787, %c0_165, %c0_166] : memref<8x4x384xbf16, #tpu.memory_space<vmem>>, vector<1x4x384xbf16>
    %789 = vector.shape_cast %788 : vector<1x4x384xbf16> to vector<4x384xbf16>
    %790 = vector.extract_strided_slice %751 {offsets = [0, 384], sizes = [4, 384], strides = [1, 1]} : vector<4x768xf32> to vector<4x384xf32>
    %791 = vector.extract_strided_slice %789 {offsets = [0, 0], sizes = [4, 128], strides = [1, 1]} : vector<4x384xbf16> to vector<4x128xbf16>
    %792 = vector.extract_strided_slice %790 {offsets = [0, 0], sizes = [4, 128], strides = [1, 1]} : vector<4x384xf32> to vector<4x128xf32>
    %793 = arith.extf %791 : vector<4x128xbf16> to vector<4x128xf32>
    %794 = arith.addf %793, %792 : vector<4x128xf32>
    %795 = arith.negf %794 : vector<4x128xf32>
    %796 = math.exp %795 : vector<4x128xf32>
    %cst_167 = arith.constant 1.000000e+00 : f32
    %797 = vector.broadcast %cst_167 : f32 to vector<4x128xf32>
    %798 = arith.addf %797, %796 : vector<4x128xf32>
    %799 = arith.divf %797, %798 : vector<4x128xf32>
    %800 = vector.extract_strided_slice %789 {offsets = [0, 128], sizes = [4, 128], strides = [1, 1]} : vector<4x384xbf16> to vector<4x128xbf16>
    %801 = vector.extract_strided_slice %790 {offsets = [0, 128], sizes = [4, 128], strides = [1, 1]} : vector<4x384xf32> to vector<4x128xf32>
    %802 = arith.extf %800 : vector<4x128xbf16> to vector<4x128xf32>
    %803 = arith.addf %802, %801 : vector<4x128xf32>
    %804 = arith.negf %803 : vector<4x128xf32>
    %805 = math.exp %804 : vector<4x128xf32>
    %cst_168 = arith.constant 1.000000e+00 : f32
    %806 = vector.broadcast %cst_168 : f32 to vector<4x128xf32>
    %807 = arith.addf %806, %805 : vector<4x128xf32>
    %808 = arith.divf %806, %807 : vector<4x128xf32>
    %809 = vector.extract_strided_slice %789 {offsets = [0, 256], sizes = [4, 128], strides = [1, 1]} : vector<4x384xbf16> to vector<4x128xbf16>
    %810 = vector.extract_strided_slice %790 {offsets = [0, 256], sizes = [4, 128], strides = [1, 1]} : vector<4x384xf32> to vector<4x128xf32>
    %811 = arith.mulf %799, %810 : vector<4x128xf32>
    %812 = arith.extf %809 : vector<4x128xbf16> to vector<4x128xf32>
    %813 = arith.addf %812, %811 : vector<4x128xf32>
    %814 = math.tanh %813 : vector<4x128xf32>
    %cst_169 = arith.constant 1.000000e+00 : f32
    %815 = vector.broadcast %cst_169 : f32 to vector<4x128xf32>
    %816 = arith.subf %815, %808 : vector<4x128xf32>
    %817 = arith.mulf %816, %814 : vector<4x128xf32>
    %818 = arith.mulf %808, %753 : vector<4x128xf32>
    %819 = arith.addf %817, %818 : vector<4x128xf32>
    %820 = vector.broadcast %c7_i32_157 : i32 to vector<4x1xi32>
    %821 = arith.cmpi slt, %820, %31 : vector<4x1xi32>
    %822 = vector.broadcast %747 : i32 to vector<4x1xi32>
    %823 = arith.cmpi slt, %822, %31 : vector<4x1xi32>
    %cst_170 = arith.constant 0.000000e+00 : f32
    %824 = vector.shape_cast %821 : vector<4x1xi1> to vector<4x1xi1>
    %825 = vector.broadcast %824 : vector<4x1xi1> to vector<4x128xi1>
    %826 = vector.broadcast %cst_170 : f32 to vector<4x128xf32>
    %827 = arith.select %825, %786, %826 : vector<4x128xi1>, vector<4x128xf32>
    %828 = arith.truncf %827 : vector<4x128xf32> to vector<4x128xbf16>
    %829 = arith.index_cast %c7_i32_157 : i32 to index
    %c0_171 = arith.constant 0 : index
    %c0_172 = arith.constant 0 : index
    %830 = vector.load %arg12[%829, %c0_171, %c0_172] : memref<8x4x128xbf16, #tpu.memory_space<vmem>>, vector<1x4x128xbf16>
    %831 = vector.shape_cast %830 : vector<1x4x128xbf16> to vector<4x128xbf16>
    %832 = vector.shape_cast %828 : vector<4x128xbf16> to vector<1x4x128xbf16>
    tpu.vector_store %arg12[%829, %c0_171, %c0_172], %832 {strides = array<i32>} : memref<8x4x128xbf16, #tpu.memory_space<vmem>>, vector<1x4x128xbf16>,
    %cst_173 = arith.constant 0.000000e+00 : f32
    %833 = vector.shape_cast %823 : vector<4x1xi1> to vector<4x1xi1>
    %834 = vector.broadcast %833 : vector<4x1xi1> to vector<4x128xi1>
    %835 = vector.broadcast %cst_173 : f32 to vector<4x128xf32>
    %836 = arith.select %834, %819, %835 : vector<4x128xi1>, vector<4x128xf32>
    %837 = arith.truncf %836 : vector<4x128xf32> to vector<4x128xbf16>
    %838 = arith.index_cast %747 : i32 to index
    %c0_174 = arith.constant 0 : index
    %c0_175 = arith.constant 0 : index
    %839 = vector.load %arg13[%838, %c0_174, %c0_175] : memref<8x4x128xbf16, #tpu.memory_space<vmem>>, vector<1x4x128xbf16>
    %840 = vector.shape_cast %839 : vector<1x4x128xbf16> to vector<4x128xbf16>
    %841 = vector.shape_cast %837 : vector<4x128xbf16> to vector<1x4x128xbf16>
    tpu.vector_store %arg13[%838, %c0_174, %c0_175], %841 {strides = array<i32>} : memref<8x4x128xbf16, #tpu.memory_space<vmem>>, vector<1x4x128xbf16>,
    %842 = vector.shape_cast %821 : vector<4x1xi1> to vector<4x1xi1>
    %843 = vector.broadcast %842 : vector<4x1xi1> to vector<4x128xi1>
    %844 = arith.select %843, %786, %752 : vector<4x128xi1>, vector<4x128xf32>
    %845 = vector.shape_cast %823 : vector<4x1xi1> to vector<4x1xi1>
    %846 = vector.broadcast %845 : vector<4x1xi1> to vector<4x128xi1>
    %847 = arith.select %846, %819, %753 : vector<4x128xi1>, vector<4x128xf32>
    %848 = tpu.concatenate %844, %847 in 1 : vector<4x128xf32>, vector<4x128xf32> -> vector<4x256xf32>
    %c8_i32 = arith.constant 8 : i32
    %849 = vector.extract_strided_slice %848 {offsets = [0, 0], sizes = [4, 128], strides = [1, 1]} : vector<4x256xf32> to vector<4x128xf32>
    %c0_176 = arith.constant 0 : index
    %c0_177 = arith.constant 0 : index
    %850 = vector.load %arg14[%c0_176, %c0_177] : memref<4x128xf32, #tpu.memory_space<vmem>>, vector<4x128xf32>
    tpu.vector_store %arg14[%c0_176, %c0_177], %849 {strides = array<i32>} : memref<4x128xf32, #tpu.memory_space<vmem>>, vector<4x128xf32>,
    %851 = vector.extract_strided_slice %848 {offsets = [0, 128], sizes = [4, 128], strides = [1, 1]} : vector<4x256xf32> to vector<4x128xf32>
    %c0_178 = arith.constant 0 : index
    %c0_179 = arith.constant 0 : index
    %852 = vector.load %arg15[%c0_178, %c0_179] : memref<4x128xf32, #tpu.memory_space<vmem>>, vector<4x128xf32>
    tpu.vector_store %arg15[%c0_178, %c0_179], %851 {strides = array<i32>} : memref<4x128xf32, #tpu.memory_space<vmem>>, vector<4x128xf32>,
    return
  }
  func.func @transform_0(%arg0: i32) -> (i32, i32, i32) {
    %c0_i32 = arith.constant 0 : i32
    %c0_i32_0 = arith.constant 0 : i32
    %c0_i32_1 = arith.constant 0 : i32
    return %c0_i32, %arg0, %c0_i32_0 : i32, i32, i32
  }
  func.func @transform_1(%arg0: i32) -> (i32, i32) {
    %c0_i32 = arith.constant 0 : i32
    %c0_i32_0 = arith.constant 0 : i32
    return %arg0, %c0_i32 : i32, i32
  }
  func.func @transform_2(%arg0: i32) -> (i32, i32) {
    %c0_i32 = arith.constant 0 : i32
    %c0_i32_0 = arith.constant 0 : i32
    return %arg0, %c0_i32 : i32, i32
  }
  func.func @transform_3(%arg0: i32) -> (i32, i32) {
    %c0_i32 = arith.constant 0 : i32
    %c0_i32_0 = arith.constant 0 : i32
    %c0_i32_1 = arith.constant 0 : i32
    return %c0_i32, %c0_i32_0 : i32, i32
  }
  func.func @transform_4(%arg0: i32) -> (i32, i32) {
    %c0_i32 = arith.constant 0 : i32
    %c0_i32_0 = arith.constant 0 : i32
    %c0_i32_1 = arith.constant 0 : i32
    return %c0_i32, %c0_i32_0 : i32, i32
  }
  func.func @transform_5(%arg0: i32) -> (i32, i32) {
    %c0_i32 = arith.constant 0 : i32
    %c0_i32_0 = arith.constant 0 : i32
    %c0_i32_1 = arith.constant 0 : i32
    return %c0_i32, %c0_i32_0 : i32, i32
  }
  func.func @transform_6(%arg0: i32) -> (i32, i32) {
    %c0_i32 = arith.constant 0 : i32
    %c0_i32_0 = arith.constant 0 : i32
    %c0_i32_1 = arith.constant 0 : i32
    return %c0_i32, %c0_i32_0 : i32, i32
  }
  func.func @transform_7(%arg0: i32) -> (i32, i32) {
    %c0_i32 = arith.constant 0 : i32
    %c0_i32_0 = arith.constant 0 : i32
    %c0_i32_1 = arith.constant 0 : i32
    return %c0_i32, %c0_i32_0 : i32, i32
  }
  func.func @transform_8(%arg0: i32) -> (i32, i32) {
    %c0_i32 = arith.constant 0 : i32
    %c0_i32_0 = arith.constant 0 : i32
    %c0_i32_1 = arith.constant 0 : i32
    return %c0_i32, %c0_i32_0 : i32, i32
  }
  func.func @transform_9(%arg0: i32) -> (i32, i32) {
    %c0_i32 = arith.constant 0 : i32
    %c0_i32_0 = arith.constant 0 : i32
    %c0_i32_1 = arith.constant 0 : i32
    return %c0_i32, %c0_i32_0 : i32, i32
  }
  func.func @transform_10(%arg0: i32) -> (i32, i32) {
    %c0_i32 = arith.constant 0 : i32
    %c0_i32_0 = arith.constant 0 : i32
    %c0_i32_1 = arith.constant 0 : i32
    return %c0_i32, %c0_i32_0 : i32, i32
  }
  func.func @transform_11(%arg0: i32) -> (i32, i32, i32) {
    %c0_i32 = arith.constant 0 : i32
    %c0_i32_0 = arith.constant 0 : i32
    %c0_i32_1 = arith.constant 0 : i32
    return %c0_i32, %arg0, %c0_i32_0 : i32, i32, i32
  }
  func.func @transform_12(%arg0: i32) -> (i32, i32, i32) {
    %c0_i32 = arith.constant 0 : i32
    %c0_i32_0 = arith.constant 0 : i32
    %c0_i32_1 = arith.constant 0 : i32
    return %c0_i32, %arg0, %c0_i32_0 : i32, i32, i32
  }
  func.func @transform_13(%arg0: i32) -> (i32, i32) {
    %c0_i32 = arith.constant 0 : i32
    %c0_i32_0 = arith.constant 0 : i32
    return %arg0, %c0_i32 : i32, i32
  }
  func.func @transform_14(%arg0: i32) -> (i32, i32) {
    %c0_i32 = arith.constant 0 : i32
    %c0_i32_0 = arith.constant 0 : i32
    return %arg0, %c0_i32 : i32, i32
  }
}

</mosaic_0001>

<bundles_post_ra>
// kernel: tpu_custom_call.1
= control target key start
LH: loop header
LB: loop body
LE: loop exit
PB: predicated region body
PF: predicated region fallthrough
CT: control target
= control target key end

     0   :  { %20 = vsyncpa [#allocation5], 0  ;;  %s6725_s0 = inlined_call_operand.hbm [shape: bf16[8,4,32], index: 0, kind: input, shape index: {}]   ;;  %s6726_s1 = inlined_call_operand.hbm [shape: bf16[4,32], index: 1, kind: input, shape index: {}]   ;;  %s6727_s2 = inlined_call_operand.vmem [shape: s32[4,1], index: 2, kind: input, shape index: {}]   ;;  %s6728_s3 = inlined_call_operand.hbm [shape: bf16[32,384], index: 3, kind: input, shape index: {}]   ;;  %s6729_s4 = inlined_call_operand.hbm [shape: bf16[32,384], index: 4, kind: input, shape index: {}]   ;;  %s6730_s5 = inlined_call_operand.vmem [shape: f32[1,384], index: 5, kind: input, shape index: {}]   ;;  %s6731_s6 = inlined_call_operand.hbm [shape: bf16[32,384], index: 6, kind: input, shape index: {}]   ;;  %s6732_s7 = inlined_call_operand.hbm [shape: bf16[32,384], index: 7, kind: input, shape index: {}]   ;;  %s6733_s8 = inlined_call_operand.vmem [shape: f32[1,384], index: 8, kind: input, shape index: {}]   ;;  %s6734_s9 = inlined_call_operand.hbm [shape: bf16[256,768], index: 9, kind: input, shape index: {}]   ;;  %s6735_s10 = inlined_call_operand.vmem [shape: f32[1,768], index: 10, kind: input, shape index: {}]   ;;  %s6736_s11 = inlined_call_operand.hbm [shape: bf16[8,4,128], index: 11, kind: output, shape index: {0}]   ;;  %s6737_s12 = inlined_call_operand.hbm [shape: bf16[8,4,128], index: 12, kind: output, shape index: {1}]   ;;  %s6738_s13 = inlined_call_operand.hbm [shape: f32[4,128], index: 13, kind: output, shape index: {2}]   ;;  %s6739_s14 = inlined_call_operand.hbm [shape: f32[4,128], index: 14, kind: output, shape index: {3}]  }
   0x1   :  { %21 = vsyncpa [#allocation8], 0 }
   0x2   :  { %22 = vsyncpa [#allocation11], 0 }
   0x3   :  { %23 = vsyncpa [#allocation14], 0 }
   0x4   :  { %24 = vsyncpa [#allocation6], 0 }
   0x5   :  { %25 = vsyncpa [#allocation18], 0 }
   0x6   :  { %26 = vsyncpa [#allocation21], 0  ;;  %s4643_s29 = smov [#allocation7]   ;;  %s4387_s17 = scalar_lea.hbm %s6726_s1, 32 }
   0x7   :  { %s45_s30 = sshll.u32 %s4643_s29, 4  ;;  %p4388_p0 = scmp.ne.s32.totalorder %s6726_s1, %s4387_s17  ;;  %s46_s30 = int_to_ptr.vmem [resolvable:$true] %s45_s30 }
   0x8   :  { %p4391_p1 = scmp.lt.u32.totalorder %s4387_s17, %s6726_s1 }
   0xa   :  { %p4393_p2 = pnand %p4391_p1, %p4388_p0 }
   0xc   :  { %4396 = shalt.err (!%p4393_p2)
}
   0xd   :  { %s4397_s22 = scalar_lea.vmem %s46_s30, 32  ;;  %p4402_p4 = scmp.lt.s32.totalorder %s46_s30, %s46_s30 }
   0xe   :  { %p4398_p3 = scmp.ne.s32.totalorder %s46_s30, %s4397_s22  ;;  %p4403_p5 = scmp.lt.s32.totalorder %s4397_s22, %s4397_s22 }
  0x10   :  { %p4404_p6 = por %p4403_p5, %p4402_p4 }
  0x12   :  { %p4405_p7 = pnand %p4404_p6, %p4398_p3 }
  0x14   :  { %4408 = shalt.err (!%p4405_p7)
}
  0x15   :  { %48 = dma.hbm_to_vmem [thread:$0]  %s6726_s1, 32, %s46_s30, [#allocation8]  }
  0x16   :  { %s4644_s25 = smov [#allocation10]   ;;  %s4645_s27 = smov [#allocation13]  }
  0x17   :  { %s68_s26 = sshll.u32 %s4644_s25, 4  ;;  %s94_s28 = sshll.u32 %s4645_s27, 4  ;;  %s69_s26 = int_to_ptr.vmem [resolvable:$true] %s68_s26  ;;  %s95_s28 = int_to_ptr.vmem [resolvable:$true] %s94_s28 }
  0x18   :  { %s4409_s16 = scalar_lea.hbm %s6729_s4, 768 }
  0x19   :  { %p4410_p8 = scmp.ne.s32.totalorder %s6729_s4, %s4409_s16  ;;  %p4413_p9 = scmp.lt.u32.totalorder %s4409_s16, %s6729_s4 }
  0x1b   :  { %p4415_p10 = pnand %p4413_p9, %p4410_p8 }
  0x1d   :  { %4418 = shalt.err (!%p4415_p10)
}
  0x1e   :  { %s4419_s1 = scalar_lea.vmem %s69_s26, 768  ;;  %p4424_p12 = scmp.lt.s32.totalorder %s69_s26, %s69_s26 }
  0x1f   :  { %p4420_p11 = scmp.ne.s32.totalorder %s69_s26, %s4419_s1  ;;  %p4425_p13 = scmp.lt.s32.totalorder %s4419_s1, %s4419_s1 }
  0x21   :  { %p4426_p0 = por %p4425_p13, %p4424_p12 }
  0x23   :  { %p4427_p1 = pnand %p4426_p0, %p4420_p11 }
  0x25   :  { %4430 = shalt.err (!%p4427_p1)
}
  0x26   :  { %s4646_s30 = smov 192   ;;  %s4647_s21 = smov 12  }
  0x27   :  { %74 = dma.hbm_to_vmem [thread:$0]  %s6729_s4, 768, %s69_s26, [#allocation11], %s4646_s30, %s4646_s30, %s4647_s21  }
  0x28   :  { %s4431_s27 = scalar_lea.hbm %s6732_s7, 768 }
  0x29   :  { %p4432_p2 = scmp.ne.s32.totalorder %s6732_s7, %s4431_s27  ;;  %p4435_p3 = scmp.lt.u32.totalorder %s4431_s27, %s6732_s7 }
  0x2b   :  { %p4437_p4 = pnand %p4435_p3, %p4432_p2 }
  0x2d   :  { %4440 = shalt.err (!%p4437_p4)
}
  0x2e   :  { %s4441_s18 = scalar_lea.vmem %s95_s28, 768  ;;  %p4446_p6 = scmp.lt.s32.totalorder %s95_s28, %s95_s28 }
  0x2f   :  { %p4442_p5 = scmp.ne.s32.totalorder %s95_s28, %s4441_s18  ;;  %p4447_p7 = scmp.lt.s32.totalorder %s4441_s18, %s4441_s18 }
  0x31   :  { %p4448_p8 = por %p4447_p7, %p4446_p6 }
  0x33   :  { %p4449_p9 = pnand %p4448_p8, %p4442_p5 }
  0x35   :  { %4452 = shalt.err (!%p4449_p9)
}
  0x36   :  { %100 = dma.hbm_to_vmem [thread:$0]  %s6732_s7, 768, %s95_s28, [#allocation14], %s4646_s30, %s4646_s30, %s4647_s21  }
  0x37   :  { %s4648_s19 = smov [#allocation4]   ;;  %s4453_s23 = scalar_lea.hbm %s6725_s0, 256 }
  0x38   :  { %s32_s20 = sshll.u32 %s4648_s19, 4  ;;  %p4454_p10 = scmp.ne.s32.totalorder %s6725_s0, %s4453_s23  ;;  %s33_s20 = int_to_ptr.vmem [resolvable:$true] %s32_s20 }
  0x39   :  { %p4457_p11 = scmp.lt.u32.totalorder %s4453_s23, %s6725_s0 }
  0x3b   :  { %p4459_p12 = pnand %p4457_p11, %p4454_p10 }
  0x3d   :  { %4462 = shalt.err (!%p4459_p12)
}
  0x3e   :  { %s4463_s15 = scalar_lea.vmem %s33_s20, 256  ;;  %p4468_p0 = scmp.lt.s32.totalorder %s33_s20, %s33_s20 }
  0x3f   :  { %p4464_p13 = scmp.ne.s32.totalorder %s33_s20, %s4463_s15  ;;  %p4469_p1 = scmp.lt.s32.totalorder %s4463_s15, %s4463_s15 }
  0x41   :  { %p4470_p2 = por %p4469_p1, %p4468_p0 }
  0x43   :  { %p4471_p3 = pnand %p4470_p2, %p4464_p13 }
  0x45   :  { %4474 = shalt.err (!%p4471_p3)
}
  0x46   :  { %s4649_s7 = smov 32   ;;  %s4650_s28 = smov 2  }
  0x47   :  { %38 = dma.hbm_to_vmem [thread:$0]  %s6725_s0, 256, %s33_s20, [#allocation5], %s4649_s7, %s4649_s7, %s4650_s28  }
  0x48   :  { %s4651_s18 = smov [#allocation9]   ;;  %s4652_s26 = smov [#allocation12]  }
  0x49   :  { %s56_s4 = sshll.u32 %s4651_s18, 4  ;;  %s82_s19 = sshll.u32 %s4652_s26, 4  ;;  %s57_s4 = int_to_ptr.vmem [resolvable:$true] %s56_s4  ;;  %s4796_s19 = int_to_ptr.vmem [resolvable:$true] %s82_s19 }
  0x4a   :  { %s4475_s23 = scalar_lea.hbm %s6728_s3, 768 }
  0x4b   :  { %p4476_p4 = scmp.ne.s32.totalorder %s6728_s3, %s4475_s23  ;;  %p4479_p5 = scmp.lt.u32.totalorder %s4475_s23, %s6728_s3 }
  0x4d   :  { %p4481_p6 = pnand %p4479_p5, %p4476_p4 }
  0x4f   :  { %4484 = shalt.err (!%p4481_p6)
}
  0x50   :  { %s4485_s0 = scalar_lea.vmem %s57_s4, 768  ;;  %p4490_p8 = scmp.lt.s32.totalorder %s57_s4, %s57_s4 }
  0x51   :  { %p4486_p7 = scmp.ne.s32.totalorder %s57_s4, %s4485_s0  ;;  %p4491_p9 = scmp.lt.s32.totalorder %s4485_s0, %s4485_s0 }
  0x53   :  { %p4492_p10 = por %p4491_p9, %p4490_p8 }
  0x55   :  { %p4493_p11 = pnand %p4492_p10, %p4486_p7 }
  0x57   :  { %4496 = shalt.err (!%p4493_p11)
}
  0x58   :  { %62 = dma.hbm_to_vmem [thread:$0]  %s6728_s3, 768, %s57_s4, [#allocation8], %s4646_s30, %s4646_s30, %s4647_s21  }
  0x59   :  { %s4497_s18 = scalar_lea.hbm %s6731_s6, 768 }
  0x5a   :  { %p4498_p12 = scmp.ne.s32.totalorder %s6731_s6, %s4497_s18  ;;  %p4501_p13 = scmp.lt.u32.totalorder %s4497_s18, %s6731_s6 }
  0x5c   :  { %p4503_p0 = pnand %p4501_p13, %p4498_p12 }
  0x5e   :  { %4506 = shalt.err (!%p4503_p0)
}
  0x5f   :  { %s4507_s24 = scalar_lea.vmem %s4796_s19, 768  ;;  %p4512_p2 = scmp.lt.s32.totalorder %s4796_s19, %s4796_s19 }
  0x60   :  { %p4508_p1 = scmp.ne.s32.totalorder %s4796_s19, %s4507_s24  ;;  %p4513_p3 = scmp.lt.s32.totalorder %s4507_s24, %s4507_s24 }
  0x62   :  { %p4514_p4 = por %p4513_p3, %p4512_p2 }
  0x64   :  { %p4515_p5 = pnand %p4514_p4, %p4508_p1 }
  0x66   :  { %4518 = shalt.err (!%p4515_p5)
}
  0x67   :  { %88 = dma.hbm_to_vmem [thread:$0]  %s6731_s6, 768, %s4796_s19, [#allocation11], %s4646_s30, %s4646_s30, %s4647_s21  }
  0x68   :  { %s4653_s25 = smov [#allocation15]   ;;  %s4519_s20 = scalar_lea.hbm %s6734_s9, 12288 }
  0x69   :  { %s108_s27 = sshll.u32 %s4653_s25, 4  ;;  %p4520_p6 = scmp.ne.s32.totalorder %s6734_s9, %s4519_s20  ;;  %s109_s27 = int_to_ptr.vmem [resolvable:$true] %s108_s27 }
  0x6a   :  { %p4523_p7 = scmp.lt.u32.totalorder %s4519_s20, %s6734_s9 }
  0x6c   :  { %p4525_p8 = pnand %p4523_p7, %p4520_p6 }
  0x6e   :  { %4528 = shalt.err (!%p4525_p8)
}
  0x6f   :  { %s4529_s26 = scalar_lea.vmem %s109_s27, 12288  ;;  %p4534_p10 = scmp.lt.s32.totalorder %s109_s27, %s109_s27 }
  0x70   :  { %p4530_p9 = scmp.ne.s32.totalorder %s109_s27, %s4529_s26  ;;  %p4535_p11 = scmp.lt.s32.totalorder %s4529_s26, %s4529_s26 }
  0x72   :  { %p4536_p12 = por %p4535_p11, %p4534_p10 }
  0x74   :  { %p4537_p13 = pnand %p4536_p12, %p4530_p9 }
  0x76   :  { %4540 = shalt.err (!%p4537_p13)
}
  0x77   :  { %s4654_s6 = smov 384   ;;  %s4655_s30 = smov 24  }
  0x78   :  { %114 = dma.hbm_to_vmem [thread:$0]  %s6734_s9, 12288, %s109_s27, [#allocation14], %s4654_s6, %s4654_s6, %s4655_s30  }
  0x79   :  { %4629 = dma.done.wait [#allocation5], 256  }
  0x7a   :  { %4630 = vsyncadd [#allocation5], 4294967040 }
  0x7b   :  { %4631 = dma.done.wait [#allocation8], 800  }
  0x7c   :  { %4632 = vsyncadd [#allocation8], 4294966496 }
  0x7d   :  { %4633 = dma.done.wait [#allocation11], 1536  }
  0x7e   :  { %4634 = vsyncadd [#allocation11], 4294965760 }
  0x7f   :  { %4635 = dma.done.wait [#allocation14], 13056  }
  0x80   :  { %4636 = vsyncadd [#allocation14], 4294954240  ;;  %v4656_v0 = vmov 0.0   ;;  %vm4657_vm0 = vmmov 0   ;;  %v6740_v1 = vmov 0   ;;  %v158_v3 = vlaneseq }
  0x81   :  { %3804 = vmatprep.subr.bf16.mxu1 %v4656_v0  ;;  %3808 = vmatprep.mubr.msk.bf16.mxu1 %vm4657_vm0, %v4656_v0  ;;  %v3859_v2 = vld [vmem:[#allocation10 + $0x4] ss:$12 sps:$4 sm:$0xff]   ;;  %v3861_v4 = vld [vmem:[#allocation10 + $0x8] ss:$12 sps:$4 sm:$0xff]   ;;  %v4659_v5 = vmov 1983009808  }
  0x82   :  { %241 = vmatprep.mubr.bf16.mxu0 %v6740_v1  ;;  %3857 = vset.pattern.permute.xlu0 %v6740_v1  ;;  %v309_v6 = vunpack.c.l.s4 %v4659_v5  ;;  %v3862_v7 = vld [vmem:[#allocation10] ss:$12 sps:$4 sm:$0xff]   ;;  %v3863_v8 = vld [vmem:[#allocation10 + $0x1c] ss:$12 sps:$4 sm:$0xff]   ;;  %v3866_v10 = vld [vmem:[#allocation10 + $0x18] ss:$12 sps:$4 sm:$0xff]  }
  0x83   :  { %3858 = vset.pattern.permute.xlu1 %v6740_v1  ;;  %209 = vmatprep.subr.bf16.mxu0 %v3859_v2  ;;  %v3865_v9 = vld [vmem:[#allocation10 + $0x20] ss:$12 sps:$4 sm:$0xff]   ;;  %v4852_v11 = vshrl.u32 %v158_v3, 7  ;;  %v3867_v13 = vld [vmem:[#allocation9 + $0x8] ss:$12 sps:$4 sm:$0xff]   ;;  %vm205_vm1 = vcmask 261120  }
  0x84   :  { %3805 = vmatpush3.bf16.msra.mxu1 %v3861_v4  ;;  %210 = vmatpush1.bf16.msra.mxu0 %v3862_v7  ;;  %v4854_v12 = vld [vmem:[#allocation7] sm:$0x3]  ;;  %v310_v14 = vunpack.c.0.s8 %v309_v6  ;;  %v3868_v15 = vld [vmem:[#allocation9] ss:$12 sps:$4 sm:$0xff]   ;;  %v3870_v16 = vld [vmem:[#allocation9 + $0x4] ss:$12 sps:$4 sm:$0xff]  }
  0x85   :  { %3806 = vmatprep.subr.bf16.mxu1 %v4656_v0  ;;  %6995 = vst [vmem:[#allocation29_spill] sm:$0xff] %v4852_v11  ;;  %211 = vmatprep.subr.bf16.mxu0 %v3863_v8  ;;  %v3871_v17 = vld [vmem:[#allocation9 + $0x20] ss:$12 sps:$4 sm:$0xff]   ;;  %v3874_v18 = vld [vmem:[#allocation9 + $0x1c] ss:$12 sps:$4 sm:$0xff]  }
  0x86   :  { %v139_v19 = vld [vmem:[#allocation4] sm:$0x3]  ;;  %v4857_v20 = vsub.s32 %v310_v14, %v4852_v11  ;;  %v3872_v21 = vld [vmem:[#allocation9 + $0x18] ss:$12 sps:$4 sm:$0xff]   ;;  %v140_v22 = vld [vmem:[#allocation4 + $0x2] sm:$0x3] }
  0x87   :  { %v141_v23 = vld [vmem:[#allocation4 + $0x4] sm:$0x3]  ;;  %v142_v24 = vld [vmem:[#allocation4 + $0x6] sm:$0x3]  ;;  %v306_v25 = vcombine.low %v139_v19, %v140_v22  ;;  %v143_v27 = vld [vmem:[#allocation4 + $0x8] sm:$0x3] }
  0x88   :  { %3807 = vmatpush3.bf16.msra.mxu1 %v3865_v9  ;;  %212 = vmatpush1.bf16.msra.mxu0 %v3866_v10  ;;  %6996 = vst [vmem:[#allocation30_spill] sm:$0xff] %v4857_v20  ;;  %v307_v26 = vcombine.low %v141_v23, %v142_v24  ;;  %v144_v28 = vld [vmem:[#allocation4 + $0xa] sm:$0x3]  ;;  %v145_v29 = vld [vmem:[#allocation4 + $0xc] sm:$0x3] }
  0x89   :  { %3812 = vmatprep.subr.bf16.mxu1 %v3867_v13  ;;  %378 = vmatprep.subr.bf16.mxu0 %v3870_v16  ;;  %v146_v30 = vld [vmem:[#allocation4 + $0xe] sm:$0x3]  ;;  %v323_v31 = vcombine.low %v143_v27, %v144_v28  ;;  %v314_v32 = vrot.slane %v306_v25, %v4857_v20  ;;  %v3877_v35 = vld [vmem:[#allocation13 + $0x4] ss:$12 sps:$4 sm:$0xff]   ;;  %v3880_v41 = vld [vmem:[#allocation13 + $0x1c] ss:$12 sps:$4 sm:$0xff]  }
  0x8a   :  { %v321_v33 = vrot.slane %v307_v26, %v4857_v20  ;;  %v324_v34 = vcombine.low %v145_v29, %v146_v30  ;;  %v3875_v39 = vld [vmem:[#allocation13] ss:$12 sps:$4 sm:$0xff]   ;;  %v3884_v42 = vld [vmem:[#allocation13 + $0x8] ss:$12 sps:$4 sm:$0xff]   ;;  %v3878_v43 = vld [vmem:[#allocation13 + $0x18] ss:$12 sps:$4 sm:$0xff]  }
  0x8b   :  { %3809 = vmatmul.mubr.msk.bf16.vlgmr.msra.gmra.mrb[0].mxu1 %vm205_vm1, %v4854_v12  ;;  %3598 = vmatmul.mubr.msk.bf16.vlgmr.msra.gmra.mrb[0].mxu0 %vm205_vm1, %v4854_v12  ;;  %v331_v36 = vrot.slane %v323_v31, %v4857_v20  ;;  %v3883_v44 = vld [vmem:[#allocation12 + $0x4] ss:$12 sps:$4 sm:$0xff]   ;;  %v3881_v46 = vld [vmem:[#allocation12] ss:$12 sps:$4 sm:$0xff]   ;;  %v3887_v47 = vld [vmem:[#allocation12 + $0x1c] ss:$12 sps:$4 sm:$0xff]  }
  0x8c   :  { %3813 = vmatpush3.bf16.msra.mxu1 %v3867_v13  ;;  %379 = vmatpush1.bf16.msra.mxu0 %v3868_v15  ;;  %v322_v37 = vcombine.low %v314_v32, %v321_v33  ;;  %v338_v38 = vrot.slane %v324_v34, %v4857_v20  ;;  %v3888_v45 = vld [vmem:[#allocation13 + $0x20] ss:$12 sps:$4 sm:$0xff]   ;;  %v3889_v48 = vld [vmem:[#allocation12 + $0x8] ss:$12 sps:$4 sm:$0xff]   ;;  %v3885_v49 = vld [vmem:[#allocation12 + $0x18] ss:$12 sps:$4 sm:$0xff]  }
  0x8d   :  { %3814 = vmatprep.subr.bf16.mxu1 %v3871_v17  ;;  %380 = vmatprep.subr.bf16.mxu0 %v3874_v18  ;;  %v4881_v50 = vld [vmem:[#allocation15 + $0x4] ss:$24 sps:$4 sm:$0xff]   ;;  %v4883_v51 = vld [vmem:[#allocation15] ss:$24 sps:$4 sm:$0xff]   ;;  %v4886_v53 = vld [vmem:[#allocation15 + $0x34] ss:$24 sps:$4 sm:$0xff]  }
  0x8e   :  { %410 = vmatprep.mubr.bf16.mxu0 %v6740_v1  ;;  %3816 = vmatprep.mubr.msk.bf16.mxu1 %vm205_vm1, %v322_v37  ;;  %v339_v40 = vcombine.low %v331_v36, %v338_v38  ;;  %v3893_v52 = vld [vmem:[#allocation12 + $0x20] ss:$12 sps:$4 sm:$0xff]   ;;  %v4892_v54 = vld [vmem:[#allocation15 + $0x30] ss:$24 sps:$4 sm:$0xff]   ;;  %v4895_v55 = vld [vmem:[#allocation15 + $0x64] ss:$24 sps:$4 sm:$0xff]  }
  0x8f   :  { %v4897_v56 = vld [vmem:[#allocation15 + $0xc] ss:$24 sps:$4 sm:$0xff]   ;;  %v4901_v57 = vld [vmem:[#allocation15 + $0x60] ss:$24 sps:$4 sm:$0xff]   ;;  %v4910_v60 = vld [vmem:[#allocation15 + $0x3c] ss:$24 sps:$4 sm:$0xff]  }
  0x90   :  { %3815 = vmatpush3.bf16.msra.mxu1 %v3871_v17  ;;  %381 = vmatpush1.bf16.msra.mxu0 %v3872_v21  ;;  %v4903_v58 = vld [vmem:[#allocation15 + $0x8] ss:$24 sps:$4 sm:$0xff]   ;;  %v4906_v59 = vld [vmem:[#allocation15 + $0x94] ss:$24 sps:$4 sm:$0xff]   ;;  %v4918_v62 = vld [vmem:[#allocation15 + $0x38] ss:$24 sps:$4 sm:$0xff]  }
  0x91   :  { %809 = vmatprep.subr.bf16.mxu1 %v3877_v35  ;;  %3820 = vmatprep.subr.bf16.mxu0 %v4656_v0  ;;  %v4914_v61 = vld [vmem:[#allocation15 + $0x90] ss:$24 sps:$4 sm:$0xff]   ;;  %v4922_v63 = vld [vmem:[#allocation15 + $0xc4] ss:$24 sps:$4 sm:$0xff]   ;;  %v4928_v2 = vld [vmem:[#allocation15 + $0xc0] ss:$24 sps:$4 sm:$0xff]  }
  0x92   :  { %v4930_v3 = vld [vmem:[#allocation15 + $0x68] ss:$24 sps:$4 sm:$0xff]   ;;  %v4934_v4 = vld [vmem:[#allocation15 + $0xf4] ss:$24 sps:$4 sm:$0xff]   ;;  %v4944_v7 = vld [vmem:[#allocation15 + $0x98] ss:$24 sps:$4 sm:$0xff]  }
  0x93   :  { %3817 = vmatmul.mubr.msk.bf16.vlgmr.msra.gmra.mrb[4].mxu1 %vm205_vm1, %v339_v40  ;;  %3606 = vmatmul.mubr.msk.bf16.vlgmr.msra.gmra.mrb[4].mxu0 %vm205_vm1, %v322_v37  ;;  %v4938_v5 = vld [vmem:[#allocation15 + $0x9c] ss:$24 sps:$4 sm:$0xff]   ;;  %v4940_v6 = vld [vmem:[#allocation15 + $0xf0] ss:$24 sps:$4 sm:$0xff]   ;;  %v4950_v9 = vld [vmem:[#allocation15 + $0xcc] ss:$24 sps:$4 sm:$0xff]  }
  0x94   :  { %810 = vmatpush1.bf16.msra.mxu1 %v3875_v39  ;;  %841 = vmatprep.mubr.bf16.mxu1 %v6740_v1  ;;  %v4948_v8 = vld [vmem:[#allocation15 + $0x124] ss:$24 sps:$4 sm:$0xff]   ;;  %v4952_v10 = vld [vmem:[#allocation15 + $0x120] ss:$24 sps:$4 sm:$0xff]   ;;  %v4958_v13 = vld [vmem:[#allocation15 + $0x154] ss:$24 sps:$4 sm:$0xff]  }
  0x95   :  { %811 = vmatprep.subr.bf16.mxu1 %v3880_v41  ;;  %420 = vmatprep.mubr.bf16.mxu0 %v6740_v1  ;;  %v4962_v14 = vld [vmem:[#allocation15 + $0xfc] ss:$24 sps:$4 sm:$0xff]   ;;  %v4964_v15 = vld [vmem:[#allocation15 + $0x150] ss:$24 sps:$4 sm:$0xff]   ;;  %v4974_v18 = vld [vmem:[#allocation15 + $0x12c] ss:$24 sps:$4 sm:$0xff]  }
  0x96   :  { %3821 = vmatpush3.bf16.msra.mxu0 %v3884_v42  ;;  %v4968_v16 = vld [vmem:[#allocation15 + $0xf8] ss:$24 sps:$4 sm:$0xff]   ;;  %v4972_v17 = vld [vmem:[#allocation15 + $0x184] ss:$24 sps:$4 sm:$0xff]   ;;  %v4978_v21 = vld [vmem:[#allocation15 + $0x128] ss:$24 sps:$4 sm:$0xff]  }
  0x97   :  { %3822 = vmatprep.subr.bf16.mxu0 %v4656_v0  ;;  %v4976_v19 = vld [vmem:[#allocation15 + $0x180] ss:$24 sps:$4 sm:$0xff]   ;;  %v4982_v22 = vld [vmem:[#allocation15 + $0x1b4] ss:$24 sps:$4 sm:$0xff]   ;;  %v4988_v24 = vld [vmem:[#allocation15 + $0x1b0] ss:$24 sps:$4 sm:$0xff]  }
  0x98   :  { %812 = vmatpush1.bf16.msra.mxu1 %v3878_v43  ;;  %v4986_v23 = vld [vmem:[#allocation15 + $0x15c] ss:$24 sps:$4 sm:$0xff]   ;;  %v4992_v25 = vld [vmem:[#allocation15 + $0x158] ss:$24 sps:$4 sm:$0xff]   ;;  %v4998_v27 = vld [vmem:[#allocation15 + $0x18c] ss:$24 sps:$4 sm:$0xff]  }
  0x99   :  { %930 = vmatprep.subr.bf16.mxu1 %v3883_v44  ;;  %v4996_v26 = vld [vmem:[#allocation15 + $0x1e4] ss:$24 sps:$4 sm:$0xff]   ;;  %v5000_v28 = vld [vmem:[#allocation15 + $0x1e0] ss:$24 sps:$4 sm:$0xff]   ;;  %v5008_v30 = vld [vmem:[#allocation15 + $0x214] ss:$24 sps:$4 sm:$0xff]  }
  0x9a   :  { %3823 = vmatpush3.bf16.msra.mxu0 %v3888_v45  ;;  %v5004_v29 = vld [vmem:[#allocation15 + $0x188] ss:$24 sps:$4 sm:$0xff]   ;;  %v5010_v31 = vld [vmem:[#allocation15 + $0x1bc] ss:$24 sps:$4 sm:$0xff]   ;;  %v5016_v33 = vld [vmem:[#allocation15 + $0x1b8] ss:$24 sps:$4 sm:$0xff]  }
  0x9b   :  { %3624 = vmatmul.mubr.msk.bf16.vlgmr.msra.gmra.mrb[8].mxu1 %vm205_vm1, %v4854_v12  ;;  %3607 = vmatmul.mubr.msk.bf16.gmra.mrb[8].mxu0 %vm205_vm1, %v339_v40  ;;  %v5012_v32 = vld [vmem:[#allocation15 + $0x210] ss:$24 sps:$4 sm:$0xff]   ;;  %v5020_v34 = vld [vmem:[#allocation15 + $0x244] ss:$24 sps:$4 sm:$0xff]   ;;  %v5024_v36 = vld [vmem:[#allocation15 + $0x240] ss:$24 sps:$4 sm:$0xff]  }
  0x9c   :  { %931 = vmatpush1.bf16.msra.mxu1 %v3881_v46  ;;  %962 = vmatprep.mubr.bf16.mxu1 %v6740_v1  ;;  %v5022_v35 = vld [vmem:[#allocation15 + $0x1ec] ss:$24 sps:$4 sm:$0xff]   ;;  %v5034_v39 = vld [vmem:[#allocation15 + $0x21c] ss:$24 sps:$4 sm:$0xff]   ;;  %v5040_v41 = vld [vmem:[#allocation15 + $0x218] ss:$24 sps:$4 sm:$0xff]  }
  0x9d   :  { %932 = vmatprep.subr.bf16.mxu1 %v3887_v47  ;;  %3824 = vmatprep.mubr.msk.bf16.mxu0 %vm4657_vm0, %v4656_v0  ;;  %v4924_v0 = vld [vmem:[#allocation15 + $0x6c] ss:$24 sps:$4 sm:$0xff]   ;;  %6998 = vst [vmem:[#allocation32_spill] sm:$0xff] %v5034_v39  ;;  %6999 = vst [vmem:[#allocation33_spill] sm:$0xff] %v5040_v41  ;;  %v5050_v44 = vld [vmem:[#allocation15 + $0x2a0] ss:$24 sps:$4 sm:$0xff]  }
  0x9e   :  { %3828 = vmatprep.subr.bf16.mxu0 %v3889_v48  ;;  %v5032_v38 = vld [vmem:[#allocation15 + $0x274] ss:$24 sps:$4 sm:$0xff]   ;;  %v5044_v42 = vld [vmem:[#allocation15 + $0x2a4] ss:$24 sps:$4 sm:$0xff]   ;;  %v5052_v45 = vld [vmem:[#allocation15 + $0x248] ss:$24 sps:$4 sm:$0xff]  }
  0x9f   :  { %v5046_v43 = vld [vmem:[#allocation15 + $0x24c] ss:$24 sps:$4 sm:$0xff]   ;;  %7001 = vst [vmem:[#allocation35_spill] sm:$0xff] %v5052_v45  ;;  %v5058_v47 = vld [vmem:[#allocation15 + $0x27c] ss:$24 sps:$4 sm:$0xff]  }
  0xa0   :  { %933 = vmatpush1.bf16.msra.mxu1 %v3885_v49  ;;  %7000 = vst [vmem:[#allocation34_spill] sm:$0xff] %v5046_v43  ;;  %v5056_v46 = vld [vmem:[#allocation15 + $0x2d4] ss:$24 sps:$4 sm:$0xff]   ;;  %7002 = vst [vmem:[#allocation36_spill] sm:$0xff] %v5058_v47  ;;  %v5064_v49 = vld [vmem:[#allocation15 + $0x278] ss:$24 sps:$4 sm:$0xff]  }
  0xa1   :  { %1913 = vmatprep.subr.bf16.mxu1 %v4881_v50  ;;  %7003 = vst [vmem:[#allocation37_spill] sm:$0xff] %v5064_v49  ;;  %v5074_v20 = vld [vmem:[#allocation15 + $0x2a8] ss:$24 sps:$4 sm:$0xff]  }
  0xa2   :  { %v5076_v11 = vld [vmem:[#allocation15 + $0x10] ss:$24 sps:$4 sm:$0xff]  }
  0xa3   :  { %3632 = vmatmul.mubr.msk.bf16.vlgmr.msra.gmra.mrb[12].mxu1 %vm205_vm1, %v322_v37  ;;  %3825 = vmatmul.mubr.msk.bf16.vlgmr.msra.gmra.mrb[12].mxu0 %vm205_vm1, %v4854_v12  ;;  %v4954_v12 = vld [vmem:[#allocation15 + $0xc8] ss:$24 sps:$4 sm:$0xff]   ;;  %7005 = vst [vmem:[#allocation39_spill] sm:$0xff] %v5076_v11 }
  0xa4   :  { %3829 = vmatpush3.bf16.msra.mxu0 %v3889_v48  ;;  %1914 = vmatpush1.bf16.msra.mxu1 %v4883_v51  ;;  %v5062_v48 = vld [vmem:[#allocation15 + $0x2d0] ss:$24 sps:$4 sm:$0xff]  }
  0xa5   :  { %3830 = vmatprep.subr.bf16.mxu0 %v3893_v52  ;;  %1915 = vmatprep.subr.bf16.mxu1 %v4886_v53 }
  0xa6   :  { %972 = vmatprep.mubr.bf16.mxu1 %v6740_v1  ;;  %3832 = vmatprep.mubr.msk.bf16.mxu0 %vm205_vm1, %v322_v37  ;;  %v5028_v37 = vld [vmem:[#allocation15 + $0x1e8] ss:$24 sps:$4 sm:$0xff]  }
  0xa7   :  { %6997 = vst [vmem:[#allocation31_spill] sm:$0xff] %v5028_v37 }
  0xa8   :  { %3831 = vmatpush3.bf16.msra.mxu0 %v3893_v52  ;;  %1916 = vmatpush1.bf16.msra.mxu1 %v4892_v54  ;;  %v5068_v52 = vld [vmem:[#allocation15 + $0x2ac] ss:$24 sps:$4 sm:$0xff]  }
  0xa9   :  { %1917 = vmatprep.subr.bf16.mxu1 %v4895_v55  ;;  %1954 = vmatprep.subr.bf16.mxu0 %v4897_v56  ;;  %7004 = vst [vmem:[#allocation38_spill] sm:$0xff] %v5068_v52 }
  0xab   :  { %3633 = vmatmul.mubr.msk.bf16.gmra.mrb[16].mxu1 %vm205_vm1, %v339_v40  ;;  %3833 = vmatmul.mubr.msk.bf16.vlgmr.msra.gmra.mrb[16].mxu0 %vm205_vm1, %v339_v40  ;;  %v5036_v40 = vld [vmem:[#allocation15 + $0x270] ss:$24 sps:$4 sm:$0xff]  }
  0xac   :  { %1918 = vmatpush1.bf16.msra.mxu1 %v4901_v57  ;;  %1955 = vmatpush1.bf16.msra.mxu0 %v4903_v58 }
  0xad   :  { %1919 = vmatprep.subr.bf16.mxu1 %v4906_v59  ;;  %1956 = vmatprep.subr.bf16.mxu0 %v4910_v60 }
  0xae   :  { %1945 = vmatprep.mubr.bf16.mxu1 %v6740_v1  ;;  %1986 = vmatprep.mubr.bf16.mxu0 %v6740_v1  ;;  %v5070_v1 = vld [vmem:[#allocation15 + $0x14] ss:$24 sps:$4 sm:$0xff]  }
  0xb0   :  { %1920 = vmatpush1.bf16.msra.mxu1 %v4914_v61  ;;  %1957 = vmatpush1.bf16.msra.mxu0 %v4918_v62 }
  0xb1   :  { %1921 = vmatprep.subr.bf16.mxu1 %v4922_v63  ;;  %1958 = vmatprep.subr.bf16.mxu0 %v4924_v0 }
  0xb4   :  { %1922 = vmatpush1.bf16.msra.mxu1 %v4928_v2  ;;  %1959 = vmatpush1.bf16.msra.mxu0 %v4930_v3 }
  0xb5   :  { %1923 = vmatprep.subr.bf16.mxu1 %v4934_v4  ;;  %1960 = vmatprep.subr.bf16.mxu0 %v4938_v5 }
  0xb8   :  { %1924 = vmatpush1.bf16.msra.mxu1 %v4940_v6  ;;  %1961 = vmatpush1.bf16.msra.mxu0 %v4944_v7 }
  0xb9   :  { %1925 = vmatprep.subr.bf16.mxu1 %v4948_v8  ;;  %1962 = vmatprep.subr.bf16.mxu0 %v4950_v9 }
  0xbc   :  { %1926 = vmatpush1.bf16.msra.mxu1 %v4952_v10  ;;  %1963 = vmatpush1.bf16.msra.mxu0 %v4954_v12 }
  0xbd   :  { %1927 = vmatprep.subr.bf16.mxu1 %v4958_v13  ;;  %1964 = vmatprep.subr.bf16.mxu0 %v4962_v14 }
  0xc0   :  { %1928 = vmatpush1.bf16.msra.mxu1 %v4964_v15  ;;  %1965 = vmatpush1.bf16.msra.mxu0 %v4968_v16 }
  0xc1   :  { %1929 = vmatprep.subr.bf16.mxu1 %v4972_v17  ;;  %1966 = vmatprep.subr.bf16.mxu0 %v4974_v18 }
  0xc4   :  { %1930 = vmatpush1.bf16.msra.mxu1 %v4976_v19  ;;  %1967 = vmatpush1.bf16.msra.mxu0 %v4978_v21 }
  0xc5   :  { %1931 = vmatprep.subr.bf16.mxu1 %v4982_v22  ;;  %1968 = vmatprep.subr.bf16.mxu0 %v4986_v23 }
  0xc8   :  { %1932 = vmatpush1.bf16.msra.mxu1 %v4988_v24  ;;  %1969 = vmatpush1.bf16.msra.mxu0 %v4992_v25 }
  0xc9   :  { %1933 = vmatprep.subr.bf16.mxu1 %v4996_v26  ;;  %1970 = vmatprep.subr.bf16.mxu0 %v4998_v27 }
  0xcc   :  { %1934 = vmatpush1.bf16.msra.mxu1 %v5000_v28  ;;  %1971 = vmatpush1.bf16.msra.mxu0 %v5004_v29 }
  0xcd   :  { %1935 = vmatprep.subr.bf16.mxu1 %v5008_v30  ;;  %1972 = vmatprep.subr.bf16.mxu0 %v5010_v31 }
  0xd0   :  { %1936 = vmatpush1.bf16.msra.mxu1 %v5012_v32  ;;  %1973 = vmatpush1.bf16.msra.mxu0 %v5016_v33 }
  0xd1   :  { %1937 = vmatprep.subr.bf16.mxu1 %v5020_v34  ;;  %1974 = vmatprep.subr.bf16.mxu0 %v5022_v35 }
  0xd4   :  { %1938 = vmatpush1.bf16.msra.mxu1 %v5024_v36  ;;  %1975 = vmatpush1.bf16.msra.mxu0 %v5028_v37  ;;  %v5100_v37 = vld [vmem:[#allocation15 + $0x74] ss:$24 sps:$4 sm:$0xff]  }
  0xd5   :  { %1939 = vmatprep.subr.bf16.mxu1 %v5032_v38  ;;  %1976 = vmatprep.subr.bf16.mxu0 %v5034_v39  ;;  %v5094_v39 = vld [vmem:[#allocation15 + $0x2d8] ss:$24 sps:$4 sm:$0xff]   ;;  %7010 = vst [vmem:[#allocation43_spill] sm:$0xff] %v5100_v37 }
  0xd8   :  { %1940 = vmatpush1.bf16.msra.mxu1 %v5036_v40  ;;  %1977 = vmatpush1.bf16.msra.mxu0 %v5040_v41 }
  0xd9   :  { %1941 = vmatprep.subr.bf16.mxu1 %v5044_v42  ;;  %1978 = vmatprep.subr.bf16.mxu0 %v5046_v43  ;;  %v5087_v43 = vld [vmem:[#allocation15 + $0x44] ss:$24 sps:$4 sm:$0xff]  }
  0xda   :  { %7007 = vst [vmem:[#allocation41_spill] sm:$0xff] %v5087_v43 }
  0xdc   :  { %1942 = vmatpush1.bf16.msra.mxu1 %v5050_v44  ;;  %1979 = vmatpush1.bf16.msra.mxu0 %v5052_v45  ;;  %v5081_v45 = vld [vmem:[%s6727_s2] sm:$0xf] }
  0xdd   :  { %1943 = vmatprep.subr.bf16.mxu1 %v5056_v46  ;;  %1980 = vmatprep.subr.bf16.mxu0 %v5058_v47  ;;  %v5085_v47 = vld [vmem:[#allocation15 + $0x2dc] ss:$24 sps:$4 sm:$0xff]   ;;  %vm2098_vm2 = vcmp.gt.s32.totalorder %v5081_v45, 7  ;;  %vm2097_vm3 = vcmp.gt.s32.totalorder %v5081_v45, 0  ;;  %vm2511_vm4 = vcmp.gt.s32.totalorder %v5081_v45, 5  ;;  %vm2720_vm5 = vcmp.gt.s32.totalorder %v5081_v45, 4 }
  0xde   :  { %7006 = vst [vmem:[#allocation40_spill] sm:$0xff] %v5085_v47  ;;  %vm2302_vm6 = vcmp.gt.s32.totalorder %v5081_v45, 6  ;;  %vm2301_vm7 = vcmp.gt.s32.totalorder %v5081_v45, 1  ;;  %vm2510_vm8 = vcmp.gt.s32.totalorder %v5081_v45, 2  ;;  %vm2719_vm10 = vcmp.gt.s32.totalorder %v5081_v45, 3 }
  0xe0   :  { %1944 = vmatpush1.bf16.msra.mxu1 %v5062_v48  ;;  %1981 = vmatpush1.bf16.msra.mxu0 %v5064_v49  ;;  %v7008_v49 = vmov 0  }
  0xe1   :  { %1982 = vmatprep.subr.bf16.mxu0 %v5068_v52  ;;  %1995 = vmatprep.subr.bf16.mxu1 %v5070_v1  ;;  %v2107_v41 = vsel %vm2098_vm2, 1, %v7008_v49  ;;  %v5096_v52 = vld [vmem:[#allocation15 + $0x40] ss:$24 sps:$4 sm:$0xff]  }
  0xe2   :  { %2109 = vperm.xlu0 %3857, %v2107_v41   ;;  %7009 = vst [vmem:[#allocation42_spill] sm:$0xff] %v5096_v52  ;;  %v2099_v41 = vsel %vm2097_vm3, 1, %v7008_v49 }
  0xe3   :  { %1946 = vmatmul.mubr.bf16.vlgmr.msra.gmra.mrb[20].mxu1 %v7008_v49 }
  0xe4   :  { %1983 = vmatpush1.bf16.msra.mxu0 %v5074_v20  ;;  %1996 = vmatpush1.bf16.msra.mxu1 %v5076_v11  ;;  %v5107_v11 = vld [vmem:[#allocation15 + $0x70] ss:$24 sps:$4 sm:$0xff]  }
  0xe5   :  { %1984 = vmatprep.subr.bf16.mxu0 %v5085_v47  ;;  %1997 = vmatprep.subr.bf16.mxu1 %v5087_v43  ;;  %v5110_v47 = vld [vmem:[#allocation15 + $0xa4] ss:$24 sps:$4 sm:$0xff]   ;;  %v5115_v43 = vld [vmem:[#allocation15 + $0xa0] ss:$24 sps:$4 sm:$0xff]  }
  0xe6   :  { %2027 = vmatprep.mubr.bf16.mxu1 %v7008_v49  ;;  %2101 = vperm.xlu0 %3857, %v2099_v41   ;;  %v5119_v41 = vld [vmem:[#allocation15 + $0xd4] ss:$24 sps:$4 sm:$0xff]  }
  0xe8   :  { %1985 = vmatpush1.bf16.msra.mxu0 %v5094_v39  ;;  %1998 = vmatpush1.bf16.msra.mxu1 %v5096_v52  ;;  %v5127_v52 = vld [vmem:[#allocation15 + $0x104] ss:$24 sps:$4 sm:$0xff]  }
  0xe9   :  { %1999 = vmatprep.subr.bf16.mxu1 %v5100_v37  ;;  %2116 = vmatprep.subr.bf16.mxu0 %v4881_v50  ;;  %v5123_v37 = vld [vmem:[#allocation15 + $0xd0] ss:$24 sps:$4 sm:$0xff]  }
  0xeb   :  { %1987 = vmatmul.mubr.bf16.vlgmr.msra.gmra.mrb[20].mxu0 %v7008_v49 }
  0xec   :  { %2000 = vmatpush1.bf16.msra.mxu1 %v5107_v11  ;;  %2117 = vmatpush1.bf16.msra.mxu0 %v4883_v51  ;;  %v5131_v51 = vld [vmem:[#allocation15 + $0x100] ss:$24 sps:$4 sm:$0xff]  }
  0xed   :  { %2001 = vmatprep.subr.bf16.mxu1 %v5110_v47  ;;  %2118 = vmatprep.subr.bf16.mxu0 %v4886_v53  ;;  %v5135_v53 = vld [vmem:[#allocation15 + $0x134] ss:$24 sps:$4 sm:$0xff]  }
  0xf0   :  { %2002 = vmatpush1.bf16.msra.mxu1 %v5115_v43  ;;  %2119 = vmatpush1.bf16.msra.mxu0 %v4892_v54  ;;  %v5139_v54 = vld [vmem:[#allocation15 + $0x130] ss:$24 sps:$4 sm:$0xff]  }
  0xf1   :  { %2003 = vmatprep.subr.bf16.mxu1 %v5119_v41  ;;  %2120 = vmatprep.subr.bf16.mxu0 %v4895_v55  ;;  %v5143_v55 = vld [vmem:[#allocation15 + $0x164] ss:$24 sps:$4 sm:$0xff]  }
  0xf4   :  { %2004 = vmatpush1.bf16.msra.mxu1 %v5123_v37  ;;  %2121 = vmatpush1.bf16.msra.mxu0 %v4901_v57  ;;  %v5147_v57 = vld [vmem:[#allocation15 + $0x160] ss:$24 sps:$4 sm:$0xff]  }
  0xf5   :  { %2005 = vmatprep.subr.bf16.mxu1 %v5127_v52  ;;  %2122 = vmatprep.subr.bf16.mxu0 %v4906_v59  ;;  %v5151_v59 = vld [vmem:[#allocation15 + $0x194] ss:$24 sps:$4 sm:$0xff]  }
  0xf8   :  { %2006 = vmatpush1.bf16.msra.mxu1 %v5131_v51  ;;  %2123 = vmatpush1.bf16.msra.mxu0 %v4914_v61  ;;  %v5155_v61 = vld [vmem:[#allocation15 + $0x190] ss:$24 sps:$4 sm:$0xff]  }
  0xf9   :  { %2007 = vmatprep.subr.bf16.mxu1 %v5135_v53  ;;  %2124 = vmatprep.subr.bf16.mxu0 %v4922_v63  ;;  %v5159_v63 = vld [vmem:[#allocation15 + $0x1c4] ss:$24 sps:$4 sm:$0xff]  }
  0xfc   :  { %2008 = vmatpush1.bf16.msra.mxu1 %v5139_v54  ;;  %2125 = vmatpush1.bf16.msra.mxu0 %v4928_v2  ;;  %v5163_v2 = vld [vmem:[#allocation15 + $0x1c0] ss:$24 sps:$4 sm:$0xff]  }
  0xfd   :  { %2009 = vmatprep.subr.bf16.mxu1 %v5143_v55  ;;  %2126 = vmatprep.subr.bf16.mxu0 %v4934_v4  ;;  %v5167_v4 = vld [vmem:[#allocation15 + $0x1f4] ss:$24 sps:$4 sm:$0xff]  }
 0x100   :  { %2010 = vmatpush1.bf16.msra.mxu1 %v5147_v57  ;;  %2127 = vmatpush1.bf16.msra.mxu0 %v4940_v6  ;;  %v5171_v6 = vld [vmem:[#allocation15 + $0x1f0] ss:$24 sps:$4 sm:$0xff]  }
 0x101   :  { %2011 = vmatprep.subr.bf16.mxu1 %v5151_v59  ;;  %2128 = vmatprep.subr.bf16.mxu0 %v4948_v8  ;;  %v5175_v8 = vld [vmem:[#allocation15 + $0x224] ss:$24 sps:$4 sm:$0xff]  }
 0x104   :  { %2012 = vmatpush1.bf16.msra.mxu1 %v5155_v61  ;;  %2129 = vmatpush1.bf16.msra.mxu0 %v4952_v10  ;;  %v5179_v10 = vld [vmem:[#allocation15 + $0x220] ss:$24 sps:$4 sm:$0xff]  }
 0x105   :  { %2013 = vmatprep.subr.bf16.mxu1 %v5159_v63  ;;  %2130 = vmatprep.subr.bf16.mxu0 %v4958_v13  ;;  %v5183_v13 = vld [vmem:[#allocation15 + $0x254] ss:$24 sps:$4 sm:$0xff]  }
 0x106   :  { %7011 = vst [vmem:[#allocation44_spill] sm:$0xff] %v5183_v13 }
 0x108   :  { %2014 = vmatpush1.bf16.msra.mxu1 %v5163_v2  ;;  %2131 = vmatpush1.bf16.msra.mxu0 %v4964_v15  ;;  %v5187_v15 = vld [vmem:[#allocation15 + $0x250] ss:$24 sps:$4 sm:$0xff]  }
 0x109   :  { %2015 = vmatprep.subr.bf16.mxu1 %v5167_v4  ;;  %2132 = vmatprep.subr.bf16.mxu0 %v4972_v17  ;;  %7012 = vst [vmem:[#allocation45_spill] sm:$0xff] %v5187_v15  ;;  %v5191_v17 = vld [vmem:[#allocation15 + $0x284] ss:$24 sps:$4 sm:$0xff]  }
 0x10a   :  { %7013 = vst [vmem:[#allocation46_spill] sm:$0xff] %v5191_v17 }
 0x10c   :  { %2016 = vmatpush1.bf16.msra.mxu1 %v5171_v6  ;;  %2133 = vmatpush1.bf16.msra.mxu0 %v4976_v19  ;;  %v5195_v19 = vld [vmem:[#allocation15 + $0x280] ss:$24 sps:$4 sm:$0xff]  }
 0x10d   :  { %2017 = vmatprep.subr.bf16.mxu1 %v5175_v8  ;;  %2134 = vmatprep.subr.bf16.mxu0 %v4982_v22  ;;  %7014 = vst [vmem:[#allocation47_spill] sm:$0xff] %v5195_v19  ;;  %v5199_v22 = vld [vmem:[#allocation15 + $0x2b4] ss:$24 sps:$4 sm:$0xff]  }
 0x10e   :  { %7015 = vst [vmem:[#allocation48_spill] sm:$0xff] %v5199_v22 }
 0x110   :  { %2018 = vmatpush1.bf16.msra.mxu1 %v5179_v10  ;;  %2135 = vmatpush1.bf16.msra.mxu0 %v4988_v24  ;;  %v2521_v24 = vsel %vm2511_vm4, 1, %v7008_v49 }
 0x111   :  { %2019 = vmatprep.subr.bf16.mxu1 %v5183_v13  ;;  %2136 = vmatprep.subr.bf16.mxu0 %v4996_v26  ;;  %v5206_v26 = vld [vmem:[#allocation15 + $0x2b0] ss:$24 sps:$4 sm:$0xff]  }
 0x112   :  { %2523 = vperm.xlu0 %3857, %v2521_v24   ;;  %7016 = vst [vmem:[#allocation49_spill] sm:$0xff] %v5206_v26 }
 0x114   :  { %2020 = vmatpush1.bf16.msra.mxu1 %v5187_v15  ;;  %2137 = vmatpush1.bf16.msra.mxu0 %v5000_v28  ;;  %v2730_v15 = vsel %vm2720_vm5, 1, %v7008_v49  ;;  %v5211_v28 = vld [vmem:[#allocation15 + $0x2e4] ss:$24 sps:$4 sm:$0xff]  }
 0x115   :  { %2021 = vmatprep.subr.bf16.mxu1 %v5191_v17  ;;  %2138 = vmatprep.subr.bf16.mxu0 %v5008_v30  ;;  %7017 = vst [vmem:[#allocation50_spill] sm:$0xff] %v5211_v28  ;;  %v5215_v30 = vld [vmem:[#allocation15 + $0x2e0] ss:$24 sps:$4 sm:$0xff]  }
 0x116   :  { %2732 = vperm.xlu0 %3857, %v2730_v15   ;;  %7018 = vst [vmem:[#allocation51_spill] sm:$0xff] %v5215_v30 }
 0x118   :  { %2022 = vmatpush1.bf16.msra.mxu1 %v5195_v19  ;;  %2139 = vmatpush1.bf16.msra.mxu0 %v5012_v32 }
 0x119   :  { %2023 = vmatprep.subr.bf16.mxu1 %v5199_v22  ;;  %2140 = vmatprep.subr.bf16.mxu0 %v5020_v34 }
 0x11c   :  { %2024 = vmatpush1.bf16.msra.mxu1 %v5206_v26  ;;  %2141 = vmatpush1.bf16.msra.mxu0 %v5024_v36 }
 0x11d   :  { %2025 = vmatprep.subr.bf16.mxu1 %v5211_v28  ;;  %2142 = vmatprep.subr.bf16.mxu0 %v5032_v38 }
 0x120   :  { %2026 = vmatpush1.bf16.msra.mxu1 %v5215_v30  ;;  %2143 = vmatpush1.bf16.msra.mxu0 %v5036_v40 }
 0x121   :  { %2157 = vmatprep.subr.bf16.mxu1 %v4897_v56  ;;  %2144 = vmatprep.subr.bf16.mxu0 %v5044_v42  ;;  %v7020_v56 = vld [vmem:[#allocation32_spill] sm:$0xff] }
 0x123   :  { %2028 = vmatmul.mubr.bf16.vlgmr.msra.gmra.mrb[24].mxu1 %v7008_v49 }
 0x124   :  { %2158 = vmatpush1.bf16.msra.mxu1 %v4903_v58  ;;  %2145 = vmatpush1.bf16.msra.mxu0 %v5050_v44  ;;  %v7021_v58 = vld [vmem:[#allocation33_spill] sm:$0xff] }
 0x125   :  { %2159 = vmatprep.subr.bf16.mxu1 %v4910_v60  ;;  %2146 = vmatprep.subr.bf16.mxu0 %v5056_v46  ;;  %v7022_v60 = vld [vmem:[#allocation34_spill] sm:$0xff] }
 0x128   :  { %2160 = vmatpush1.bf16.msra.mxu1 %v4918_v62  ;;  %2147 = vmatpush1.bf16.msra.mxu0 %v5062_v48  ;;  %v7023_v62 = vld [vmem:[#allocation35_spill] sm:$0xff] }
 0x129   :  { %2161 = vmatprep.subr.bf16.mxu1 %v4924_v0  ;;  %2198 = vmatprep.subr.bf16.mxu0 %v5070_v1  ;;  %v7019_v1 = vld [vmem:[#allocation31_spill] sm:$0xff]  ;;  %v7024_v0 = vld [vmem:[#allocation36_spill] sm:$0xff] }
 0x12c   :  { %2162 = vmatpush1.bf16.msra.mxu1 %v4930_v3  ;;  %v7025_v3 = vld [vmem:[#allocation29_spill] sm:$0xff] }
 0x12d   :  { %2163 = vmatprep.subr.bf16.mxu1 %v4938_v5  ;;  %v5256_v5 = vsub.s32 0, %v7025_v3 }
 0x130   :  { %2164 = vmatpush1.bf16.msra.mxu1 %v4944_v7  ;;  %v5259_v7 = vsub.s32 1, %v7025_v3 }
 0x131   :  { %2165 = vmatprep.subr.bf16.mxu1 %v4950_v9  ;;  %v7026_v9 = vld [vmem:[#allocation37_spill] sm:$0xff] }
 0x134   :  { %2166 = vmatpush1.bf16.msra.mxu1 %v4954_v12  ;;  %v7027_v12 = vld [vmem:[#allocation38_spill] sm:$0xff] }
 0x135   :  { %2167 = vmatprep.subr.bf16.mxu1 %v4962_v14  ;;  %v156_v14 = vld [vmem:[%s6730_s5] sm:$0x7] }
 0x138   :  { %2168 = vmatpush1.bf16.msra.mxu1 %v4968_v16  ;;  %v161_v16 = vrot.slane %v156_v14, %v5256_v5 }
 0x139   :  { %2169 = vmatprep.subr.bf16.mxu1 %v4974_v18  ;;  %v165_v18 = vrot.slane %v156_v14, %v5259_v7 }
 0x13c   :  { %2170 = vmatpush1.bf16.msra.mxu1 %v4978_v21  ;;  %v5270_v21 = vsub.s32 2, %v7025_v3 }
 0x13d   :  { %2171 = vmatprep.subr.bf16.mxu1 %v4986_v23 }
 0x13e   :  { %v169_v38 = vrot.slane %v156_v14, %v5270_v21 }
 0x140   :  { %2172 = vmatpush1.bf16.msra.mxu1 %v4992_v25  ;;  %v7028_v25 = vld [vmem:[#allocation40_spill] sm:$0xff] }
 0x141   :  { %2173 = vmatprep.subr.bf16.mxu1 %v4998_v27 }
 0x144   :  { %2174 = vmatpush1.bf16.msra.mxu1 %v5004_v29 }
 0x145   :  { %2175 = vmatprep.subr.bf16.mxu1 %v5010_v31 }
 0x148   :  { %2176 = vmatpush1.bf16.msra.mxu1 %v5016_v33 }
 0x149   :  { %2177 = vmatprep.subr.bf16.mxu1 %v5022_v35 }
 0x14c   :  { %2178 = vmatpush1.bf16.msra.mxu1 %v7019_v1 }
 0x14d   :  { %2179 = vmatprep.subr.bf16.mxu1 %v7020_v56 }
 0x150   :  { %2180 = vmatpush1.bf16.msra.mxu1 %v7021_v58 }
 0x151   :  { %2181 = vmatprep.subr.bf16.mxu1 %v7022_v60 }
 0x154   :  { %2182 = vmatpush1.bf16.msra.mxu1 %v7023_v62 }
 0x155   :  { %2183 = vmatprep.subr.bf16.mxu1 %v7024_v0 }
 0x158   :  { %2184 = vmatpush1.bf16.msra.mxu1 %v7026_v9  ;;  %v5281_v9 = vld [vmem:[%s6733_s8] sm:$0x7] }
 0x159   :  { %2185 = vmatprep.subr.bf16.mxu1 %v7027_v12 }
 0x15c   :  { %2186 = vmatpush1.bf16.msra.mxu1 %v5074_v20 }
 0x15d   :  { %2187 = vmatprep.subr.bf16.mxu1 %v7028_v25 }
 0x15e   :  { %v284_v23 = vpop.f32.mrb[0].mxu1  ;;  %v243_v29 = vpop.f32.mrb[0].mxu0 }
 0x15f   :  { %v3810_v27 = vpop.f32.mrb[1].mxu1  ;;  %v244_v32 = vadd.f32 %v243_v29, %v161_v16  ;;  %v245_v33 = vpop.f32.mrb[1].mxu0  ;;  %v285_v42 = vadd.f32 %v284_v23, %v169_v38 }
 0x160   :  { %v287_v31 = vpop.f32.mrb[2].mxu1  ;;  %v246_v35 = vadd.f32 %v245_v33, %v165_v18  ;;  %v247_v36 = vpop.f32.mrb[2].mxu0  ;;  %2188 = vmatpush1.bf16.msra.mxu1 %v5094_v39 }
 0x161   :  { %v3811_v34 = vpop.f32.mrb[3].mxu1  ;;  %v248_v40 = vpop.f32.mrb[3].mxu0  ;;  %2325 = vmatprep.subr.bf16.mxu1 %v4881_v50 }
 0x162   :  { %v5276_v20 = vcombine.low %v244_v32, %v246_v35  ;;  %v765_v34 = vrot.slane %v5281_v9, %v5256_v5  ;;  %v769_v40 = vrot.slane %v5281_v9, %v5259_v7 }
 0x166   :  { %v3818_v44 = vpop.f32.mrb[4].mxu1  ;;  %v412_v46 = vpop.f32.mrb[4].mxu0 }
 0x167   :  { %v500_v48 = vcombine.high %v3818_v44, %v3818_v44  ;;  %v529_v15 = vadd.f32 %v3818_v44, %v285_v42  ;;  %v465_v24 = vpop.f32.mrb[5].mxu1  ;;  %v414_v1 = vpop.f32.mrb[5].mxu0  ;;  %v7029_v44 = vld [vmem:[#allocation30_spill] sm:$0xff] }
 0x168   :  { %v494_v56 = vcombine.high %v465_v24, %v465_v24  ;;  %v521_v58 = vadd.f32 %v465_v24, %v285_v42  ;;  %v492_v60 = vcombine.low %v412_v46, %v414_v1  ;;  %v493_v62 = vcombine.high %v412_v46, %v414_v1  ;;  %v3819_v0 = vpop.f32.mrb[6].mxu1  ;;  %v416_v39 = vpop.f32.mrb[6].mxu0 }
 0x169   :  { %v531_v50 = vadd.f32 %v500_v48, %v285_v42  ;;  %v574_v12 = vpack.c.bf16 %v529_v15, %v529_v15  ;;  %v503_v14 = vcombine.high %v3819_v0, %v3819_v0  ;;  %v533_v16 = vadd.f32 %v3819_v0, %v285_v42  ;;  %v468_v18 = vpop.f32.mrb[7].mxu1  ;;  %v418_v23 = vpop.f32.mrb[7].mxu0 }
 0x16a   :  { %v523_v25 = vadd.f32 %v494_v56, %v285_v42  ;;  %v562_v27 = vpack.c.bf16 %v521_v58, %v521_v58  ;;  %v520_v29 = vadd.f32 %v5276_v20, %v492_v60  ;;  %v522_v31 = vadd.f32 %v5276_v20, %v493_v62 }
 0x16b   :  { %v577_v32 = vpack.c.bf16 %v531_v50, %v531_v50  ;;  %v535_v33 = vadd.f32 %v503_v14, %v285_v42  ;;  %v5290_v46 = vrot.slane %v574_v12, %v7029_v44  ;;  %v580_v48 = vpack.c.bf16 %v533_v16, %v533_v16 }
 0x16c   :  { %v565_v35 = vpack.c.bf16 %v523_v25, %v523_v25  ;;  %v544_v36 = vcombine.high %v520_v29, %v520_v29  ;;  %v545_v38 = vcombine.high %v522_v31, %v522_v31  ;;  %v497_v15 = vcombine.high %v468_v18, %v468_v18 }
 0x16d   :  { %v622_v1 = vrot.slane %v562_v27, %v7029_v44  ;;  %v525_v60 = vadd.f32 %v468_v18, %v285_v42  ;;  %v5296_v50 = vrot.slane %v577_v32, %v7029_v44  ;;  %v495_v25 = vcombine.low %v416_v39, %v418_v23 }
 0x16e   :  { %v3610_v56 = vpack.c.bf16 %v544_v36, %v520_v29  ;;  %v3611_v58 = vpack.c.bf16 %v545_v38, %v522_v31  ;;  %v843_v62 = vpop.f32.mrb[8].mxu1  ;;  %v422_v0 = vpop.f32.mrb[8].mxu0  ;;  %v527_v14 = vadd.f32 %v497_v15, %v285_v42  ;;  %v496_v30 = vcombine.high %v416_v39, %v418_v23 }
 0x16f   :  { %v845_v12 = vpop.f32.mrb[9].mxu1  ;;  %v424_v28 = vpop.f32.mrb[9].mxu0  ;;  %v638_v16 = vrot.slane %v565_v35, %v7029_v44  ;;  %v844_v27 = vadd.f32 %v843_v62, %v765_v34  ;;  %v583_v18 = vpack.c.bf16 %v535_v33, %v535_v33  ;;  %v524_v36 = vadd.f32 %v5276_v20, %v495_v25 }
 0x170   :  { %v615_v26 = vrot.slane %v3610_v56, %v7029_v44  ;;  %v631_v24 = vrot.slane %v3611_v58, %v7029_v44  ;;  %v847_v29 = vpop.f32.mrb[10].mxu1  ;;  %v426_v31 = vpop.f32.mrb[10].mxu0  ;;  %v526_v32 = vadd.f32 %v5276_v20, %v496_v30  ;;  %v846_v38 = vadd.f32 %v845_v12, %v769_v40 }
 0x171   :  { %v848_v42 = vpop.f32.mrb[11].mxu1  ;;  %v428_v15 = vpop.f32.mrb[11].mxu0  ;;  %v568_v22 = vpack.c.bf16 %v525_v60, %v525_v60  ;;  %v498_v19 = vcombine.low %v422_v0, %v424_v28  ;;  %v571_v35 = vpack.c.bf16 %v527_v14, %v527_v14  ;;  %v546_v17 = vcombine.high %v524_v36, %v524_v36 }
 0x172   :  { %v623_v39 = vcombine.low %v615_v26, %v622_v1  ;;  %v639_v23 = vcombine.low %v631_v24, %v638_v16  ;;  %v547_v56 = vcombine.high %v526_v32, %v526_v32  ;;  %v5303_v13 = vcombine.low %v844_v27, %v846_v38 }
 0x173   :  { %v499_v34 = vcombine.high %v422_v0, %v424_v28  ;;  %v528_v33 = vadd.f32 %v5276_v20, %v498_v19  ;;  %v501_v58 = vcombine.low %v426_v31, %v428_v15  ;;  %v502_v62 = vcombine.high %v426_v31, %v428_v15 }
 0x174   :  { %744 = vst [vmem:[#allocation2] sm:$0x3f] %v623_v39  ;;  %745 = vst [vmem:[#allocation2 + $0x6] sm:$0x3f] %v639_v23  ;;  %v718_v30 = vrot.slane %v580_v48, %v7029_v44  ;;  %v734_v40 = vrot.slane %v583_v18, %v7029_v44  ;;  %v3612_v26 = vpack.c.bf16 %v546_v17, %v524_v36 }
 0x175   :  { %v3613_v24 = vpack.c.bf16 %v547_v56, %v526_v32  ;;  %v530_v1 = vadd.f32 %v5276_v20, %v499_v34  ;;  %v548_v60 = vcombine.high %v528_v33, %v528_v33  ;;  %v532_v14 = vadd.f32 %v5276_v20, %v501_v58 }
 0x176   :  { %v534_v25 = vadd.f32 %v5276_v20, %v502_v62  ;;  %v964_v12 = vpop.f32.mrb[12].mxu1  ;;  %v884_v16 = vpop.f32.mrb[12].mxu0  ;;  %v654_v28 = vrot.slane %v568_v22, %v7029_v44  ;;  %v670_v19 = vrot.slane %v571_v35, %v7029_v44  ;;  %v647_v0 = vrot.slane %v3612_v26, %v7029_v44 }
 0x177   :  { %v663_v48 = vrot.slane %v3613_v24, %v7029_v44  ;;  %v966_v27 = vpop.f32.mrb[13].mxu1  ;;  %v3826_v17 = vpop.f32.mrb[13].mxu0  ;;  %v549_v29 = vcombine.high %v530_v1, %v530_v1  ;;  %v3614_v31 = vpack.c.bf16 %v548_v60, %v528_v33  ;;  %v550_v18 = vcombine.high %v532_v14, %v532_v14 }
 0x178   :  { %v551_v36 = vcombine.high %v534_v25, %v534_v25  ;;  %v968_v32 = vpop.f32.mrb[14].mxu1  ;;  %v887_v38 = vpop.f32.mrb[14].mxu0  ;;  %v655_v42 = vcombine.low %v647_v0, %v654_v28  ;;  %v1044_v15 = vcombine.low %v964_v12, %v966_v27  ;;  %v1045_v39 = vcombine.high %v964_v12, %v966_v27 }
 0x179   :  { %v671_v20 = vcombine.low %v663_v48, %v670_v19  ;;  %v970_v23 = vpop.f32.mrb[15].mxu1  ;;  %v3827_v22 = vpop.f32.mrb[15].mxu0  ;;  %v679_v35 = vrot.slane %v3614_v31, %v7029_v44  ;;  %v3615_v56 = vpack.c.bf16 %v549_v29, %v530_v1  ;;  %v3616_v34 = vpack.c.bf16 %v550_v18, %v532_v14 }
 0x17a   :  { %v3617_v58 = vpack.c.bf16 %v551_v36, %v534_v25  ;;  %746 = vst [vmem:[#allocation2 + $0xc] sm:$0x3f] %v655_v42  ;;  %v1072_v62 = vadd.f32 %v5303_v13, %v1044_v15  ;;  %v1074_v33 = vadd.f32 %v5303_v13, %v1045_v39  ;;  %v1047_v26 = vcombine.low %v968_v32, %v970_v23 }
 0x17b   :  { %747 = vst [vmem:[#allocation2 + $0x12] sm:$0x3f] %v671_v20  ;;  %v1048_v24 = vcombine.high %v968_v32, %v970_v23  ;;  %v687_v60 = vcombine.low %v679_v35, %v5290_v46  ;;  %v695_v28 = vrot.slane %v3615_v56, %v7029_v44  ;;  %v711_v12 = vrot.slane %v3616_v34, %v7029_v44 }
 0x17c   :  { %v727_v19 = vrot.slane %v3617_v58, %v7029_v44  ;;  %v1096_v0 = vcombine.high %v1072_v62, %v1072_v62  ;;  %v1097_v1 = vcombine.high %v1074_v33, %v1074_v33  ;;  %v5323_v14 = vadd.f32 %v5303_v13, %v1047_v26 }
 0x17d   :  { %v5326_v25 = vadd.f32 %v5303_v13, %v1048_v24  ;;  %v703_v48 = vcombine.low %v695_v28, %v5296_v50  ;;  %748 = vst [vmem:[#allocation2 + $0x18] sm:$0x3f] %v687_v60  ;;  %v719_v27 = vcombine.low %v711_v12, %v718_v30  ;;  %v7030_v46 = vrot.slane %v5281_v9, %v5270_v21 }
 0x17e   :  { %v735_v17 = vcombine.low %v727_v19, %v734_v40  ;;  %v974_v31 = vpop.f32.mrb[16].mxu1  ;;  %v3834_v18 = vpop.f32.mrb[16].mxu0  ;;  %v3636_v36 = vpack.c.bf16 %v1096_v0, %v1072_v62  ;;  %v3637_v32 = vpack.c.bf16 %v1097_v1, %v1074_v33  ;;  %v1098_v9 = vcombine.high %v5323_v14, %v5323_v14 }
 0x17f   :  { %v5332_v29 = vadd.f32 %v884_v16, %v7030_v46  ;;  %v976_v38 = vpop.f32.mrb[17].mxu1  ;;  %v1017_v42 = vpop.f32.mrb[17].mxu0  ;;  %749 = vst [vmem:[#allocation2 + $0x1e] sm:$0x3f] %v703_v48  ;;  %750 = vst [vmem:[#allocation2 + $0x24] sm:$0x3f] %v719_v27  ;;  %v1052_v50 = vcombine.high %v3834_v18, %v3834_v18  ;;  %v1099_v16 = vcombine.high %v5326_v25, %v5326_v25 }
 0x180   :  { %751 = vst [vmem:[#allocation2 + $0x2a] sm:$0x3f] %v735_v17  ;;  %v1050_v20 = vcombine.low %v974_v31, %v976_v38  ;;  %v1051_v15 = vcombine.high %v974_v31, %v976_v38  ;;  %v978_v40 = vpop.f32.mrb[18].mxu1  ;;  %v3835_v39 = vpop.f32.mrb[18].mxu0  ;;  %v1167_v62 = vrot.slane %v3636_v36, %v7029_v44  ;;  %v1183_v33 = vrot.slane %v3637_v32, %v7029_v44 }
 0x181   :  { %v1081_v30 = vadd.f32 %v3834_v18, %v5332_v29  ;;  %v980_v23 = vpop.f32.mrb[19].mxu1  ;;  %v1020_v22 = vpop.f32.mrb[19].mxu0  ;;  %v1083_v34 = vadd.f32 %v1052_v50, %v5332_v29  ;;  %v1046_v26 = vcombine.high %v1017_v42, %v1017_v42  ;;  %v1073_v24 = vadd.f32 %v1017_v42, %v5332_v29 }
 0x182   :  { %v1080_v35 = vadd.f32 %v5303_v13, %v1050_v20  ;;  %v1082_v56 = vadd.f32 %v5303_v13, %v1051_v15  ;;  %v1053_v48 = vcombine.low %v978_v40, %v980_v23  ;;  %v1054_v27 = vcombine.high %v978_v40, %v980_v23 }
 0x183   :  { %v1126_v58 = vpack.c.bf16 %v1081_v30, %v1081_v30  ;;  %v1129_v12 = vpack.c.bf16 %v1083_v34, %v1083_v34  ;;  %v1075_v0 = vadd.f32 %v1046_v26, %v5332_v29  ;;  %v1114_v1 = vpack.c.bf16 %v1073_v24, %v1073_v24 }
 0x184   :  { %v1100_v60 = vcombine.high %v1080_v35, %v1080_v35  ;;  %v1101_v28 = vcombine.high %v1082_v56, %v1082_v56  ;;  %v1055_v18 = vcombine.high %v3835_v39, %v3835_v39  ;;  %v1084_v38 = vadd.f32 %v5303_v13, %v1053_v48 }
 0x185   :  { %v1238_v19 = vrot.slane %v1126_v58, %v7029_v44  ;;  %v1254_v31 = vrot.slane %v1129_v12, %v7029_v44  ;;  %v1117_v36 = vpack.c.bf16 %v1075_v0, %v1075_v0  ;;  %v1174_v32 = vrot.slane %v1114_v1, %v7029_v44 }
 0x186   :  { %v3640_v17 = vpack.c.bf16 %v1100_v60, %v1080_v35  ;;  %v3641_v46 = vpack.c.bf16 %v1101_v28, %v1082_v56  ;;  %v1086_v42 = vadd.f32 %v5303_v13, %v1054_v27  ;;  %v1085_v50 = vadd.f32 %v3835_v39, %v5332_v29 }
 0x187   :  { %v1087_v30 = vadd.f32 %v1055_v18, %v5332_v29  ;;  %v1175_v40 = vcombine.low %v1167_v62, %v1174_v32  ;;  %v1190_v23 = vrot.slane %v1117_v36, %v7029_v44  ;;  %v1102_v35 = vcombine.high %v1084_v38, %v1084_v38 }
 0x188   :  { %v1231_v20 = vrot.slane %v3640_v17, %v7029_v44  ;;  %v1247_v15 = vrot.slane %v3641_v46, %v7029_v44  ;;  %v1103_v56 = vcombine.high %v1086_v42, %v1086_v42  ;;  %v1132_v26 = vpack.c.bf16 %v1085_v50, %v1085_v50 }
 0x189   :  { %v1135_v24 = vpack.c.bf16 %v1087_v30, %v1087_v30  ;;  %v1191_v60 = vcombine.low %v1183_v33, %v1190_v23  ;;  %1296 = vst [vmem:[#allocation3] sm:$0x3f] %v1175_v40  ;;  %v3642_v13 = vpack.c.bf16 %v1102_v35, %v1084_v38  ;;  %v1049_v12 = vcombine.high %v1020_v22, %v1020_v22  ;;  %v2036_v38 = vld [vmem:[#allocation2] sm:$0x3f] }
 0x18a   :  { %v1239_v34 = vcombine.low %v1231_v20, %v1238_v19  ;;  %v1255_v58 = vcombine.low %v1247_v15, %v1254_v31  ;;  %v3643_v28 = vpack.c.bf16 %v1103_v56, %v1086_v42  ;;  %v3638_v0 = vpack.c.bf16 %v1098_v9, %v5323_v14 }
 0x18b   :  { %v1270_v39 = vrot.slane %v1132_v26, %v7029_v44  ;;  %v1286_v62 = vrot.slane %v1135_v24, %v7029_v44  ;;  %v1077_v1 = vadd.f32 %v1020_v22, %v5332_v29  ;;  %v3639_v19 = vpack.c.bf16 %v1099_v16, %v5326_v25  ;;  %1297 = vst [vmem:[#allocation3 + $0x6] sm:$0x3f] %v1191_v60 }
 0x18c   :  { %1300 = vst [vmem:[#allocation3 + $0x18] sm:$0x3f] %v1239_v34  ;;  %1301 = vst [vmem:[#allocation3 + $0x1e] sm:$0x3f] %v1255_v58  ;;  %v1263_v48 = vrot.slane %v3642_v13, %v7029_v44  ;;  %v1279_v33 = vrot.slane %v3643_v28, %v7029_v44  ;;  %v1079_v27 = vadd.f32 %v1049_v12, %v5332_v29  ;;  %v5371_v29 = vld [vmem:[%s6735_s10] sm:$0x3f]  ;;  %v2037_v50 = vunpack.c.l.bf16 %v2036_v38 }
 0x18d   :  { %v1120_v17 = vpack.c.bf16 %v1077_v1, %v1077_v1  ;;  %v1199_v31 = vrot.slane %v3638_v0, %v7029_v44  ;;  %v1215_v36 = vrot.slane %v3639_v19, %v7029_v44  ;;  %v5375_v32 = vrot.slane %v5371_v29, %v5256_v5  ;;  %s4660_s10 = smov [#allocation16]  }
 0x18e   :  { %v1271_v46 = vcombine.low %v1263_v48, %v1270_v39  ;;  %v1287_v14 = vcombine.low %v1279_v33, %v1286_v62  ;;  %v1123_v9 = vpack.c.bf16 %v1079_v27, %v1079_v27  ;;  %v5379_v42 = vrot.slane %v5371_v29, %v5259_v7  ;;  %s3534_s3 = sshll.u32 %s4660_s10, 4  ;;  %s3535_s3 = int_to_ptr.vmem [resolvable:$true] %s3534_s3 }
 0x18f   :  { %v1206_v18 = vrot.slane %v1120_v17, %v7029_v44  ;;  %7031 = vst [vmem:[#allocation31_spill] sm:$0xff] %v5375_v32  ;;  %v1417_v0 = vsub.s32 3, %v7025_v3  ;;  %v5386_v39 = vrot.slane %v5371_v29, %v5270_v21  ;;  %v2057_v33 = vrot.slane %v2036_v38, 4  ;;  %s4541_s4 = scalar_lea.vmem %s3535_s3, 256  ;;  %p4546_p1 = scmp.lt.s32.totalorder %s3535_s3, %s3535_s3 }
 0x190   :  { %1302 = vst [vmem:[#allocation3 + $0x24] sm:$0x3f] %v1271_v46  ;;  %1303 = vst [vmem:[#allocation3 + $0x2a] sm:$0x3f] %v1287_v14  ;;  %v1222_v25 = vrot.slane %v1123_v9, %v7029_v44  ;;  %v2046_v44 = vrot.slane %v2036_v38, 2  ;;  %v2303_v38 = vsel %vm2301_vm7, 1, %v7008_v49  ;;  %p4542_p0 = scmp.ne.s32.totalorder %s3535_s3, %s4541_s4  ;;  %p4547_p2 = scmp.lt.s32.totalorder %s4541_s4, %s4541_s4 }
 0x191   :  { %v1207_v16 = vcombine.low %v1199_v31, %v1206_v18  ;;  %v5389_v1 = vrot.slane %v5371_v29, %v1417_v0  ;;  %v2059_v31 = vunpack.c.l.bf16 %v2057_v33 }
 0x192   :  { %v1223_v22 = vcombine.low %v1215_v36, %v1222_v25  ;;  %v2048_v34 = vunpack.c.l.bf16 %v2046_v44  ;;  %v5393_v25 = vpop.permute.xlu0 %2109  ;;  %p4548_p3 = por %p4547_p2, %p4546_p1 }
 0x193   :  { %1298 = vst [vmem:[#allocation3 + $0xc] sm:$0x3f] %v1207_v16  ;;  %7032 = vst [vmem:[#allocation32_spill] sm:$0xff] %v5393_v25  ;;  %vm2111_vm11 = vcmp.eq.s32.totalorder %v5393_v25, 1  ;;  %v5646_v25 = vld [vmem:[#allocation15 + $0x218] ss:$24 sps:$4 sm:$0xff]  }
 0x194   :  { %1299 = vst [vmem:[#allocation3 + $0x12] sm:$0x3f] %v1223_v22  ;;  %v2312_v22 = vsel %vm2302_vm6, 1, %v7008_v49  ;;  %vm3744_vm12 = vmpackc.low %vm2111_vm11, %vm2111_vm11  ;;  %p4549_p4 = pnand %p4548_p3, %p4542_p0 }
 0x195   :  { %2314 = vperm.xlu1 %3858, %v2312_v22   ;;  %7087 = vst [vmem:[#allocation71_spill] sm:$0xff] %v5646_v25 }
 0x197   :  { %v2067_v27 = vld [vmem:[#allocation3 + $0x2a] sm:$0x3f] }
 0x198   :  { %v2068_v14 = vunpack.c.l.bf16 %v2067_v27 }
 0x199   :  { %2305 = vperm.xlu1 %3858, %v2303_v38  }
 0x1b6   :  { %v1947_v20 = vpop.f32.mrb[20].mxu1 }
 0x1b7   :  { %v1948_v15 = vadd.f32 %v1947_v20, %v5375_v32  ;;  %v1949_v30 = vpop.f32.mrb[21].mxu1  ;;  %v5399_v20 = vpop.permute.xlu0 %2101 }
 0x1b8   :  { %v1950_v40 = vadd.f32 %v1949_v30, %v5379_v42  ;;  %v1951_v23 = vpop.f32.mrb[22].mxu1  ;;  %7033 = vst [vmem:[#allocation33_spill] sm:$0xff] %v5399_v20  ;;  %vm2103_vm9 = vcmp.eq.s32.totalorder %v5399_v20, 1  ;;  %v5643_v20 = vld [vmem:[#allocation15 + $0x21c] ss:$24 sps:$4 sm:$0xff]  }
 0x1b9   :  { %v2038_v35 = vadd.f32 %v2037_v50, %v1948_v15  ;;  %v1952_v56 = vpop.f32.mrb[23].mxu1  ;;  %vm5437_vm13 = vmpackc.low %vm2103_vm9, %vm2103_vm9  ;;  %7086 = vst [vmem:[#allocation70_spill] sm:$0xff] %v5643_v20 }
 0x1ba   :  { %v2049_v5 = vadd.f32 %v2048_v34, %v1950_v40  ;;  %v2512_v40 = vsel %vm2510_vm8, 1, %v7008_v49 }
 0x1bb   :  { %v3740_v58 = vmul.f32 -1.442695, %v2038_v35  ;;  %2514 = vperm.xlu1 %3858, %v2512_v40   ;;  %v7036_v40 = vld [vmem:[#allocation39_spill] sm:$0xff] }
 0x1bc   :  { %v3741_v60 = vmul.f32 -1.442695, %v2049_v5 }
 0x1bd   :  { %4035 = vpow2.f32 %v3740_v58  ;;  %v2721_v58 = vsel %vm2719_vm10, 1, %v7008_v49 }
 0x1be   :  { %v1988_v26 = vpop.f32.mrb[20].mxu0  ;;  %4037 = vpow2.f32 %v3741_v60  ;;  %v2077_v60 = vrot.slane %v2067_v27, 2 }
 0x1bf   :  { %v1990_v24 = vpop.f32.mrb[21].mxu0  ;;  %v1989_v48 = vadd.f32 %v1988_v26, %v5386_v39  ;;  %2723 = vperm.xlu1 %3858, %v2721_v58   ;;  %v1421_v26 = vsub.s32 4, %v7025_v3  ;;  %v7038_v58 = vld [vmem:[#allocation42_spill] sm:$0xff] }
 0x1c0   :  { %v1992_v7 = vpop.f32.mrb[22].mxu0  ;;  %v1991_v17 = vadd.f32 %v1990_v24, %v5389_v1  ;;  %v1425_v24 = vsub.s32 5, %v7025_v3 }
 0x1c1   :  { %v1993_v13 = vpop.f32.mrb[23].mxu0  ;;  %v5415_v45 = vrot.slane %v5371_v29, %v1421_v26  ;;  %v5457_v26 = vld [vmem:[#allocation15 + $0x30] ss:$24 sps:$4 sm:$0xff]  }
 0x1c2   :  { %v2069_v18 = vadd.f32 %v2068_v14, %v1991_v17  ;;  %v5418_v7 = vrot.slane %v5371_v29, %v1425_v24  ;;  %v5460_v24 = vld [vmem:[#allocation15 + $0x64] ss:$24 sps:$4 sm:$0xff]  }
 0x1c4   :  { %v3742_v21 = vmul.f32 -1.442695, %v2069_v18 }
 0x1c7   :  { %v4036_v28 = vpop.eup %4035 }
 0x1c8   :  { %v2042_v12 = vadd.f32 1.0, %v4036_v28  ;;  %v4038_v62 = vpop.eup %4037 }
 0x1c9   :  { %v2053_v19 = vadd.f32 1.0, %v4038_v62 }
 0x1ca   :  { %4039 = vrcp.f32 %v2042_v12  ;;  %v2079_v12 = vunpack.c.l.bf16 %v2077_v60  ;;  %v5465_v60 = vld [vmem:[#allocation15 + $0x60] ss:$24 sps:$4 sm:$0xff]  }
 0x1cb   :  { %4041 = vrcp.f32 %v2053_v19 }
 0x1d4   :  { %v4040_v46 = vpop.eup %4039 }
 0x1d5   :  { %v2056_v9 = vmul.f32 %v4040_v46, %v1989_v48  ;;  %v4042_v16 = vpop.eup %4041  ;;  %v2088_v46 = vrot.slane %v2067_v27, 4 }
 0x1d6   :  { %v2062_v44 = vsub.f32 1.0, %v4042_v16  ;;  %v2064_v30 = vmul.f32 0.0, %v4042_v16 }
 0x1d7   :  { %v2060_v36 = vadd.f32 %v2059_v31, %v2056_v9  ;;  %v2090_v14 = vunpack.c.l.bf16 %v2088_v46  ;;  %v5561_v46 = vld [vmem:[#allocation15 + $0x2a0] ss:$24 sps:$4 sm:$0xff]  }
 0x1d9   :  { %4043 = vtanh.f32 %v2060_v36 }
 0x1da   :  { %4045 = vpow2.f32 %v3742_v21 }
 0x1e3   :  { %v4044_v15 = vpop.eup %4043 }
 0x1e4   :  { %v2063_v50 = vmul.f32 %v4044_v15, %v2062_v44  ;;  %v4046_v35 = vpop.eup %4045 }
 0x1e5   :  { %v2073_v5 = vadd.f32 1.0, %v4046_v35  ;;  %v5449_v35 = vld [vmem:[#allocation15] ss:$24 sps:$4 sm:$0xff]  }
 0x1e6   :  { %v2065_v23 = vadd.f32 %v2064_v30, %v2063_v50  ;;  %v5604_v30 = vld [vmem:[#allocation15 + $0xc8] ss:$24 sps:$4 sm:$0xff]  }
 0x1e7   :  { %4047 = vrcp.f32 %v2073_v5  ;;  %v7039_v5 = vld [vmem:[#allocation43_spill] sm:$0xff]  ;;  %7073 = vst [vmem:[#allocation57_spill] sm:$0xff] %v5604_v30 }
 0x1e8   :  { %v5407_v56 = vsel %vm2103_vm9, %v2065_v23, 0.0  ;;  %v5427_v27 = vpack.c.bf16 %v2065_v23, %v2065_v23  ;;  %v7037_v23 = vld [vmem:[#allocation41_spill] sm:$0xff] }
 0x1e9   :  { %v2105_v34 = vpack.c.bf16 %v5407_v56, %v5407_v56 }
 0x1eb   :  { %2106 = vst [vmem:[#allocation16] sm:$0x3] %v2105_v34  ;;  %v5452_v34 = vld [vmem:[#allocation15 + $0x34] ss:$24 sps:$4 sm:$0xff]  }
 0x1f1   :  { %v4048_v19 = vpop.eup %4047 }
 0x1f6   :  { %v2029_v13 = vpop.f32.mrb[24].mxu1 }
 0x1f7   :  { %v2030_v28 = vadd.f32 %v2029_v13, %v5415_v45  ;;  %v2031_v49 = vpop.f32.mrb[25].mxu1  ;;  %v5468_v13 = vld [vmem:[#allocation15 + $0x94] ss:$24 sps:$4 sm:$0xff]  }
 0x1f8   :  { %v2032_v0 = vadd.f32 %v2031_v49, %v5418_v7  ;;  %v2033_v62 = vpop.f32.mrb[26].mxu1  ;;  %v5540_v49 = vld [vmem:[#allocation15 + $0x244] ss:$24 sps:$4 sm:$0xff]  }
 0x1f9   :  { %v2080_v48 = vadd.f32 %v2079_v12, %v2030_v28  ;;  %v2034_v33 = vpop.f32.mrb[27].mxu1  ;;  %v5473_v28 = vld [vmem:[#allocation15 + $0x90] ss:$24 sps:$4 sm:$0xff]   ;;  %v5476_v12 = vld [vmem:[#allocation15 + $0xc4] ss:$24 sps:$4 sm:$0xff]   ;;  %7048 = vst [vmem:[#allocation30_spill] sm:$0xff] %v5540_v49 }
 0x1fa   :  { %v2087_v17 = vmul.f32 %v4048_v19, %v2032_v0  ;;  %v5545_v0 = vld [vmem:[#allocation15 + $0x240] ss:$24 sps:$4 sm:$0xff]   ;;  %v5548_v62 = vld [vmem:[#allocation15 + $0x274] ss:$24 sps:$4 sm:$0xff]   ;;  %v5556_v33 = vld [vmem:[#allocation15 + $0x2a4] ss:$24 sps:$4 sm:$0xff]  }
 0x1fb   :  { %v3743_v3 = vmul.f32 -1.442695, %v2080_v48  ;;  %7051 = vst [vmem:[#allocation39_spill] sm:$0xff] %v5545_v0  ;;  %7052 = vst [vmem:[#allocation41_spill] sm:$0xff] %v5548_v62  ;;  %v7054_v19 = vld [vmem:[#allocation48_spill] sm:$0xff] }
 0x1fc   :  { %v2091_v29 = vadd.f32 %v2090_v14, %v2087_v17  ;;  %v5553_v48 = vld [vmem:[#allocation15 + $0x270] ss:$24 sps:$4 sm:$0xff]   ;;  %7056 = vst [vmem:[#allocation43_spill] sm:$0xff] %v5556_v33  ;;  %v5564_v14 = vld [vmem:[#allocation15 + $0x2d4] ss:$24 sps:$4 sm:$0xff]  }
 0x1fd   :  { %4049 = vpow2.f32 %v3743_v3  ;;  %7055 = vst [vmem:[#allocation42_spill] sm:$0xff] %v5553_v48  ;;  %v7057_v17 = vld [vmem:[#allocation49_spill] sm:$0xff]  ;;  %v7058_v3 = vld [vmem:[#allocation50_spill] sm:$0xff] }
 0x207   :  { %v4050_v9 = vpop.eup %4049 }
 0x208   :  { %v2084_v31 = vadd.f32 1.0, %v4050_v9  ;;  %v7061_v9 = vld [vmem:[#allocation51_spill] sm:$0xff] }
 0x20a   :  { %4051 = vrcp.f32 %v2084_v31  ;;  %v5568_v31 = vld [vmem:[#allocation15 + $0xc] ss:$24 sps:$4 sm:$0xff]  }
 0x20b   :  { %4053 = vtanh.f32 %v2091_v29  ;;  %v5571_v29 = vld [vmem:[#allocation15 + $0x2d0] ss:$24 sps:$4 sm:$0xff]  }
 0x214   :  { %v4052_v18 = vpop.eup %4051 }
 0x215   :  { %v2093_v36 = vsub.f32 1.0, %v4052_v18  ;;  %v4054_v21 = vpop.eup %4053  ;;  %v2095_v22 = vmul.f32 0.0, %v4052_v18  ;;  %v5574_v18 = vld [vmem:[#allocation15 + $0x14] ss:$24 sps:$4 sm:$0xff]  }
 0x216   :  { %7064 = vst [vmem:[#allocation48_spill] sm:$0xff] %v5574_v18 }
 0x217   :  { %v2094_v16 = vmul.f32 %v4054_v21, %v2093_v36  ;;  %v5580_v36 = vld [vmem:[#allocation15 + $0x8] ss:$24 sps:$4 sm:$0xff]   ;;  %v5583_v21 = vld [vmem:[#allocation15 + $0x3c] ss:$24 sps:$4 sm:$0xff]  }
 0x218   :  { %7065 = vst [vmem:[#allocation49_spill] sm:$0xff] %v5580_v36  ;;  %7066 = vst [vmem:[#allocation50_spill] sm:$0xff] %v5583_v21 }
 0x219   :  { %v2096_v38 = vadd.f32 %v2095_v22, %v2094_v16  ;;  %v5586_v16 = vld [vmem:[#allocation15 + $0x38] ss:$24 sps:$4 sm:$0xff]   ;;  %v5589_v22 = vld [vmem:[#allocation15 + $0x6c] ss:$24 sps:$4 sm:$0xff]  }
 0x21a   :  { %7067 = vst [vmem:[#allocation51_spill] sm:$0xff] %v5586_v16  ;;  %7068 = vst [vmem:[#allocation52_spill] sm:$0xff] %v5589_v22 }
 0x21b   :  { %v3745_v44 = vpack.c.bf16 %v2096_v38, %v2096_v38  ;;  %v5425_v15 = vsel %vm2111_vm11, %v2096_v38, 0.0  ;;  %v5592_v38 = vld [vmem:[#allocation15 + $0x68] ss:$24 sps:$4 sm:$0xff]  }
 0x21c   :  { %v2113_v50 = vpack.c.bf16 %v5425_v15, %v5425_v15  ;;  %7069 = vst [vmem:[#allocation53_spill] sm:$0xff] %v5592_v38 }
 0x21d   :  { %3746 = vmatprep.mubr.msk.bf16.mxu0 %vm3744_vm12, %v3745_v44  ;;  %3752 = vmatprep.mubr.msk.bf16.mxu1 %vm3744_vm12, %v3745_v44 }
 0x21e   :  { %3749 = vmatmul.mubr.msk.bf16.vlgmr.msra.gmra.mrb[24].mxu0 %vm5437_vm13, %v5427_v27  ;;  %3755 = vmatmul.mubr.msk.bf16.vlgmr.msra.gmra.mrb[28].mxu1 %vm5437_vm13, %v5427_v27  ;;  %2115 = vst [vmem:[#allocation17 + $0xe] sm:$0x3] %v2113_v50  ;;  %v5601_v50 = vld [vmem:[#allocation15 + $0xcc] ss:$24 sps:$4 sm:$0xff]  }
 0x21f   :  { %2199 = vmatpush1.bf16.msra.mxu0 %v7036_v40  ;;  %3758 = vmatprep.mubr.msk.bf16.mxu0 %vm3744_vm12, %v3745_v44  ;;  %v5595_v44 = vld [vmem:[#allocation15 + $0x9c] ss:$24 sps:$4 sm:$0xff]   ;;  %7072 = vst [vmem:[#allocation56_spill] sm:$0xff] %v5601_v50 }
 0x220   :  { %2200 = vmatprep.subr.bf16.mxu0 %v7037_v23  ;;  %2326 = vmatpush1.bf16.msra.mxu1 %v5449_v35  ;;  %7070 = vst [vmem:[#allocation54_spill] sm:$0xff] %v5595_v44  ;;  %v5607_v40 = vld [vmem:[#allocation15 + $0xfc] ss:$24 sps:$4 sm:$0xff]   ;;  %v5610_v23 = vld [vmem:[#allocation15 + $0xf8] ss:$24 sps:$4 sm:$0xff]  }
 0x221   :  { %2327 = vmatprep.subr.bf16.mxu1 %v5452_v34  ;;  %7074 = vst [vmem:[#allocation58_spill] sm:$0xff] %v5607_v40  ;;  %7075 = vst [vmem:[#allocation59_spill] sm:$0xff] %v5610_v23 }
 0x223   :  { %2201 = vmatpush1.bf16.msra.mxu0 %v7038_v58  ;;  %v5613_v58 = vld [vmem:[#allocation15 + $0x12c] ss:$24 sps:$4 sm:$0xff]  }
 0x224   :  { %2202 = vmatprep.subr.bf16.mxu0 %v7039_v5  ;;  %2328 = vmatpush1.bf16.msra.mxu1 %v5457_v26  ;;  %7076 = vst [vmem:[#allocation60_spill] sm:$0xff] %v5613_v58  ;;  %v5616_v5 = vld [vmem:[#allocation15 + $0x128] ss:$24 sps:$4 sm:$0xff]  }
 0x225   :  { %2329 = vmatprep.subr.bf16.mxu1 %v5460_v24  ;;  %7077 = vst [vmem:[#allocation61_spill] sm:$0xff] %v5616_v5 }
 0x227   :  { %2203 = vmatpush1.bf16.msra.mxu0 %v5107_v11  ;;  %v5481_v11 = vld [vmem:[#allocation15 + $0xc0] ss:$24 sps:$4 sm:$0xff]  }
 0x228   :  { %2204 = vmatprep.subr.bf16.mxu0 %v5110_v47  ;;  %2330 = vmatpush1.bf16.msra.mxu1 %v5465_v60  ;;  %v5484_v47 = vld [vmem:[#allocation15 + $0xf4] ss:$24 sps:$4 sm:$0xff]  }
 0x229   :  { %2331 = vmatprep.subr.bf16.mxu1 %v5468_v13 }
 0x22b   :  { %2205 = vmatpush1.bf16.msra.mxu0 %v5115_v43  ;;  %v5489_v43 = vld [vmem:[#allocation15 + $0xf0] ss:$24 sps:$4 sm:$0xff]  }
 0x22c   :  { %2206 = vmatprep.subr.bf16.mxu0 %v5119_v41  ;;  %2332 = vmatpush1.bf16.msra.mxu1 %v5473_v28  ;;  %v5492_v41 = vld [vmem:[#allocation15 + $0x124] ss:$24 sps:$4 sm:$0xff]  }
 0x22d   :  { %2333 = vmatprep.subr.bf16.mxu1 %v5476_v12 }
 0x22f   :  { %2207 = vmatpush1.bf16.msra.mxu0 %v5123_v37  ;;  %v5497_v37 = vld [vmem:[#allocation15 + $0x120] ss:$24 sps:$4 sm:$0xff]  }
 0x230   :  { %2208 = vmatprep.subr.bf16.mxu0 %v5127_v52  ;;  %2334 = vmatpush1.bf16.msra.mxu1 %v5481_v11  ;;  %v5500_v52 = vld [vmem:[#allocation15 + $0x154] ss:$24 sps:$4 sm:$0xff]  }
 0x231   :  { %2335 = vmatprep.subr.bf16.mxu1 %v5484_v47 }
 0x233   :  { %2209 = vmatpush1.bf16.msra.mxu0 %v5131_v51  ;;  %v5505_v51 = vld [vmem:[#allocation15 + $0x150] ss:$24 sps:$4 sm:$0xff]  }
 0x234   :  { %2210 = vmatprep.subr.bf16.mxu0 %v5135_v53  ;;  %2336 = vmatpush1.bf16.msra.mxu1 %v5489_v43  ;;  %v5508_v53 = vld [vmem:[#allocation15 + $0x184] ss:$24 sps:$4 sm:$0xff]  }
 0x235   :  { %2337 = vmatprep.subr.bf16.mxu1 %v5492_v41 }
 0x237   :  { %2211 = vmatpush1.bf16.msra.mxu0 %v5139_v54  ;;  %v5513_v54 = vld [vmem:[#allocation15 + $0x180] ss:$24 sps:$4 sm:$0xff]  }
 0x238   :  { %2212 = vmatprep.subr.bf16.mxu0 %v5143_v55  ;;  %2338 = vmatpush1.bf16.msra.mxu1 %v5497_v37  ;;  %7040 = vst [vmem:[#allocation34_spill] sm:$0xff] %v5513_v54  ;;  %v5516_v55 = vld [vmem:[#allocation15 + $0x1b4] ss:$24 sps:$4 sm:$0xff]  }
 0x239   :  { %2339 = vmatprep.subr.bf16.mxu1 %v5500_v52  ;;  %7041 = vst [vmem:[#allocation35_spill] sm:$0xff] %v5516_v55 }
 0x23b   :  { %2213 = vmatpush1.bf16.msra.mxu0 %v5147_v57  ;;  %v5521_v57 = vld [vmem:[#allocation15 + $0x1b0] ss:$24 sps:$4 sm:$0xff]  }
 0x23c   :  { %2214 = vmatprep.subr.bf16.mxu0 %v5151_v59  ;;  %2340 = vmatpush1.bf16.msra.mxu1 %v5505_v51  ;;  %7042 = vst [vmem:[#allocation36_spill] sm:$0xff] %v5521_v57  ;;  %v5524_v59 = vld [vmem:[#allocation15 + $0x1e4] ss:$24 sps:$4 sm:$0xff]  }
 0x23d   :  { %2341 = vmatprep.subr.bf16.mxu1 %v5508_v53  ;;  %7043 = vst [vmem:[#allocation29_spill] sm:$0xff] %v5524_v59 }
 0x23f   :  { %2215 = vmatpush1.bf16.msra.mxu0 %v5155_v61  ;;  %v5529_v61 = vld [vmem:[#allocation15 + $0x1e0] ss:$24 sps:$4 sm:$0xff]  }
 0x240   :  { %2216 = vmatprep.subr.bf16.mxu0 %v5159_v63  ;;  %2342 = vmatpush1.bf16.msra.mxu1 %v5513_v54  ;;  %7044 = vst [vmem:[#allocation37_spill] sm:$0xff] %v5529_v61  ;;  %v5532_v63 = vld [vmem:[#allocation15 + $0x214] ss:$24 sps:$4 sm:$0xff]  }
 0x241   :  { %2343 = vmatprep.subr.bf16.mxu1 %v5516_v55  ;;  %7045 = vst [vmem:[#allocation38_spill] sm:$0xff] %v5532_v63 }
 0x243   :  { %2217 = vmatpush1.bf16.msra.mxu0 %v5163_v2  ;;  %v7046_v2 = vld [vmem:[#allocation44_spill] sm:$0xff] }
 0x244   :  { %2218 = vmatprep.subr.bf16.mxu0 %v5167_v4  ;;  %2344 = vmatpush1.bf16.msra.mxu1 %v5521_v57  ;;  %v5537_v4 = vld [vmem:[#allocation15 + $0x210] ss:$24 sps:$4 sm:$0xff]   ;;  %7059 = vst [vmem:[#allocation44_spill] sm:$0xff] %v5561_v46 }
 0x245   :  { %2345 = vmatprep.subr.bf16.mxu1 %v5524_v59  ;;  %7047 = vst [vmem:[#allocation40_spill] sm:$0xff] %v5537_v4 }
 0x247   :  { %2219 = vmatpush1.bf16.msra.mxu0 %v5171_v6  ;;  %v7049_v6 = vld [vmem:[#allocation45_spill] sm:$0xff] }
 0x248   :  { %2220 = vmatprep.subr.bf16.mxu0 %v5175_v8  ;;  %2346 = vmatpush1.bf16.msra.mxu1 %v5529_v61  ;;  %v7050_v8 = vld [vmem:[#allocation46_spill] sm:$0xff]  ;;  %7060 = vst [vmem:[#allocation45_spill] sm:$0xff] %v5564_v14 }
 0x249   :  { %2347 = vmatprep.subr.bf16.mxu1 %v5532_v63  ;;  %7062 = vst [vmem:[#allocation46_spill] sm:$0xff] %v5568_v31 }
 0x24b   :  { %2221 = vmatpush1.bf16.msra.mxu0 %v5179_v10  ;;  %v7053_v10 = vld [vmem:[#allocation47_spill] sm:$0xff] }
 0x24c   :  { %2222 = vmatprep.subr.bf16.mxu0 %v7046_v2  ;;  %2348 = vmatpush1.bf16.msra.mxu1 %v5537_v4  ;;  %7063 = vst [vmem:[#allocation47_spill] sm:$0xff] %v5571_v29  ;;  %v5619_v2 = vld [vmem:[#allocation15 + $0x15c] ss:$24 sps:$4 sm:$0xff]  }
 0x24d   :  { %2349 = vmatprep.subr.bf16.mxu1 %v5540_v49  ;;  %7078 = vst [vmem:[#allocation62_spill] sm:$0xff] %v5619_v2 }
 0x24f   :  { %2223 = vmatpush1.bf16.msra.mxu0 %v7049_v6  ;;  %v5622_v6 = vld [vmem:[#allocation15 + $0x158] ss:$24 sps:$4 sm:$0xff]  }
 0x250   :  { %2224 = vmatprep.subr.bf16.mxu0 %v7050_v8  ;;  %2350 = vmatpush1.bf16.msra.mxu1 %v5545_v0  ;;  %7079 = vst [vmem:[#allocation63_spill] sm:$0xff] %v5622_v6  ;;  %v5625_v8 = vld [vmem:[#allocation15 + $0x18c] ss:$24 sps:$4 sm:$0xff]  }
 0x251   :  { %2351 = vmatprep.subr.bf16.mxu1 %v5548_v62  ;;  %7080 = vst [vmem:[#allocation64_spill] sm:$0xff] %v5625_v8 }
 0x253   :  { %2225 = vmatpush1.bf16.msra.mxu0 %v7053_v10  ;;  %v5628_v10 = vld [vmem:[#allocation15 + $0x188] ss:$24 sps:$4 sm:$0xff]  }
 0x254   :  { %2226 = vmatprep.subr.bf16.mxu0 %v7054_v19  ;;  %2352 = vmatpush1.bf16.msra.mxu1 %v5553_v48  ;;  %7081 = vst [vmem:[#allocation65_spill] sm:$0xff] %v5628_v10  ;;  %v5631_v19 = vld [vmem:[#allocation15 + $0x1bc] ss:$24 sps:$4 sm:$0xff]  }
 0x255   :  { %2353 = vmatprep.subr.bf16.mxu1 %v5556_v33  ;;  %7082 = vst [vmem:[#allocation66_spill] sm:$0xff] %v5631_v19 }
 0x257   :  { %2227 = vmatpush1.bf16.msra.mxu0 %v7057_v17  ;;  %v5634_v17 = vld [vmem:[#allocation15 + $0x1b8] ss:$24 sps:$4 sm:$0xff]  }
 0x258   :  { %2228 = vmatprep.subr.bf16.mxu0 %v7058_v3  ;;  %2354 = vmatpush1.bf16.msra.mxu1 %v5561_v46  ;;  %7083 = vst [vmem:[#allocation67_spill] sm:$0xff] %v5634_v17  ;;  %v5637_v3 = vld [vmem:[#allocation15 + $0x1ec] ss:$24 sps:$4 sm:$0xff]  }
 0x259   :  { %2355 = vmatprep.subr.bf16.mxu1 %v5564_v14  ;;  %7084 = vst [vmem:[#allocation68_spill] sm:$0xff] %v5637_v3 }
 0x25b   :  { %2229 = vmatpush1.bf16.msra.mxu0 %v7061_v9  ;;  %v5640_v9 = vld [vmem:[#allocation15 + $0x1e8] ss:$24 sps:$4 sm:$0xff]  }
 0x25c   :  { %2366 = vmatprep.subr.bf16.mxu0 %v5568_v31  ;;  %2356 = vmatpush1.bf16.msra.mxu1 %v5571_v29  ;;  %7085 = vst [vmem:[#allocation69_spill] sm:$0xff] %v5640_v9 }
 0x25d   :  { %2407 = vmatprep.subr.bf16.mxu1 %v5574_v18 }
 0x25e   :  { %3761 = vmatmul.mubr.msk.bf16.vlgmr.msra.gmra.mrb[28].mxu0 %vm5437_vm13, %v5427_v27  ;;  %v5598_v27 = vld [vmem:[#allocation15 + $0x98] ss:$24 sps:$4 sm:$0xff]  }
 0x25f   :  { %2367 = vmatpush1.bf16.msra.mxu0 %v5580_v36  ;;  %7071 = vst [vmem:[#allocation55_spill] sm:$0xff] %v5598_v27 }
 0x260   :  { %2368 = vmatprep.subr.bf16.mxu0 %v5583_v21  ;;  %v2271_v21 = vld [vmem:[#allocation3 + $0x24] sm:$0x3f] }
 0x263   :  { %2369 = vmatpush1.bf16.msra.mxu0 %v5586_v16 }
 0x264   :  { %2370 = vmatprep.subr.bf16.mxu0 %v5589_v22 }
 0x267   :  { %2371 = vmatpush1.bf16.msra.mxu0 %v5592_v38 }
 0x268   :  { %2372 = vmatprep.subr.bf16.mxu0 %v5595_v44 }
 0x26b   :  { %2373 = vmatpush1.bf16.msra.mxu0 %v5598_v27 }
 0x26c   :  { %2374 = vmatprep.subr.bf16.mxu0 %v5601_v50 }
 0x26f   :  { %2375 = vmatpush1.bf16.msra.mxu0 %v5604_v30 }
 0x270   :  { %2376 = vmatprep.subr.bf16.mxu0 %v5607_v40 }
 0x273   :  { %2377 = vmatpush1.bf16.msra.mxu0 %v5610_v23 }
 0x274   :  { %2378 = vmatprep.subr.bf16.mxu0 %v5613_v58 }
 0x277   :  { %2379 = vmatpush1.bf16.msra.mxu0 %v5616_v5 }
 0x278   :  { %2380 = vmatprep.subr.bf16.mxu0 %v5619_v2 }
 0x27b   :  { %2381 = vmatpush1.bf16.msra.mxu0 %v5622_v6 }
 0x27c   :  { %2382 = vmatprep.subr.bf16.mxu0 %v5625_v8 }
 0x27f   :  { %2383 = vmatpush1.bf16.msra.mxu0 %v5628_v10 }
 0x280   :  { %2384 = vmatprep.subr.bf16.mxu0 %v5631_v19  ;;  %v5649_v19 = vld [vmem:[#allocation15 + $0x24c] ss:$24 sps:$4 sm:$0xff]  }
 0x281   :  { %7088 = vst [vmem:[#allocation72_spill] sm:$0xff] %v5649_v19 }
 0x283   :  { %2385 = vmatpush1.bf16.msra.mxu0 %v5634_v17  ;;  %v5652_v17 = vld [vmem:[#allocation15 + $0x248] ss:$24 sps:$4 sm:$0xff]  }
 0x284   :  { %2386 = vmatprep.subr.bf16.mxu0 %v5637_v3  ;;  %7089 = vst [vmem:[#allocation73_spill] sm:$0xff] %v5652_v17  ;;  %v5655_v3 = vld [vmem:[#allocation15 + $0x27c] ss:$24 sps:$4 sm:$0xff]  }
 0x285   :  { %7090 = vst [vmem:[#allocation74_spill] sm:$0xff] %v5655_v3 }
 0x287   :  { %2387 = vmatpush1.bf16.msra.mxu0 %v5640_v9  ;;  %v5658_v9 = vld [vmem:[#allocation15 + $0x278] ss:$24 sps:$4 sm:$0xff]  }
 0x288   :  { %2388 = vmatprep.subr.bf16.mxu0 %v5643_v20  ;;  %7091 = vst [vmem:[#allocation75_spill] sm:$0xff] %v5658_v9  ;;  %v5661_v20 = vld [vmem:[#allocation15 + $0x2ac] ss:$24 sps:$4 sm:$0xff]  }
 0x289   :  { %7092 = vst [vmem:[#allocation76_spill] sm:$0xff] %v5661_v20 }
 0x28b   :  { %2389 = vmatpush1.bf16.msra.mxu0 %v5646_v25  ;;  %v5664_v25 = vld [vmem:[#allocation15 + $0x2a8] ss:$24 sps:$4 sm:$0xff]  }
 0x28c   :  { %2390 = vmatprep.subr.bf16.mxu0 %v5649_v19  ;;  %7093 = vst [vmem:[#allocation77_spill] sm:$0xff] %v5664_v25  ;;  %v5667_v19 = vld [vmem:[#allocation15 + $0x2dc] ss:$24 sps:$4 sm:$0xff]  }
 0x28d   :  { %7094 = vst [vmem:[#allocation78_spill] sm:$0xff] %v5667_v19 }
 0x28f   :  { %2391 = vmatpush1.bf16.msra.mxu0 %v5652_v17  ;;  %v5670_v17 = vld [vmem:[#allocation15 + $0x2d8] ss:$24 sps:$4 sm:$0xff]  }
 0x290   :  { %2392 = vmatprep.subr.bf16.mxu0 %v5655_v3  ;;  %7095 = vst [vmem:[#allocation79_spill] sm:$0xff] %v5670_v17  ;;  %v5673_v3 = vld [vmem:[#allocation15 + $0x4] ss:$24 sps:$4 sm:$0xff]  }
 0x291   :  { %7096 = vst [vmem:[#allocation80_spill] sm:$0xff] %v5673_v3 }
 0x293   :  { %2393 = vmatpush1.bf16.msra.mxu0 %v5658_v9  ;;  %v2240_v9 = vld [vmem:[#allocation2 + $0x6] sm:$0x3f] }
 0x294   :  { %2394 = vmatprep.subr.bf16.mxu0 %v5661_v20  ;;  %v2250_v20 = vrot.slane %v2240_v9, 2  ;;  %v2241_v2 = vunpack.c.l.bf16 %v2240_v9 }
 0x296   :  { %v2252_v50 = vunpack.c.l.bf16 %v2250_v20 }
 0x297   :  { %2395 = vmatpush1.bf16.msra.mxu0 %v5664_v25 }
 0x298   :  { %2396 = vmatprep.subr.bf16.mxu0 %v5667_v19 }
 0x29b   :  { %2397 = vmatpush1.bf16.msra.mxu0 %v5670_v17 }
 0x29c   :  { %2534 = vmatprep.subr.bf16.mxu0 %v5673_v3 }
 0x2f1   :  { %v2150_v10 = vpop.f32.mrb[24].mxu0  ;;  %v2191_v8 = vpop.f32.mrb[28].mxu1 }
 0x2f2   :  { %v2151_v6 = vadd.f32 %v2150_v10, %v5375_v32  ;;  %v2152_v25 = vpop.f32.mrb[25].mxu0  ;;  %v2193_v5 = vpop.f32.mrb[29].mxu1  ;;  %v2261_v32 = vrot.slane %v2240_v9, 4 }
 0x2f3   :  { %v2153_v58 = vadd.f32 %v2152_v25, %v5379_v42  ;;  %v2154_v19 = vpop.f32.mrb[26].mxu0  ;;  %v2195_v23 = vpop.f32.mrb[30].mxu1  ;;  %v2194_v25 = vadd.f32 %v2193_v5, %v5389_v1 }
 0x2f4   :  { %v2242_v40 = vadd.f32 %v2241_v2, %v2151_v6  ;;  %v2155_v30 = vpop.f32.mrb[27].mxu0  ;;  %v2196_v17 = vpop.f32.mrb[31].mxu1  ;;  %v2192_v23 = vadd.f32 %v2191_v8, %v5386_v39  ;;  %v2263_v20 = vunpack.c.l.bf16 %v2261_v32 }
 0x2f5   :  { %v2253_v44 = vadd.f32 %v2252_v50, %v2153_v58  ;;  %v2272_v30 = vunpack.c.l.bf16 %v2271_v21 }
 0x2f6   :  { %v3762_v27 = vmul.f32 -1.442695, %v2242_v40  ;;  %v5680_v40 = vpop.permute.xlu1 %2314 }
 0x2f7   :  { %v3763_v3 = vmul.f32 -1.442695, %v2253_v44  ;;  %v2273_v50 = vadd.f32 %v2272_v30, %v2194_v25  ;;  %7097 = vst [vmem:[#allocation81_spill] sm:$0xff] %v5680_v40  ;;  %vm2316_vm15 = vcmp.eq.s32.totalorder %v5680_v40, 1  ;;  %v5795_v40 = vld [vmem:[#allocation15 + $0x224] ss:$24 sps:$4 sm:$0xff]  }
 0x2f8   :  { %4055 = vpow2.f32 %v3762_v27  ;;  %7102 = vst [vmem:[#allocation86_spill] sm:$0xff] %v5795_v40 }
 0x2f9   :  { %4057 = vpow2.f32 %v3763_v3  ;;  %v3764_v44 = vmul.f32 -1.442695, %v2273_v50 }
 0x302   :  { %v4056_v38 = vpop.eup %4055 }
 0x303   :  { %v2246_v22 = vadd.f32 1.0, %v4056_v38  ;;  %v4058_v10 = vpop.eup %4057  ;;  %v5682_v38 = vpop.permute.xlu1 %2305 }
 0x304   :  { %v2257_v16 = vadd.f32 1.0, %v4058_v10  ;;  %7098 = vst [vmem:[#allocation82_spill] sm:$0xff] %v5682_v38  ;;  %vm2307_vm14 = vcmp.eq.s32.totalorder %v5682_v38, 1  ;;  %v2281_v10 = vrot.slane %v2271_v21, 2  ;;  %v5792_v38 = vld [vmem:[#allocation15 + $0x1f0] ss:$24 sps:$4 sm:$0xff]  }
 0x305   :  { %4059 = vrcp.f32 %v2246_v22  ;;  %7101 = vst [vmem:[#allocation85_spill] sm:$0xff] %v5792_v38 }
 0x306   :  { %4061 = vrcp.f32 %v2257_v16 }
 0x30f   :  { %v4060_v2 = vpop.eup %4059 }
 0x310   :  { %v2260_v6 = vmul.f32 %v4060_v2, %v2192_v23  ;;  %v4062_v22 = vpop.eup %4061  ;;  %v2283_v2 = vunpack.c.l.bf16 %v2281_v10 }
 0x311   :  { %v2266_v58 = vsub.f32 1.0, %v4062_v22  ;;  %v2268_v8 = vmul.f32 %v4062_v22, %v5407_v56 }
 0x312   :  { %v2264_v27 = vadd.f32 %v2263_v20, %v2260_v6 }
 0x314   :  { %4063 = vtanh.f32 %v2264_v27 }
 0x315   :  { %4065 = vpow2.f32 %v3764_v44 }
 0x31e   :  { %v4064_v19 = vpop.eup %4063 }
 0x31f   :  { %v2267_v5 = vmul.f32 %v4064_v19, %v2266_v58  ;;  %v4066_v32 = vpop.eup %4065  ;;  %v2292_v19 = vrot.slane %v2271_v21, 4 }
 0x320   :  { %v2277_v9 = vadd.f32 1.0, %v4066_v32 }
 0x321   :  { %v2269_v17 = vadd.f32 %v2268_v8, %v2267_v5  ;;  %v2294_v5 = vunpack.c.l.bf16 %v2292_v19  ;;  %v5736_v19 = vld [vmem:[#allocation15 + $0xa0] ss:$24 sps:$4 sm:$0xff]  }
 0x322   :  { %4067 = vrcp.f32 %v2277_v9 }
 0x323   :  { %v2308_v16 = vsel %vm2307_vm14, %v2269_v17, 0.0 }
 0x324   :  { %v2309_v3 = vpack.c.bf16 %v2308_v16, %v2308_v16 }
 0x326   :  { %2311 = vst [vmem:[#allocation16 + $0x2] sm:$0x3] %v2309_v3 }
 0x32c   :  { %v4068_v50 = vpop.eup %4067 }
 0x331   :  { %v2232_v25 = vpop.f32.mrb[28].mxu0 }
 0x332   :  { %v2233_v23 = vadd.f32 %v2232_v25, %v5415_v45  ;;  %v2234_v30 = vpop.f32.mrb[29].mxu0 }
 0x333   :  { %v2235_v6 = vadd.f32 %v2234_v30, %v5418_v7  ;;  %v2236_v20 = vpop.f32.mrb[30].mxu0 }
 0x334   :  { %v2284_v27 = vadd.f32 %v2283_v2, %v2233_v23  ;;  %v2237_v44 = vpop.f32.mrb[31].mxu0  ;;  %v5695_v23 = vsel %vm2307_vm14, %v2269_v17, %v5407_v56  ;;  %v5712_v56 = vld [vmem:[#allocation15 + $0x10] ss:$24 sps:$4 sm:$0xff]   ;;  %v5720_v17 = vld [vmem:[#allocation15 + $0x40] ss:$24 sps:$4 sm:$0xff]  }
 0x335   :  { %v2291_v22 = vmul.f32 %v4068_v50, %v2235_v6  ;;  %v5723_v44 = vld [vmem:[#allocation15 + $0x74] ss:$24 sps:$4 sm:$0xff]  }
 0x336   :  { %v3765_v58 = vmul.f32 -1.442695, %v2284_v27  ;;  %v5708_v27 = vpack.c.bf16 %v5695_v23, %v5695_v23 }
 0x337   :  { %v2295_v16 = vadd.f32 %v2294_v5, %v2291_v22  ;;  %v5728_v22 = vld [vmem:[#allocation15 + $0x70] ss:$24 sps:$4 sm:$0xff]   ;;  %v5739_v5 = vld [vmem:[#allocation15 + $0xd4] ss:$24 sps:$4 sm:$0xff]  }
 0x338   :  { %4069 = vpow2.f32 %v3765_v58  ;;  %v5731_v58 = vld [vmem:[#allocation15 + $0xa4] ss:$24 sps:$4 sm:$0xff]  }
 0x342   :  { %v4070_v8 = vpop.eup %4069 }
 0x343   :  { %v2288_v32 = vadd.f32 1.0, %v4070_v8  ;;  %v5744_v8 = vld [vmem:[#allocation15 + $0xd0] ss:$24 sps:$4 sm:$0xff]  }
 0x345   :  { %4071 = vrcp.f32 %v2288_v32  ;;  %v5747_v32 = vld [vmem:[#allocation15 + $0x104] ss:$24 sps:$4 sm:$0xff]  }
 0x346   :  { %4073 = vtanh.f32 %v2295_v16  ;;  %v5752_v16 = vld [vmem:[#allocation15 + $0x100] ss:$24 sps:$4 sm:$0xff]  }
 0x34f   :  { %v4072_v3 = vpop.eup %4071 }
 0x350   :  { %v2297_v9 = vsub.f32 1.0, %v4072_v3  ;;  %v4074_v10 = vpop.eup %4073  ;;  %v2299_v30 = vmul.f32 %v4072_v3, %v5425_v15  ;;  %v5755_v3 = vld [vmem:[#allocation15 + $0x134] ss:$24 sps:$4 sm:$0xff]  }
 0x352   :  { %v2298_v25 = vmul.f32 %v4074_v10, %v2297_v9  ;;  %v5760_v9 = vld [vmem:[#allocation15 + $0x130] ss:$24 sps:$4 sm:$0xff]   ;;  %v5763_v10 = vld [vmem:[#allocation15 + $0x164] ss:$24 sps:$4 sm:$0xff]  }
 0x354   :  { %v2300_v20 = vadd.f32 %v2299_v30, %v2298_v25  ;;  %v5768_v25 = vld [vmem:[#allocation15 + $0x160] ss:$24 sps:$4 sm:$0xff]   ;;  %v5771_v30 = vld [vmem:[#allocation15 + $0x194] ss:$24 sps:$4 sm:$0xff]  }
 0x356   :  { %v2317_v21 = vsel %vm2316_vm15, %v2300_v20, 0.0  ;;  %v5702_v2 = vsel %vm2316_vm15, %v2300_v20, %v5425_v15  ;;  %v5715_v15 = vld [vmem:[#allocation15 + $0x44] ss:$24 sps:$4 sm:$0xff]   ;;  %v5776_v20 = vld [vmem:[#allocation15 + $0x190] ss:$24 sps:$4 sm:$0xff]  }
 0x357   :  { %v2318_v6 = vpack.c.bf16 %v2317_v21, %v2317_v21  ;;  %v2324_v50 = vpack.c.bf16 %v5702_v2, %v5702_v2  ;;  %v5779_v21 = vld [vmem:[#allocation15 + $0x1c4] ss:$24 sps:$4 sm:$0xff]  }
 0x359   :  { %2320 = vst [vmem:[#allocation17 + $0xc] sm:$0x3] %v2318_v6  ;;  %2357 = vmatprep.mubr.bf16.mxu1 %v2324_v50  ;;  %2398 = vmatprep.mubr.bf16.mxu0 %v2324_v50  ;;  %v5784_v6 = vld [vmem:[#allocation15 + $0x1c0] ss:$24 sps:$4 sm:$0xff]  }
 0x35a   :  { %2358 = vmatmul.mubr.bf16.vlgmr.msra.gmra.mrb[32].mxu1 %v5708_v27  ;;  %2399 = vmatmul.mubr.bf16.vlgmr.msra.gmra.mrb[32].mxu0 %v5708_v27  ;;  %7099 = vst [vmem:[#allocation83_spill] sm:$0xff] %v5784_v6 }
 0x35b   :  { %2408 = vmatpush1.bf16.msra.mxu1 %v5712_v56  ;;  %2439 = vmatprep.mubr.bf16.mxu1 %v2324_v50  ;;  %v5787_v50 = vld [vmem:[#allocation15 + $0x1f4] ss:$24 sps:$4 sm:$0xff]  }
 0x35c   :  { %2409 = vmatprep.subr.bf16.mxu1 %v5715_v15  ;;  %2535 = vmatpush1.bf16.msra.mxu0 %v5449_v35  ;;  %7100 = vst [vmem:[#allocation84_spill] sm:$0xff] %v5787_v50 }
 0x35d   :  { %2536 = vmatprep.subr.bf16.mxu0 %v5452_v34 }
 0x35f   :  { %2410 = vmatpush1.bf16.msra.mxu1 %v5720_v17 }
 0x360   :  { %2411 = vmatprep.subr.bf16.mxu1 %v5723_v44  ;;  %2537 = vmatpush1.bf16.msra.mxu0 %v5457_v26 }
 0x361   :  { %2538 = vmatprep.subr.bf16.mxu0 %v5460_v24 }
 0x363   :  { %2412 = vmatpush1.bf16.msra.mxu1 %v5728_v22 }
 0x364   :  { %2413 = vmatprep.subr.bf16.mxu1 %v5731_v58  ;;  %2539 = vmatpush1.bf16.msra.mxu0 %v5465_v60 }
 0x365   :  { %2540 = vmatprep.subr.bf16.mxu0 %v5468_v13 }
 0x367   :  { %2414 = vmatpush1.bf16.msra.mxu1 %v5736_v19 }
 0x368   :  { %2415 = vmatprep.subr.bf16.mxu1 %v5739_v5  ;;  %2541 = vmatpush1.bf16.msra.mxu0 %v5473_v28 }
 0x369   :  { %2542 = vmatprep.subr.bf16.mxu0 %v5476_v12 }
 0x36b   :  { %2416 = vmatpush1.bf16.msra.mxu1 %v5744_v8 }
 0x36c   :  { %2417 = vmatprep.subr.bf16.mxu1 %v5747_v32  ;;  %2543 = vmatpush1.bf16.msra.mxu0 %v5481_v11 }
 0x36d   :  { %2544 = vmatprep.subr.bf16.mxu0 %v5484_v47 }
 0x36f   :  { %2418 = vmatpush1.bf16.msra.mxu1 %v5752_v16 }
 0x370   :  { %2419 = vmatprep.subr.bf16.mxu1 %v5755_v3  ;;  %2545 = vmatpush1.bf16.msra.mxu0 %v5489_v43 }
 0x371   :  { %2546 = vmatprep.subr.bf16.mxu0 %v5492_v41 }
 0x373   :  { %2420 = vmatpush1.bf16.msra.mxu1 %v5760_v9 }
 0x374   :  { %2421 = vmatprep.subr.bf16.mxu1 %v5763_v10  ;;  %2547 = vmatpush1.bf16.msra.mxu0 %v5497_v37 }
 0x375   :  { %2548 = vmatprep.subr.bf16.mxu0 %v5500_v52 }
 0x377   :  { %2422 = vmatpush1.bf16.msra.mxu1 %v5768_v25 }
 0x378   :  { %2423 = vmatprep.subr.bf16.mxu1 %v5771_v30  ;;  %2549 = vmatpush1.bf16.msra.mxu0 %v5505_v51 }
 0x379   :  { %2550 = vmatprep.subr.bf16.mxu0 %v5508_v53 }
 0x37b   :  { %2424 = vmatpush1.bf16.msra.mxu1 %v5776_v20 }
 0x37c   :  { %2425 = vmatprep.subr.bf16.mxu1 %v5779_v21  ;;  %2551 = vmatpush1.bf16.msra.mxu0 %v5513_v54  ;;  %v2480_v54 = vld [vmem:[#allocation3 + $0x1e] sm:$0x3f] }
 0x37d   :  { %2552 = vmatprep.subr.bf16.mxu0 %v5516_v55 }
 0x37f   :  { %2426 = vmatpush1.bf16.msra.mxu1 %v5784_v6  ;;  %v5800_v6 = vld [vmem:[#allocation15 + $0x220] ss:$24 sps:$4 sm:$0xff]  }
 0x380   :  { %2427 = vmatprep.subr.bf16.mxu1 %v5787_v50  ;;  %2553 = vmatpush1.bf16.msra.mxu0 %v5521_v57  ;;  %7103 = vst [vmem:[#allocation87_spill] sm:$0xff] %v5800_v6  ;;  %v5803_v50 = vld [vmem:[#allocation15 + $0x254] ss:$24 sps:$4 sm:$0xff]  }
 0x381   :  { %2554 = vmatprep.subr.bf16.mxu0 %v5524_v59  ;;  %7104 = vst [vmem:[#allocation88_spill] sm:$0xff] %v5803_v50 }
 0x383   :  { %2428 = vmatpush1.bf16.msra.mxu1 %v5792_v38  ;;  %v5808_v38 = vld [vmem:[#allocation15 + $0x250] ss:$24 sps:$4 sm:$0xff]  }
 0x384   :  { %2429 = vmatprep.subr.bf16.mxu1 %v5795_v40  ;;  %2555 = vmatpush1.bf16.msra.mxu0 %v5529_v61  ;;  %7105 = vst [vmem:[#allocation89_spill] sm:$0xff] %v5808_v38  ;;  %v5811_v40 = vld [vmem:[#allocation15 + $0x284] ss:$24 sps:$4 sm:$0xff]  }
 0x385   :  { %2556 = vmatprep.subr.bf16.mxu0 %v5532_v63  ;;  %7106 = vst [vmem:[#allocation90_spill] sm:$0xff] %v5811_v40 }
 0x387   :  { %2430 = vmatpush1.bf16.msra.mxu1 %v5800_v6  ;;  %v5816_v6 = vld [vmem:[#allocation15 + $0x280] ss:$24 sps:$4 sm:$0xff]  }
 0x388   :  { %2431 = vmatprep.subr.bf16.mxu1 %v5803_v50  ;;  %2557 = vmatpush1.bf16.msra.mxu0 %v5537_v4  ;;  %7107 = vst [vmem:[#allocation91_spill] sm:$0xff] %v5816_v6  ;;  %v5819_v50 = vld [vmem:[#allocation15 + $0x2b4] ss:$24 sps:$4 sm:$0xff]  }
 0x389   :  { %2558 = vmatprep.subr.bf16.mxu0 %v5540_v49  ;;  %7108 = vst [vmem:[#allocation92_spill] sm:$0xff] %v5819_v50 }
 0x38b   :  { %2432 = vmatpush1.bf16.msra.mxu1 %v5808_v38  ;;  %v5824_v38 = vld [vmem:[#allocation15 + $0x2b0] ss:$24 sps:$4 sm:$0xff]  }
 0x38c   :  { %2433 = vmatprep.subr.bf16.mxu1 %v5811_v40  ;;  %2559 = vmatpush1.bf16.msra.mxu0 %v5545_v0  ;;  %7109 = vst [vmem:[#allocation93_spill] sm:$0xff] %v5824_v38  ;;  %v5827_v40 = vld [vmem:[#allocation15 + $0x2e4] ss:$24 sps:$4 sm:$0xff]  }
 0x38d   :  { %2560 = vmatprep.subr.bf16.mxu0 %v5548_v62  ;;  %7110 = vst [vmem:[#allocation94_spill] sm:$0xff] %v5827_v40 }
 0x38f   :  { %2434 = vmatpush1.bf16.msra.mxu1 %v5816_v6  ;;  %v5832_v6 = vld [vmem:[#allocation15 + $0x2e0] ss:$24 sps:$4 sm:$0xff]  }
 0x390   :  { %2435 = vmatprep.subr.bf16.mxu1 %v5819_v50  ;;  %2561 = vmatpush1.bf16.msra.mxu0 %v5553_v48  ;;  %7111 = vst [vmem:[#allocation95_spill] sm:$0xff] %v5832_v6  ;;  %v7143_v50 = vld [vmem:[#allocation31_spill] sm:$0xff] }
 0x391   :  { %2562 = vmatprep.subr.bf16.mxu0 %v5556_v33  ;;  %v7116_v33 = vld [vmem:[#allocation54_spill] sm:$0xff] }
 0x393   :  { %2436 = vmatpush1.bf16.msra.mxu1 %v5824_v38  ;;  %v7112_v38 = vld [vmem:[#allocation50_spill] sm:$0xff] }
 0x394   :  { %2437 = vmatprep.subr.bf16.mxu1 %v5827_v40  ;;  %2563 = vmatpush1.bf16.msra.mxu0 %v5561_v46  ;;  %v7113_v40 = vld [vmem:[#allocation51_spill] sm:$0xff]  ;;  %v7114_v46 = vld [vmem:[#allocation52_spill] sm:$0xff] }
 0x395   :  { %2564 = vmatprep.subr.bf16.mxu0 %v5564_v14  ;;  %v7115_v14 = vld [vmem:[#allocation53_spill] sm:$0xff] }
 0x397   :  { %2438 = vmatpush1.bf16.msra.mxu1 %v5832_v6  ;;  %v7117_v6 = vld [vmem:[#allocation55_spill] sm:$0xff] }
 0x398   :  { %2575 = vmatprep.subr.bf16.mxu1 %v5568_v31  ;;  %2565 = vmatpush1.bf16.msra.mxu0 %v5571_v29  ;;  %v7118_v31 = vld [vmem:[#allocation56_spill] sm:$0xff]  ;;  %v7119_v29 = vld [vmem:[#allocation57_spill] sm:$0xff] }
 0x399   :  { %2616 = vmatprep.subr.bf16.mxu0 %v5574_v18  ;;  %v7120_v18 = vld [vmem:[#allocation58_spill] sm:$0xff] }
 0x39a   :  { %2440 = vmatmul.mubr.bf16.vlgmr.msra.gmra.mrb[36].mxu1 %v5708_v27  ;;  %v7121_v27 = vld [vmem:[#allocation59_spill] sm:$0xff] }
 0x39b   :  { %2576 = vmatpush1.bf16.msra.mxu1 %v5580_v36  ;;  %v7122_v36 = vld [vmem:[#allocation60_spill] sm:$0xff] }
 0x39c   :  { %2577 = vmatprep.subr.bf16.mxu1 %v7112_v38  ;;  %v7123_v38 = vld [vmem:[#allocation61_spill] sm:$0xff] }
 0x39f   :  { %2578 = vmatpush1.bf16.msra.mxu1 %v7113_v40  ;;  %v7124_v40 = vld [vmem:[#allocation62_spill] sm:$0xff] }
 0x3a0   :  { %2579 = vmatprep.subr.bf16.mxu1 %v7114_v46  ;;  %v7125_v46 = vld [vmem:[#allocation63_spill] sm:$0xff] }
 0x3a3   :  { %2580 = vmatpush1.bf16.msra.mxu1 %v7115_v14  ;;  %v7126_v14 = vld [vmem:[#allocation64_spill] sm:$0xff] }
 0x3a4   :  { %2581 = vmatprep.subr.bf16.mxu1 %v7116_v33  ;;  %v7127_v33 = vld [vmem:[#allocation65_spill] sm:$0xff] }
 0x3a7   :  { %2582 = vmatpush1.bf16.msra.mxu1 %v7117_v6  ;;  %v7128_v6 = vld [vmem:[#allocation66_spill] sm:$0xff] }
 0x3a8   :  { %2583 = vmatprep.subr.bf16.mxu1 %v7118_v31  ;;  %v7129_v31 = vld [vmem:[#allocation67_spill] sm:$0xff] }
 0x3ab   :  { %2584 = vmatpush1.bf16.msra.mxu1 %v7119_v29  ;;  %v7130_v29 = vld [vmem:[#allocation68_spill] sm:$0xff] }
 0x3ac   :  { %2585 = vmatprep.subr.bf16.mxu1 %v7120_v18  ;;  %v7131_v18 = vld [vmem:[#allocation69_spill] sm:$0xff] }
 0x3af   :  { %2586 = vmatpush1.bf16.msra.mxu1 %v7121_v27  ;;  %v7132_v27 = vld [vmem:[#allocation70_spill] sm:$0xff] }
 0x3b0   :  { %2587 = vmatprep.subr.bf16.mxu1 %v7122_v36  ;;  %v7133_v36 = vld [vmem:[#allocation71_spill] sm:$0xff] }
 0x3b3   :  { %2588 = vmatpush1.bf16.msra.mxu1 %v7123_v38  ;;  %v7134_v38 = vld [vmem:[#allocation72_spill] sm:$0xff] }
 0x3b4   :  { %2589 = vmatprep.subr.bf16.mxu1 %v7124_v40  ;;  %v7135_v40 = vld [vmem:[#allocation73_spill] sm:$0xff] }
 0x3b7   :  { %2590 = vmatpush1.bf16.msra.mxu1 %v7125_v46  ;;  %v7136_v46 = vld [vmem:[#allocation74_spill] sm:$0xff] }
 0x3b8   :  { %2591 = vmatprep.subr.bf16.mxu1 %v7126_v14  ;;  %v7137_v14 = vld [vmem:[#allocation75_spill] sm:$0xff] }
 0x3bb   :  { %2592 = vmatpush1.bf16.msra.mxu1 %v7127_v33  ;;  %v7138_v33 = vld [vmem:[#allocation76_spill] sm:$0xff] }
 0x3bc   :  { %2593 = vmatprep.subr.bf16.mxu1 %v7128_v6  ;;  %v7139_v6 = vld [vmem:[#allocation77_spill] sm:$0xff] }
 0x3bf   :  { %2594 = vmatpush1.bf16.msra.mxu1 %v7129_v31  ;;  %v7140_v31 = vld [vmem:[#allocation78_spill] sm:$0xff] }
 0x3c0   :  { %2595 = vmatprep.subr.bf16.mxu1 %v7130_v29  ;;  %v7141_v29 = vld [vmem:[#allocation79_spill] sm:$0xff] }
 0x3c3   :  { %2596 = vmatpush1.bf16.msra.mxu1 %v7131_v18  ;;  %v7142_v18 = vld [vmem:[#allocation80_spill] sm:$0xff] }
 0x3c4   :  { %2597 = vmatprep.subr.bf16.mxu1 %v7132_v27  ;;  %v2449_v27 = vld [vmem:[#allocation2 + $0xc] sm:$0x3f] }
 0x3c5   :  { %v2450_v62 = vunpack.c.l.bf16 %v2449_v27 }
 0x3c7   :  { %2598 = vmatpush1.bf16.msra.mxu1 %v7133_v36 }
 0x3c8   :  { %2599 = vmatprep.subr.bf16.mxu1 %v7134_v38  ;;  %v2459_v38 = vrot.slane %v2449_v27, 2 }
 0x3ca   :  { %v2461_v63 = vunpack.c.l.bf16 %v2459_v38  ;;  %v5876_v38 = vpop.permute.xlu1 %2514 }
 0x3cb   :  { %2600 = vmatpush1.bf16.msra.mxu1 %v7135_v40  ;;  %7144 = vst [vmem:[#allocation96_spill] sm:$0xff] %v5876_v38  ;;  %vm2516_vm0 = vcmp.eq.s32.totalorder %v5876_v38, 1  ;;  %v6228_v38 = vld [vmem:[#allocation15 + $0x1ec] ss:$24 sps:$4 sm:$0xff]  }
 0x3cc   :  { %2601 = vmatprep.subr.bf16.mxu1 %v7136_v46 }
 0x3cf   :  { %2602 = vmatpush1.bf16.msra.mxu1 %v7137_v14 }
 0x3d0   :  { %2603 = vmatprep.subr.bf16.mxu1 %v7138_v33 }
 0x3d3   :  { %2604 = vmatpush1.bf16.msra.mxu1 %v7139_v6 }
 0x3d4   :  { %2605 = vmatprep.subr.bf16.mxu1 %v7140_v31 }
 0x3d7   :  { %2606 = vmatpush1.bf16.msra.mxu1 %v7141_v29 }
 0x3d8   :  { %2743 = vmatprep.subr.bf16.mxu1 %v7142_v18 }
 0x42d   :  { %v2359_v36 = vpop.f32.mrb[32].mxu1  ;;  %v2400_v48 = vpop.f32.mrb[32].mxu0 }
 0x42e   :  { %v2360_v40 = vadd.f32 %v2359_v36, %v7143_v50  ;;  %v2361_v46 = vpop.f32.mrb[33].mxu1  ;;  %v2402_v0 = vpop.f32.mrb[33].mxu0  ;;  %v2470_v50 = vrot.slane %v2449_v27, 4  ;;  %v2490_v27 = vrot.slane %v2480_v54, 2 }
 0x42f   :  { %v2362_v14 = vadd.f32 %v2361_v46, %v5379_v42  ;;  %v2363_v33 = vpop.f32.mrb[34].mxu1  ;;  %v2404_v49 = vpop.f32.mrb[34].mxu0  ;;  %v2403_v46 = vadd.f32 %v2402_v0, %v5389_v1 }
 0x430   :  { %v2451_v6 = vadd.f32 %v2450_v62, %v2360_v40  ;;  %v2364_v4 = vpop.f32.mrb[35].mxu1  ;;  %v2405_v31 = vpop.f32.mrb[35].mxu0  ;;  %v2401_v49 = vadd.f32 %v2400_v48, %v5386_v39 }
 0x431   :  { %v2462_v61 = vadd.f32 %v2461_v63, %v2362_v14  ;;  %v2481_v4 = vunpack.c.l.bf16 %v2480_v54  ;;  %v2472_v31 = vunpack.c.l.bf16 %v2470_v50 }
 0x432   :  { %v3766_v29 = vmul.f32 -1.442695, %v2451_v6 }
 0x433   :  { %v3767_v18 = vmul.f32 -1.442695, %v2462_v61  ;;  %v2482_v63 = vadd.f32 %v2481_v4, %v2403_v46 }
 0x434   :  { %4075 = vpow2.f32 %v3766_v29 }
 0x435   :  { %4077 = vpow2.f32 %v3767_v18  ;;  %v3768_v61 = vmul.f32 -1.442695, %v2482_v63 }
 0x43e   :  { %v4076_v59 = vpop.eup %4075 }
 0x43f   :  { %v2455_v57 = vadd.f32 1.0, %v4076_v59  ;;  %v4078_v36 = vpop.eup %4077 }
 0x440   :  { %v2466_v55 = vadd.f32 1.0, %v4078_v36 }
 0x441   :  { %4079 = vrcp.f32 %v2455_v57 }
 0x442   :  { %4081 = vrcp.f32 %v2466_v55 }
 0x44b   :  { %v4080_v62 = vpop.eup %4079 }
 0x44c   :  { %v2469_v33 = vmul.f32 %v4080_v62, %v2401_v49  ;;  %v4082_v59 = vpop.eup %4081  ;;  %v2492_v49 = vunpack.c.l.bf16 %v2490_v27 }
 0x44d   :  { %v2475_v57 = vsub.f32 1.0, %v4082_v59  ;;  %v2477_v40 = vmul.f32 %v4082_v59, %v5695_v23 }
 0x44e   :  { %v2473_v14 = vadd.f32 %v2472_v31, %v2469_v33 }
 0x450   :  { %4083 = vtanh.f32 %v2473_v14 }
 0x451   :  { %4085 = vpow2.f32 %v3768_v61 }
 0x45a   :  { %v4084_v29 = vpop.eup %4083 }
 0x45b   :  { %v2476_v18 = vmul.f32 %v4084_v29, %v2475_v57  ;;  %v4086_v48 = vpop.eup %4085  ;;  %v2501_v57 = vrot.slane %v2480_v54, 4 }
 0x45c   :  { %v2486_v50 = vadd.f32 1.0, %v4086_v48 }
 0x45d   :  { %v2478_v0 = vadd.f32 %v2477_v40, %v2476_v18  ;;  %v2503_v29 = vunpack.c.l.bf16 %v2501_v57  ;;  %v7168_v57 = vld [vmem:[#allocation93_spill] sm:$0xff] }
 0x45e   :  { %4087 = vrcp.f32 %v2486_v50 }
 0x45f   :  { %v2517_v55 = vsel %vm2516_vm0, %v2478_v0, 0.0  ;;  %v5890_v54 = vsel %vm2516_vm0, %v2478_v0, %v5695_v23  ;;  %v7162_v23 = vld [vmem:[#allocation39_spill] sm:$0xff] }
 0x460   :  { %v2518_v6 = vpack.c.bf16 %v2517_v55, %v2517_v55  ;;  %v7164_v0 = vld [vmem:[#allocation91_spill] sm:$0xff] }
 0x462   :  { %2520 = vst [vmem:[#allocation16 + $0x4] sm:$0x3] %v2518_v6 }
 0x468   :  { %v4088_v31 = vpop.eup %4087 }
 0x46d   :  { %v2441_v36 = vpop.f32.mrb[36].mxu1 }
 0x46e   :  { %v2442_v46 = vadd.f32 %v2441_v36, %v5415_v45  ;;  %v2443_v62 = vpop.f32.mrb[37].mxu1 }
 0x46f   :  { %v2444_v4 = vadd.f32 %v2443_v62, %v5418_v7  ;;  %v2445_v33 = vpop.f32.mrb[38].mxu1  ;;  %v5884_v62 = vpop.permute.xlu0 %2523 }
 0x470   :  { %v2493_v63 = vadd.f32 %v2492_v49, %v2442_v46  ;;  %v2446_v14 = vpop.f32.mrb[39].mxu1  ;;  %7145 = vst [vmem:[#allocation97_spill] sm:$0xff] %v5884_v62  ;;  %vm2525_vm1 = vcmp.eq.s32.totalorder %v5884_v62, 1  ;;  %v6231_v62 = vld [vmem:[#allocation15 + $0x1e8] ss:$24 sps:$4 sm:$0xff]  }
 0x471   :  { %v2500_v61 = vmul.f32 %v4088_v31, %v2444_v4  ;;  %v7165_v14 = vld [vmem:[#allocation92_spill] sm:$0xff] }
 0x472   :  { %v3769_v59 = vmul.f32 -1.442695, %v2493_v63  ;;  %v5903_v63 = vpack.c.bf16 %v5890_v54, %v5890_v54 }
 0x473   :  { %v2504_v48 = vadd.f32 %v2503_v29, %v2500_v61  ;;  %v7166_v61 = vld [vmem:[#allocation42_spill] sm:$0xff] }
 0x474   :  { %4089 = vpow2.f32 %v3769_v59  ;;  %v7167_v59 = vld [vmem:[#allocation43_spill] sm:$0xff]  ;;  %v7169_v29 = vld [vmem:[#allocation94_spill] sm:$0xff] }
 0x47e   :  { %v4090_v18 = vpop.eup %4089 }
 0x47f   :  { %v2497_v40 = vadd.f32 1.0, %v4090_v18  ;;  %v7170_v18 = vld [vmem:[#allocation44_spill] sm:$0xff] }
 0x481   :  { %4091 = vrcp.f32 %v2497_v40  ;;  %v7171_v40 = vld [vmem:[#allocation45_spill] sm:$0xff] }
 0x482   :  { %4093 = vtanh.f32 %v2504_v48  ;;  %v7172_v48 = vld [vmem:[#allocation95_spill] sm:$0xff] }
 0x48b   :  { %v4092_v55 = vpop.eup %4091 }
 0x48c   :  { %v2506_v6 = vsub.f32 1.0, %v4092_v55  ;;  %v4094_v50 = vpop.eup %4093  ;;  %v2508_v36 = vmul.f32 %v4092_v55, %v5702_v2  ;;  %v7173_v55 = vld [vmem:[#allocation46_spill] sm:$0xff] }
 0x48e   :  { %v2507_v27 = vmul.f32 %v4094_v50, %v2506_v6  ;;  %v7174_v6 = vld [vmem:[#allocation47_spill] sm:$0xff]  ;;  %v7175_v50 = vld [vmem:[#allocation48_spill] sm:$0xff] }
 0x490   :  { %v2509_v46 = vadd.f32 %v2508_v36, %v2507_v27  ;;  %v7176_v27 = vld [vmem:[#allocation49_spill] sm:$0xff]  ;;  %v7177_v36 = vld [vmem:[#allocation50_spill] sm:$0xff] }
 0x492   :  { %v2526_v49 = vsel %vm2525_vm1, %v2509_v46, 0.0  ;;  %v5897_v4 = vsel %vm2525_vm1, %v2509_v46, %v5702_v2  ;;  %v7163_v2 = vld [vmem:[#allocation41_spill] sm:$0xff]  ;;  %v7178_v46 = vld [vmem:[#allocation51_spill] sm:$0xff] }
 0x493   :  { %v2527_v33 = vpack.c.bf16 %v2526_v49, %v2526_v49  ;;  %v2533_v31 = vpack.c.bf16 %v5897_v4, %v5897_v4  ;;  %v7179_v49 = vld [vmem:[#allocation52_spill] sm:$0xff] }
 0x495   :  { %2529 = vst [vmem:[#allocation17 + $0xa] sm:$0x3] %v2527_v33  ;;  %2566 = vmatprep.mubr.bf16.mxu0 %v2533_v31  ;;  %2607 = vmatprep.mubr.bf16.mxu1 %v2533_v31  ;;  %v7180_v33 = vld [vmem:[#allocation53_spill] sm:$0xff] }
 0x496   :  { %2567 = vmatmul.mubr.bf16.vlgmr.msra.gmra.mrb[36].mxu0 %v5903_v63  ;;  %2608 = vmatmul.mubr.bf16.vlgmr.msra.gmra.mrb[40].mxu1 %v5903_v63 }
 0x497   :  { %2617 = vmatpush1.bf16.msra.mxu0 %v5712_v56  ;;  %2648 = vmatprep.mubr.bf16.mxu0 %v2533_v31  ;;  %v7181_v31 = vld [vmem:[#allocation54_spill] sm:$0xff] }
 0x498   :  { %2618 = vmatprep.subr.bf16.mxu0 %v5715_v15  ;;  %2744 = vmatpush1.bf16.msra.mxu1 %v5449_v35  ;;  %v7146_v35 = vld [vmem:[#allocation34_spill] sm:$0xff] }
 0x499   :  { %2745 = vmatprep.subr.bf16.mxu1 %v5452_v34  ;;  %v7147_v34 = vld [vmem:[#allocation35_spill] sm:$0xff] }
 0x49b   :  { %2619 = vmatpush1.bf16.msra.mxu0 %v5720_v17 }
 0x49c   :  { %2620 = vmatprep.subr.bf16.mxu0 %v5723_v44  ;;  %2746 = vmatpush1.bf16.msra.mxu1 %v5457_v26  ;;  %v7148_v26 = vld [vmem:[#allocation83_spill] sm:$0xff] }
 0x49d   :  { %2747 = vmatprep.subr.bf16.mxu1 %v5460_v24  ;;  %v7149_v24 = vld [vmem:[#allocation84_spill] sm:$0xff] }
 0x49f   :  { %2621 = vmatpush1.bf16.msra.mxu0 %v5728_v22 }
 0x4a0   :  { %2622 = vmatprep.subr.bf16.mxu0 %v5731_v58  ;;  %2748 = vmatpush1.bf16.msra.mxu1 %v5465_v60  ;;  %v7150_v60 = vld [vmem:[#allocation36_spill] sm:$0xff] }
 0x4a1   :  { %2749 = vmatprep.subr.bf16.mxu1 %v5468_v13  ;;  %v7151_v13 = vld [vmem:[#allocation29_spill] sm:$0xff] }
 0x4a3   :  { %2623 = vmatpush1.bf16.msra.mxu0 %v5736_v19 }
 0x4a4   :  { %2624 = vmatprep.subr.bf16.mxu0 %v5739_v5  ;;  %2750 = vmatpush1.bf16.msra.mxu1 %v5473_v28  ;;  %v7152_v28 = vld [vmem:[#allocation85_spill] sm:$0xff] }
 0x4a5   :  { %2751 = vmatprep.subr.bf16.mxu1 %v5476_v12  ;;  %v7153_v12 = vld [vmem:[#allocation86_spill] sm:$0xff] }
 0x4a7   :  { %2625 = vmatpush1.bf16.msra.mxu0 %v5744_v8 }
 0x4a8   :  { %2626 = vmatprep.subr.bf16.mxu0 %v5747_v32  ;;  %2752 = vmatpush1.bf16.msra.mxu1 %v5481_v11  ;;  %v7154_v11 = vld [vmem:[#allocation37_spill] sm:$0xff] }
 0x4a9   :  { %2753 = vmatprep.subr.bf16.mxu1 %v5484_v47  ;;  %v7155_v47 = vld [vmem:[#allocation38_spill] sm:$0xff] }
 0x4ab   :  { %2627 = vmatpush1.bf16.msra.mxu0 %v5752_v16 }
 0x4ac   :  { %2628 = vmatprep.subr.bf16.mxu0 %v5755_v3  ;;  %2754 = vmatpush1.bf16.msra.mxu1 %v5489_v43  ;;  %v7156_v43 = vld [vmem:[#allocation87_spill] sm:$0xff] }
 0x4ad   :  { %2755 = vmatprep.subr.bf16.mxu1 %v5492_v41  ;;  %v7157_v41 = vld [vmem:[#allocation88_spill] sm:$0xff] }
 0x4af   :  { %2629 = vmatpush1.bf16.msra.mxu0 %v5760_v9 }
 0x4b0   :  { %2630 = vmatprep.subr.bf16.mxu0 %v5763_v10  ;;  %2756 = vmatpush1.bf16.msra.mxu1 %v5497_v37  ;;  %v7158_v37 = vld [vmem:[#allocation40_spill] sm:$0xff] }
 0x4b1   :  { %2757 = vmatprep.subr.bf16.mxu1 %v5500_v52  ;;  %v7159_v52 = vld [vmem:[#allocation30_spill] sm:$0xff] }
 0x4b3   :  { %2631 = vmatpush1.bf16.msra.mxu0 %v5768_v25 }
 0x4b4   :  { %2632 = vmatprep.subr.bf16.mxu0 %v5771_v30  ;;  %2758 = vmatpush1.bf16.msra.mxu1 %v5505_v51  ;;  %v7160_v51 = vld [vmem:[#allocation89_spill] sm:$0xff] }
 0x4b5   :  { %2759 = vmatprep.subr.bf16.mxu1 %v5508_v53  ;;  %v7161_v53 = vld [vmem:[#allocation90_spill] sm:$0xff] }
 0x4b7   :  { %2633 = vmatpush1.bf16.msra.mxu0 %v5776_v20 }
 0x4b8   :  { %2634 = vmatprep.subr.bf16.mxu0 %v5779_v21  ;;  %2760 = vmatpush1.bf16.msra.mxu1 %v7146_v35  ;;  %v7182_v35 = vld [vmem:[#allocation55_spill] sm:$0xff] }
 0x4b9   :  { %2761 = vmatprep.subr.bf16.mxu1 %v7147_v34  ;;  %v7183_v34 = vld [vmem:[#allocation56_spill] sm:$0xff]  ;;  %7245 = vst [vmem:[#allocation55_spill] sm:$0xff] %v6228_v38 }
 0x4ba   :  { %7246 = vst [vmem:[#allocation56_spill] sm:$0xff] %v6231_v62 }
 0x4bb   :  { %2635 = vmatpush1.bf16.msra.mxu0 %v7148_v26 }
 0x4bc   :  { %2636 = vmatprep.subr.bf16.mxu0 %v7149_v24  ;;  %2762 = vmatpush1.bf16.msra.mxu1 %v7150_v60  ;;  %v7184_v60 = vld [vmem:[#allocation57_spill] sm:$0xff] }
 0x4bd   :  { %2763 = vmatprep.subr.bf16.mxu1 %v7151_v13  ;;  %v7185_v13 = vld [vmem:[#allocation58_spill] sm:$0xff] }
 0x4bf   :  { %2637 = vmatpush1.bf16.msra.mxu0 %v7152_v28 }
 0x4c0   :  { %2638 = vmatprep.subr.bf16.mxu0 %v7153_v12  ;;  %2764 = vmatpush1.bf16.msra.mxu1 %v7154_v11  ;;  %v7187_v11 = vld [vmem:[#allocation60_spill] sm:$0xff] }
 0x4c1   :  { %2765 = vmatprep.subr.bf16.mxu1 %v7155_v47  ;;  %v7188_v47 = vld [vmem:[#allocation61_spill] sm:$0xff] }
 0x4c3   :  { %2639 = vmatpush1.bf16.msra.mxu0 %v7156_v43 }
 0x4c4   :  { %2640 = vmatprep.subr.bf16.mxu0 %v7157_v41  ;;  %2766 = vmatpush1.bf16.msra.mxu1 %v7158_v37  ;;  %v7189_v37 = vld [vmem:[#allocation62_spill] sm:$0xff] }
 0x4c5   :  { %2767 = vmatprep.subr.bf16.mxu1 %v7159_v52  ;;  %v7190_v52 = vld [vmem:[#allocation63_spill] sm:$0xff] }
 0x4c7   :  { %2641 = vmatpush1.bf16.msra.mxu0 %v7160_v51 }
 0x4c8   :  { %2642 = vmatprep.subr.bf16.mxu0 %v7161_v53  ;;  %2768 = vmatpush1.bf16.msra.mxu1 %v7162_v23  ;;  %v7191_v23 = vld [vmem:[#allocation64_spill] sm:$0xff] }
 0x4c9   :  { %2769 = vmatprep.subr.bf16.mxu1 %v7163_v2  ;;  %v7192_v2 = vld [vmem:[#allocation65_spill] sm:$0xff] }
 0x4cb   :  { %2643 = vmatpush1.bf16.msra.mxu0 %v7164_v0 }
 0x4cc   :  { %2644 = vmatprep.subr.bf16.mxu0 %v7165_v14  ;;  %2770 = vmatpush1.bf16.msra.mxu1 %v7166_v61  ;;  %v7193_v61 = vld [vmem:[#allocation66_spill] sm:$0xff] }
 0x4cd   :  { %2771 = vmatprep.subr.bf16.mxu1 %v7167_v59  ;;  %v7194_v59 = vld [vmem:[#allocation67_spill] sm:$0xff] }
 0x4cf   :  { %2645 = vmatpush1.bf16.msra.mxu0 %v7168_v57 }
 0x4d0   :  { %2646 = vmatprep.subr.bf16.mxu0 %v7169_v29  ;;  %2772 = vmatpush1.bf16.msra.mxu1 %v7170_v18  ;;  %v7195_v18 = vld [vmem:[#allocation68_spill] sm:$0xff] }
 0x4d1   :  { %2773 = vmatprep.subr.bf16.mxu1 %v7171_v40  ;;  %v7196_v40 = vld [vmem:[#allocation69_spill] sm:$0xff] }
 0x4d3   :  { %2647 = vmatpush1.bf16.msra.mxu0 %v7172_v48 }
 0x4d4   :  { %2784 = vmatprep.subr.bf16.mxu0 %v7173_v55  ;;  %2774 = vmatpush1.bf16.msra.mxu1 %v7174_v6  ;;  %v7197_v55 = vld [vmem:[#allocation70_spill] sm:$0xff]  ;;  %v7198_v6 = vld [vmem:[#allocation71_spill] sm:$0xff] }
 0x4d5   :  { %2825 = vmatprep.subr.bf16.mxu1 %v7175_v50  ;;  %v7199_v50 = vld [vmem:[#allocation72_spill] sm:$0xff] }
 0x4d6   :  { %2649 = vmatmul.mubr.bf16.vlgmr.msra.gmra.mrb[40].mxu0 %v5903_v63  ;;  %v7186_v63 = vld [vmem:[#allocation59_spill] sm:$0xff] }
 0x4d7   :  { %2785 = vmatpush1.bf16.msra.mxu0 %v7176_v27  ;;  %v7200_v27 = vld [vmem:[#allocation73_spill] sm:$0xff] }
 0x4d8   :  { %2786 = vmatprep.subr.bf16.mxu0 %v7177_v36  ;;  %v7201_v36 = vld [vmem:[#allocation74_spill] sm:$0xff] }
 0x4db   :  { %2787 = vmatpush1.bf16.msra.mxu0 %v7178_v46  ;;  %v7202_v46 = vld [vmem:[#allocation75_spill] sm:$0xff] }
 0x4dc   :  { %2788 = vmatprep.subr.bf16.mxu0 %v7179_v49  ;;  %v7203_v49 = vld [vmem:[#allocation76_spill] sm:$0xff] }
 0x4df   :  { %2789 = vmatpush1.bf16.msra.mxu0 %v7180_v33  ;;  %v7204_v33 = vld [vmem:[#allocation77_spill] sm:$0xff] }
 0x4e0   :  { %2790 = vmatprep.subr.bf16.mxu0 %v7181_v31  ;;  %v7205_v31 = vld [vmem:[#allocation78_spill] sm:$0xff] }
 0x4e3   :  { %2791 = vmatpush1.bf16.msra.mxu0 %v7182_v35  ;;  %v7206_v35 = vld [vmem:[#allocation79_spill] sm:$0xff] }
 0x4e4   :  { %2792 = vmatprep.subr.bf16.mxu0 %v7183_v34  ;;  %v7207_v34 = vld [vmem:[#allocation80_spill] sm:$0xff] }
 0x4e7   :  { %2793 = vmatpush1.bf16.msra.mxu0 %v7184_v60  ;;  %v2658_v60 = vld [vmem:[#allocation2 + $0x12] sm:$0x3f] }
 0x4e8   :  { %2794 = vmatprep.subr.bf16.mxu0 %v7185_v13 }
 0x4eb   :  { %2795 = vmatpush1.bf16.msra.mxu0 %v7186_v63 }
 0x4ec   :  { %2796 = vmatprep.subr.bf16.mxu0 %v7187_v11  ;;  %v2668_v11 = vrot.slane %v2658_v60, 2 }
 0x4ef   :  { %2797 = vmatpush1.bf16.msra.mxu0 %v7188_v47  ;;  %v7208_v47 = vld [vmem:[#allocation31_spill] sm:$0xff] }
 0x4f0   :  { %2798 = vmatprep.subr.bf16.mxu0 %v7189_v37 }
 0x4f3   :  { %2799 = vmatpush1.bf16.msra.mxu0 %v7190_v52  ;;  %v2659_v52 = vunpack.c.l.bf16 %v2658_v60 }
 0x4f4   :  { %2800 = vmatprep.subr.bf16.mxu0 %v7191_v23 }
 0x4f7   :  { %2801 = vmatpush1.bf16.msra.mxu0 %v7192_v2 }
 0x4f8   :  { %2802 = vmatprep.subr.bf16.mxu0 %v7193_v61 }
 0x4fb   :  { %2803 = vmatpush1.bf16.msra.mxu0 %v7194_v59 }
 0x4fc   :  { %2804 = vmatprep.subr.bf16.mxu0 %v7195_v18 }
 0x4ff   :  { %2805 = vmatpush1.bf16.msra.mxu0 %v7196_v40 }
 0x500   :  { %2806 = vmatprep.subr.bf16.mxu0 %v7197_v55 }
 0x503   :  { %2807 = vmatpush1.bf16.msra.mxu0 %v7198_v6 }
 0x504   :  { %2808 = vmatprep.subr.bf16.mxu0 %v7199_v50  ;;  %v2670_v50 = vunpack.c.l.bf16 %v2668_v11 }
 0x507   :  { %2809 = vmatpush1.bf16.msra.mxu0 %v7200_v27 }
 0x508   :  { %2810 = vmatprep.subr.bf16.mxu0 %v7201_v36 }
 0x50b   :  { %2811 = vmatpush1.bf16.msra.mxu0 %v7202_v46 }
 0x50c   :  { %2812 = vmatprep.subr.bf16.mxu0 %v7203_v49 }
 0x50f   :  { %2813 = vmatpush1.bf16.msra.mxu0 %v7204_v33 }
 0x510   :  { %2814 = vmatprep.subr.bf16.mxu0 %v7205_v31 }
 0x513   :  { %2815 = vmatpush1.bf16.msra.mxu0 %v7206_v35  ;;  %v2679_v35 = vrot.slane %v2658_v60, 4  ;;  %v6008_v60 = vpop.permute.xlu1 %2723 }
 0x514   :  { %2940 = vmatprep.subr.bf16.mxu0 %v7207_v34  ;;  %vm2725_vm2 = vcmp.eq.s32.totalorder %v6008_v60, 1  ;;  %v6300_v60 = vld [vmem:[#allocation15 + $0x44] ss:$24 sps:$4 sm:$0xff]  }
 0x515   :  { %v2681_v11 = vunpack.c.l.bf16 %v2679_v35 }
 0x569   :  { %v2568_v13 = vpop.f32.mrb[36].mxu0  ;;  %v2609_v63 = vpop.f32.mrb[40].mxu1 }
 0x56a   :  { %v2569_v37 = vadd.f32 %v2568_v13, %v7208_v47  ;;  %v2570_v23 = vpop.f32.mrb[37].mxu0  ;;  %v2611_v2 = vpop.f32.mrb[41].mxu1  ;;  %v2689_v13 = vld [vmem:[#allocation3 + $0x18] sm:$0x3f] }
 0x56b   :  { %v2571_v61 = vadd.f32 %v2570_v23, %v5379_v42  ;;  %v2572_v59 = vpop.f32.mrb[38].mxu0  ;;  %v2613_v18 = vpop.f32.mrb[42].mxu1  ;;  %v2612_v23 = vadd.f32 %v2611_v2, %v5389_v1  ;;  %v2699_v35 = vrot.slane %v2689_v13, 2 }
 0x56c   :  { %v2660_v40 = vadd.f32 %v2659_v52, %v2569_v37  ;;  %v2573_v55 = vpop.f32.mrb[39].mxu0  ;;  %v2614_v6 = vpop.f32.mrb[43].mxu1  ;;  %v2610_v59 = vadd.f32 %v2609_v63, %v5386_v39  ;;  %v2690_v52 = vunpack.c.l.bf16 %v2689_v13 }
 0x56d   :  { %v2671_v36 = vadd.f32 %v2670_v50, %v2571_v61 }
 0x56e   :  { %v3770_v27 = vmul.f32 -1.442695, %v2660_v40  ;;  %v2691_v61 = vadd.f32 %v2690_v52, %v2612_v23 }
 0x56f   :  { %v3771_v46 = vmul.f32 -1.442695, %v2671_v36 }
 0x570   :  { %4095 = vpow2.f32 %v3770_v27  ;;  %v3772_v55 = vmul.f32 -1.442695, %v2691_v61 }
 0x571   :  { %4097 = vpow2.f32 %v3771_v46 }
 0x57a   :  { %v4096_v49 = vpop.eup %4095 }
 0x57b   :  { %v2664_v33 = vadd.f32 1.0, %v4096_v49  ;;  %v4098_v31 = vpop.eup %4097 }
 0x57c   :  { %v2675_v34 = vadd.f32 1.0, %v4098_v31 }
 0x57d   :  { %4099 = vrcp.f32 %v2664_v33 }
 0x57e   :  { %4101 = vrcp.f32 %v2675_v34 }
 0x587   :  { %v4100_v37 = vpop.eup %4099 }
 0x588   :  { %v2678_v18 = vmul.f32 %v4100_v37, %v2610_v59  ;;  %v4102_v6 = vpop.eup %4101  ;;  %v2701_v59 = vunpack.c.l.bf16 %v2699_v35  ;;  %v6016_v35 = vpop.permute.xlu0 %2732 }
 0x589   :  { %v2684_v50 = vsub.f32 1.0, %v4102_v6  ;;  %v2686_v2 = vmul.f32 %v4102_v6, %v5890_v54  ;;  %vm2734_vm3 = vcmp.eq.s32.totalorder %v6016_v35, 1  ;;  %v6297_v35 = vld [vmem:[#allocation15 + $0x10] ss:$24 sps:$4 sm:$0xff]  }
 0x58a   :  { %v2682_v40 = vadd.f32 %v2681_v11, %v2678_v18 }
 0x58c   :  { %4103 = vtanh.f32 %v2682_v40 }
 0x58d   :  { %4105 = vpow2.f32 %v3772_v55 }
 0x596   :  { %v4104_v27 = vpop.eup %4103 }
 0x597   :  { %v2685_v36 = vmul.f32 %v4104_v27, %v2684_v50  ;;  %v4106_v63 = vpop.eup %4105  ;;  %v2710_v50 = vrot.slane %v2689_v13, 4 }
 0x598   :  { %v2695_v31 = vadd.f32 1.0, %v4106_v63 }
 0x599   :  { %v2687_v46 = vadd.f32 %v2686_v2, %v2685_v36  ;;  %v2712_v27 = vunpack.c.l.bf16 %v2710_v50  ;;  %v6183_v50 = vld [vmem:[#allocation15 + $0x68] ss:$24 sps:$4 sm:$0xff]  }
 0x59a   :  { %4107 = vrcp.f32 %v2695_v31  ;;  %7230 = vst [vmem:[#allocation43_spill] sm:$0xff] %v6183_v50 }
 0x59b   :  { %v2726_v49 = vsel %vm2725_vm2, %v2687_v46, 0.0  ;;  %v6023_v13 = vsel %vm2725_vm2, %v2687_v46, %v5890_v54  ;;  %v6042_v54 = vld [vmem:[#allocation15] ss:$24 sps:$4 sm:$0xff]   ;;  %v6050_v46 = vld [vmem:[#allocation15 + $0x30] ss:$24 sps:$4 sm:$0xff]  }
 0x59c   :  { %v2727_v33 = vpack.c.bf16 %v2726_v49, %v2726_v49 }
 0x59e   :  { %2729 = vst [vmem:[#allocation16 + $0x6] sm:$0x3] %v2727_v33 }
 0x5a4   :  { %v4108_v11 = vpop.eup %4107 }
 0x5a9   :  { %v2650_v34 = vpop.f32.mrb[40].mxu0 }
 0x5aa   :  { %v2651_v23 = vadd.f32 %v2650_v34, %v5415_v45  ;;  %v2652_v37 = vpop.f32.mrb[41].mxu0 }
 0x5ab   :  { %v2653_v52 = vadd.f32 %v2652_v37, %v5418_v7  ;;  %v2654_v18 = vpop.f32.mrb[42].mxu0 }
 0x5ac   :  { %v2702_v61 = vadd.f32 %v2701_v59, %v2651_v23  ;;  %v2655_v40 = vpop.f32.mrb[43].mxu0 }
 0x5ad   :  { %v2709_v55 = vmul.f32 %v4108_v11, %v2653_v52  ;;  %v6061_v40 = vld [vmem:[#allocation15 + $0x94] ss:$24 sps:$4 sm:$0xff]  }
 0x5ae   :  { %v3773_v6 = vmul.f32 -1.442695, %v2702_v61  ;;  %v6036_v61 = vpack.c.bf16 %v6023_v13, %v6023_v13 }
 0x5af   :  { %v2713_v63 = vadd.f32 %v2712_v27, %v2709_v55  ;;  %v6174_v55 = vld [vmem:[#allocation15 + $0x3c] ss:$24 sps:$4 sm:$0xff]  }
 0x5b0   :  { %4109 = vpow2.f32 %v3773_v6  ;;  %7227 = vst [vmem:[#allocation91_spill] sm:$0xff] %v6174_v55  ;;  %v6180_v6 = vld [vmem:[#allocation15 + $0x6c] ss:$24 sps:$4 sm:$0xff]   ;;  %v6186_v27 = vld [vmem:[#allocation15 + $0x9c] ss:$24 sps:$4 sm:$0xff]  }
 0x5b1   :  { %7229 = vst [vmem:[#allocation42_spill] sm:$0xff] %v6180_v6  ;;  %7231 = vst [vmem:[#allocation93_spill] sm:$0xff] %v6186_v27 }
 0x5ba   :  { %v4110_v36 = vpop.eup %4109 }
 0x5bb   :  { %v2706_v2 = vadd.f32 1.0, %v4110_v36  ;;  %v6189_v36 = vld [vmem:[#allocation15 + $0x98] ss:$24 sps:$4 sm:$0xff]  }
 0x5bc   :  { %7232 = vst [vmem:[#allocation94_spill] sm:$0xff] %v6189_v36 }
 0x5bd   :  { %4111 = vrcp.f32 %v2706_v2  ;;  %v6192_v2 = vld [vmem:[#allocation15 + $0xcc] ss:$24 sps:$4 sm:$0xff]  }
 0x5be   :  { %4113 = vtanh.f32 %v2713_v63  ;;  %7233 = vst [vmem:[#allocation44_spill] sm:$0xff] %v6192_v2  ;;  %v6195_v63 = vld [vmem:[#allocation15 + $0xc8] ss:$24 sps:$4 sm:$0xff]  }
 0x5bf   :  { %7234 = vst [vmem:[#allocation45_spill] sm:$0xff] %v6195_v63 }
 0x5c7   :  { %v4112_v49 = vpop.eup %4111 }
 0x5c8   :  { %v2715_v33 = vsub.f32 1.0, %v4112_v49  ;;  %v4114_v31 = vpop.eup %4113  ;;  %v2717_v37 = vmul.f32 %v4112_v49, %v5897_v4  ;;  %v6198_v49 = vld [vmem:[#allocation15 + $0xfc] ss:$24 sps:$4 sm:$0xff]  }
 0x5c9   :  { %7235 = vst [vmem:[#allocation95_spill] sm:$0xff] %v6198_v49 }
 0x5ca   :  { %v2716_v34 = vmul.f32 %v4114_v31, %v2715_v33  ;;  %v6201_v33 = vld [vmem:[#allocation15 + $0xf8] ss:$24 sps:$4 sm:$0xff]   ;;  %v6204_v31 = vld [vmem:[#allocation15 + $0x12c] ss:$24 sps:$4 sm:$0xff]  }
 0x5cb   :  { %7236 = vst [vmem:[#allocation46_spill] sm:$0xff] %v6201_v33  ;;  %7237 = vst [vmem:[#allocation47_spill] sm:$0xff] %v6204_v31 }
 0x5cc   :  { %v2718_v23 = vadd.f32 %v2717_v37, %v2716_v34  ;;  %v6207_v34 = vld [vmem:[#allocation15 + $0x128] ss:$24 sps:$4 sm:$0xff]   ;;  %v6210_v37 = vld [vmem:[#allocation15 + $0x15c] ss:$24 sps:$4 sm:$0xff]  }
 0x5cd   :  { %7238 = vst [vmem:[#allocation48_spill] sm:$0xff] %v6207_v34  ;;  %7239 = vst [vmem:[#allocation49_spill] sm:$0xff] %v6210_v37 }
 0x5ce   :  { %v2735_v59 = vsel %vm2734_vm3, %v2718_v23, 0.0  ;;  %v6030_v52 = vsel %vm2734_vm3, %v2718_v23, %v5897_v4  ;;  %v6045_v4 = vld [vmem:[#allocation15 + $0x34] ss:$24 sps:$4 sm:$0xff]   ;;  %v6213_v23 = vld [vmem:[#allocation15 + $0x158] ss:$24 sps:$4 sm:$0xff]  }
 0x5cf   :  { %v2736_v18 = vpack.c.bf16 %v2735_v59, %v2735_v59  ;;  %v2742_v11 = vpack.c.bf16 %v6030_v52, %v6030_v52  ;;  %7240 = vst [vmem:[#allocation50_spill] sm:$0xff] %v6213_v23  ;;  %v6216_v59 = vld [vmem:[#allocation15 + $0x18c] ss:$24 sps:$4 sm:$0xff]  }
 0x5d0   :  { %7241 = vst [vmem:[#allocation51_spill] sm:$0xff] %v6216_v59 }
 0x5d1   :  { %2738 = vst [vmem:[#allocation17 + $0x8] sm:$0x3] %v2736_v18  ;;  %2775 = vmatprep.mubr.bf16.mxu1 %v2742_v11  ;;  %2816 = vmatprep.mubr.bf16.mxu0 %v2742_v11  ;;  %v6219_v18 = vld [vmem:[#allocation15 + $0x188] ss:$24 sps:$4 sm:$0xff]  }
 0x5d2   :  { %2776 = vmatmul.mubr.bf16.vlgmr.msra.gmra.mrb[44].mxu1 %v6036_v61  ;;  %2817 = vmatmul.mubr.bf16.vlgmr.msra.gmra.mrb[44].mxu0 %v6036_v61  ;;  %7242 = vst [vmem:[#allocation52_spill] sm:$0xff] %v6219_v18 }
 0x5d3   :  { %2826 = vmatpush1.bf16.msra.mxu1 %v5712_v56  ;;  %2857 = vmatprep.mubr.bf16.mxu1 %v2742_v11  ;;  %v6053_v56 = vld [vmem:[#allocation15 + $0x64] ss:$24 sps:$4 sm:$0xff]  }
 0x5d4   :  { %2827 = vmatprep.subr.bf16.mxu1 %v5715_v15  ;;  %2941 = vmatpush1.bf16.msra.mxu0 %v6042_v54  ;;  %v6058_v15 = vld [vmem:[#allocation15 + $0x60] ss:$24 sps:$4 sm:$0xff]   ;;  %v6222_v11 = vld [vmem:[#allocation15 + $0x1bc] ss:$24 sps:$4 sm:$0xff]  }
 0x5d5   :  { %2942 = vmatprep.subr.bf16.mxu0 %v6045_v4  ;;  %7243 = vst [vmem:[#allocation53_spill] sm:$0xff] %v6222_v11 }
 0x5d7   :  { %2828 = vmatpush1.bf16.msra.mxu1 %v5720_v17  ;;  %v6066_v17 = vld [vmem:[#allocation15 + $0x90] ss:$24 sps:$4 sm:$0xff]  }
 0x5d8   :  { %2829 = vmatprep.subr.bf16.mxu1 %v5723_v44  ;;  %2943 = vmatpush1.bf16.msra.mxu0 %v6050_v46  ;;  %v6069_v44 = vld [vmem:[#allocation15 + $0xc4] ss:$24 sps:$4 sm:$0xff]  }
 0x5d9   :  { %2944 = vmatprep.subr.bf16.mxu0 %v6053_v56 }
 0x5db   :  { %2830 = vmatpush1.bf16.msra.mxu1 %v5728_v22  ;;  %v6074_v22 = vld [vmem:[#allocation15 + $0xc0] ss:$24 sps:$4 sm:$0xff]  }
 0x5dc   :  { %2831 = vmatprep.subr.bf16.mxu1 %v5731_v58  ;;  %2945 = vmatpush1.bf16.msra.mxu0 %v6058_v15  ;;  %v6077_v58 = vld [vmem:[#allocation15 + $0xf4] ss:$24 sps:$4 sm:$0xff]  }
 0x5dd   :  { %2946 = vmatprep.subr.bf16.mxu0 %v6061_v40 }
 0x5df   :  { %2832 = vmatpush1.bf16.msra.mxu1 %v5736_v19  ;;  %v6082_v19 = vld [vmem:[#allocation15 + $0xf0] ss:$24 sps:$4 sm:$0xff]  }
 0x5e0   :  { %2833 = vmatprep.subr.bf16.mxu1 %v5739_v5  ;;  %2947 = vmatpush1.bf16.msra.mxu0 %v6066_v17  ;;  %v6085_v5 = vld [vmem:[#allocation15 + $0x124] ss:$24 sps:$4 sm:$0xff]  }
 0x5e1   :  { %2948 = vmatprep.subr.bf16.mxu0 %v6069_v44 }
 0x5e3   :  { %2834 = vmatpush1.bf16.msra.mxu1 %v5744_v8  ;;  %v6090_v8 = vld [vmem:[#allocation15 + $0x120] ss:$24 sps:$4 sm:$0xff]  }
 0x5e4   :  { %2835 = vmatprep.subr.bf16.mxu1 %v5747_v32  ;;  %2949 = vmatpush1.bf16.msra.mxu0 %v6074_v22  ;;  %v6093_v32 = vld [vmem:[#allocation15 + $0x154] ss:$24 sps:$4 sm:$0xff]  }
 0x5e5   :  { %2950 = vmatprep.subr.bf16.mxu0 %v6077_v58 }
 0x5e7   :  { %2836 = vmatpush1.bf16.msra.mxu1 %v5752_v16  ;;  %v6098_v16 = vld [vmem:[#allocation15 + $0x150] ss:$24 sps:$4 sm:$0xff]  }
 0x5e8   :  { %2837 = vmatprep.subr.bf16.mxu1 %v5755_v3  ;;  %2951 = vmatpush1.bf16.msra.mxu0 %v6082_v19  ;;  %v6101_v3 = vld [vmem:[#allocation15 + $0x184] ss:$24 sps:$4 sm:$0xff]  }
 0x5e9   :  { %2952 = vmatprep.subr.bf16.mxu0 %v6085_v5 }
 0x5eb   :  { %2838 = vmatpush1.bf16.msra.mxu1 %v5760_v9  ;;  %v6106_v9 = vld [vmem:[#allocation15 + $0x180] ss:$24 sps:$4 sm:$0xff]  }
 0x5ec   :  { %2839 = vmatprep.subr.bf16.mxu1 %v5763_v10  ;;  %2953 = vmatpush1.bf16.msra.mxu0 %v6090_v8  ;;  %7209 = vst [vmem:[#allocation34_spill] sm:$0xff] %v6106_v9  ;;  %v6109_v10 = vld [vmem:[#allocation15 + $0x1b4] ss:$24 sps:$4 sm:$0xff]  }
 0x5ed   :  { %2954 = vmatprep.subr.bf16.mxu0 %v6093_v32  ;;  %7210 = vst [vmem:[#allocation35_spill] sm:$0xff] %v6109_v10 }
 0x5ef   :  { %2840 = vmatpush1.bf16.msra.mxu1 %v5768_v25  ;;  %v6114_v25 = vld [vmem:[#allocation15 + $0x1b0] ss:$24 sps:$4 sm:$0xff]  }
 0x5f0   :  { %2841 = vmatprep.subr.bf16.mxu1 %v5771_v30  ;;  %2955 = vmatpush1.bf16.msra.mxu0 %v6098_v16  ;;  %7211 = vst [vmem:[#allocation83_spill] sm:$0xff] %v6114_v25  ;;  %v6117_v30 = vld [vmem:[#allocation15 + $0x1e4] ss:$24 sps:$4 sm:$0xff]  }
 0x5f1   :  { %2956 = vmatprep.subr.bf16.mxu0 %v6101_v3  ;;  %7212 = vst [vmem:[#allocation84_spill] sm:$0xff] %v6117_v30 }
 0x5f3   :  { %2842 = vmatpush1.bf16.msra.mxu1 %v5776_v20  ;;  %v6122_v20 = vld [vmem:[#allocation15 + $0x1e0] ss:$24 sps:$4 sm:$0xff]  }
 0x5f4   :  { %2843 = vmatprep.subr.bf16.mxu1 %v5779_v21  ;;  %2957 = vmatpush1.bf16.msra.mxu0 %v6106_v9  ;;  %7213 = vst [vmem:[#allocation36_spill] sm:$0xff] %v6122_v20  ;;  %v6125_v21 = vld [vmem:[#allocation15 + $0x214] ss:$24 sps:$4 sm:$0xff]  }
 0x5f5   :  { %2958 = vmatprep.subr.bf16.mxu0 %v6109_v10  ;;  %7214 = vst [vmem:[#allocation29_spill] sm:$0xff] %v6125_v21 }
 0x5f7   :  { %2844 = vmatpush1.bf16.msra.mxu1 %v7148_v26  ;;  %v6130_v26 = vld [vmem:[#allocation15 + $0x210] ss:$24 sps:$4 sm:$0xff]  }
 0x5f8   :  { %2845 = vmatprep.subr.bf16.mxu1 %v7149_v24  ;;  %2959 = vmatpush1.bf16.msra.mxu0 %v6114_v25  ;;  %7215 = vst [vmem:[#allocation85_spill] sm:$0xff] %v6130_v26  ;;  %v6133_v24 = vld [vmem:[#allocation15 + $0x244] ss:$24 sps:$4 sm:$0xff]  }
 0x5f9   :  { %2960 = vmatprep.subr.bf16.mxu0 %v6117_v30  ;;  %7216 = vst [vmem:[#allocation86_spill] sm:$0xff] %v6133_v24 }
 0x5fb   :  { %2846 = vmatpush1.bf16.msra.mxu1 %v7152_v28  ;;  %v6138_v28 = vld [vmem:[#allocation15 + $0x240] ss:$24 sps:$4 sm:$0xff]  }
 0x5fc   :  { %2847 = vmatprep.subr.bf16.mxu1 %v7153_v12  ;;  %2961 = vmatpush1.bf16.msra.mxu0 %v6122_v20  ;;  %7217 = vst [vmem:[#allocation37_spill] sm:$0xff] %v6138_v28  ;;  %v6141_v12 = vld [vmem:[#allocation15 + $0x274] ss:$24 sps:$4 sm:$0xff]  }
 0x5fd   :  { %2962 = vmatprep.subr.bf16.mxu0 %v6125_v21  ;;  %7218 = vst [vmem:[#allocation38_spill] sm:$0xff] %v6141_v12 }
 0x5ff   :  { %2848 = vmatpush1.bf16.msra.mxu1 %v7156_v43  ;;  %v6146_v43 = vld [vmem:[#allocation15 + $0x270] ss:$24 sps:$4 sm:$0xff]  }
 0x600   :  { %2849 = vmatprep.subr.bf16.mxu1 %v7157_v41  ;;  %2963 = vmatpush1.bf16.msra.mxu0 %v6130_v26  ;;  %7219 = vst [vmem:[#allocation87_spill] sm:$0xff] %v6146_v43  ;;  %v6149_v41 = vld [vmem:[#allocation15 + $0x2a4] ss:$24 sps:$4 sm:$0xff]  }
 0x601   :  { %2964 = vmatprep.subr.bf16.mxu0 %v6133_v24  ;;  %7220 = vst [vmem:[#allocation88_spill] sm:$0xff] %v6149_v41 }
 0x603   :  { %2850 = vmatpush1.bf16.msra.mxu1 %v7160_v51  ;;  %v6154_v51 = vld [vmem:[#allocation15 + $0x2a0] ss:$24 sps:$4 sm:$0xff]  }
 0x604   :  { %2851 = vmatprep.subr.bf16.mxu1 %v7161_v53  ;;  %2965 = vmatpush1.bf16.msra.mxu0 %v6138_v28  ;;  %7221 = vst [vmem:[#allocation40_spill] sm:$0xff] %v6154_v51  ;;  %v6157_v53 = vld [vmem:[#allocation15 + $0x2d4] ss:$24 sps:$4 sm:$0xff]  }
 0x605   :  { %2966 = vmatprep.subr.bf16.mxu0 %v6141_v12  ;;  %7222 = vst [vmem:[#allocation30_spill] sm:$0xff] %v6157_v53 }
 0x607   :  { %2852 = vmatpush1.bf16.msra.mxu1 %v7164_v0  ;;  %v6161_v0 = vld [vmem:[#allocation15 + $0xc] ss:$24 sps:$4 sm:$0xff]  }
 0x608   :  { %2853 = vmatprep.subr.bf16.mxu1 %v7165_v14  ;;  %2967 = vmatpush1.bf16.msra.mxu0 %v6146_v43  ;;  %7223 = vst [vmem:[#allocation89_spill] sm:$0xff] %v6161_v0  ;;  %v6164_v14 = vld [vmem:[#allocation15 + $0x2d0] ss:$24 sps:$4 sm:$0xff]  }
 0x609   :  { %2968 = vmatprep.subr.bf16.mxu0 %v6149_v41  ;;  %7224 = vst [vmem:[#allocation90_spill] sm:$0xff] %v6164_v14 }
 0x60b   :  { %2854 = vmatpush1.bf16.msra.mxu1 %v7168_v57  ;;  %v6167_v57 = vld [vmem:[#allocation15 + $0x14] ss:$24 sps:$4 sm:$0xff]  }
 0x60c   :  { %2855 = vmatprep.subr.bf16.mxu1 %v7169_v29  ;;  %2969 = vmatpush1.bf16.msra.mxu0 %v6154_v51  ;;  %7225 = vst [vmem:[#allocation39_spill] sm:$0xff] %v6167_v57  ;;  %v6171_v29 = vld [vmem:[#allocation15 + $0x8] ss:$24 sps:$4 sm:$0xff]  }
 0x60d   :  { %2970 = vmatprep.subr.bf16.mxu0 %v6157_v53  ;;  %7226 = vst [vmem:[#allocation41_spill] sm:$0xff] %v6171_v29 }
 0x60f   :  { %2856 = vmatpush1.bf16.msra.mxu1 %v7172_v48  ;;  %v6177_v48 = vld [vmem:[#allocation15 + $0x38] ss:$24 sps:$4 sm:$0xff]  }
 0x610   :  { %2981 = vmatprep.subr.bf16.mxu1 %v6161_v0  ;;  %2971 = vmatpush1.bf16.msra.mxu0 %v6164_v14  ;;  %7228 = vst [vmem:[#allocation92_spill] sm:$0xff] %v6177_v48 }
 0x611   :  { %3022 = vmatprep.subr.bf16.mxu0 %v6167_v57  ;;  %v2898_v57 = vld [vmem:[#allocation3 + $0x12] sm:$0x3f] }
 0x612   :  { %2858 = vmatmul.mubr.bf16.vlgmr.msra.gmra.mrb[48].mxu1 %v6036_v61  ;;  %v6225_v61 = vld [vmem:[#allocation15 + $0x1b8] ss:$24 sps:$4 sm:$0xff]  }
 0x613   :  { %2982 = vmatpush1.bf16.msra.mxu1 %v6171_v29  ;;  %7244 = vst [vmem:[#allocation54_spill] sm:$0xff] %v6225_v61 }
 0x614   :  { %2983 = vmatprep.subr.bf16.mxu1 %v6174_v55 }
 0x617   :  { %2984 = vmatpush1.bf16.msra.mxu1 %v6177_v48 }
 0x618   :  { %2985 = vmatprep.subr.bf16.mxu1 %v6180_v6 }
 0x61b   :  { %2986 = vmatpush1.bf16.msra.mxu1 %v6183_v50 }
 0x61c   :  { %2987 = vmatprep.subr.bf16.mxu1 %v6186_v27 }
 0x61f   :  { %2988 = vmatpush1.bf16.msra.mxu1 %v6189_v36 }
 0x620   :  { %2989 = vmatprep.subr.bf16.mxu1 %v6192_v2 }
 0x623   :  { %2990 = vmatpush1.bf16.msra.mxu1 %v6195_v63 }
 0x624   :  { %2991 = vmatprep.subr.bf16.mxu1 %v6198_v49 }
 0x627   :  { %2992 = vmatpush1.bf16.msra.mxu1 %v6201_v33 }
 0x628   :  { %2993 = vmatprep.subr.bf16.mxu1 %v6204_v31 }
 0x62b   :  { %2994 = vmatpush1.bf16.msra.mxu1 %v6207_v34 }
 0x62c   :  { %2995 = vmatprep.subr.bf16.mxu1 %v6210_v37 }
 0x62f   :  { %2996 = vmatpush1.bf16.msra.mxu1 %v6213_v23 }
 0x630   :  { %2997 = vmatprep.subr.bf16.mxu1 %v6216_v59  ;;  %v6234_v59 = vld [vmem:[#allocation15 + $0x21c] ss:$24 sps:$4 sm:$0xff]  }
 0x631   :  { %7247 = vst [vmem:[#allocation57_spill] sm:$0xff] %v6234_v59 }
 0x633   :  { %2998 = vmatpush1.bf16.msra.mxu1 %v6219_v18  ;;  %v6237_v18 = vld [vmem:[#allocation15 + $0x218] ss:$24 sps:$4 sm:$0xff]  }
 0x634   :  { %2999 = vmatprep.subr.bf16.mxu1 %v6222_v11  ;;  %7248 = vst [vmem:[#allocation58_spill] sm:$0xff] %v6237_v18  ;;  %v6240_v11 = vld [vmem:[#allocation15 + $0x24c] ss:$24 sps:$4 sm:$0xff]  }
 0x635   :  { %7249 = vst [vmem:[#allocation59_spill] sm:$0xff] %v6240_v11 }
 0x637   :  { %3000 = vmatpush1.bf16.msra.mxu1 %v6225_v61  ;;  %v6243_v61 = vld [vmem:[#allocation15 + $0x248] ss:$24 sps:$4 sm:$0xff]  }
 0x638   :  { %3001 = vmatprep.subr.bf16.mxu1 %v6228_v38  ;;  %7250 = vst [vmem:[#allocation60_spill] sm:$0xff] %v6243_v61  ;;  %v6246_v38 = vld [vmem:[#allocation15 + $0x27c] ss:$24 sps:$4 sm:$0xff]  }
 0x639   :  { %7251 = vst [vmem:[#allocation61_spill] sm:$0xff] %v6246_v38 }
 0x63b   :  { %3002 = vmatpush1.bf16.msra.mxu1 %v6231_v62  ;;  %v6249_v62 = vld [vmem:[#allocation15 + $0x278] ss:$24 sps:$4 sm:$0xff]  }
 0x63c   :  { %3003 = vmatprep.subr.bf16.mxu1 %v6234_v59  ;;  %7252 = vst [vmem:[#allocation62_spill] sm:$0xff] %v6249_v62  ;;  %v6252_v59 = vld [vmem:[#allocation15 + $0x2ac] ss:$24 sps:$4 sm:$0xff]  }
 0x63d   :  { %7253 = vst [vmem:[#allocation63_spill] sm:$0xff] %v6252_v59 }
 0x63f   :  { %3004 = vmatpush1.bf16.msra.mxu1 %v6237_v18  ;;  %v6255_v18 = vld [vmem:[#allocation15 + $0x2a8] ss:$24 sps:$4 sm:$0xff]  }
 0x640   :  { %3005 = vmatprep.subr.bf16.mxu1 %v6240_v11  ;;  %7254 = vst [vmem:[#allocation64_spill] sm:$0xff] %v6255_v18  ;;  %v6258_v11 = vld [vmem:[#allocation15 + $0x2dc] ss:$24 sps:$4 sm:$0xff]  }
 0x641   :  { %7255 = vst [vmem:[#allocation65_spill] sm:$0xff] %v6258_v11 }
 0x643   :  { %3006 = vmatpush1.bf16.msra.mxu1 %v6243_v61  ;;  %v6261_v61 = vld [vmem:[#allocation15 + $0x2d8] ss:$24 sps:$4 sm:$0xff]  }
 0x644   :  { %3007 = vmatprep.subr.bf16.mxu1 %v6246_v38  ;;  %7256 = vst [vmem:[#allocation66_spill] sm:$0xff] %v6261_v61  ;;  %v6264_v38 = vld [vmem:[#allocation15 + $0x4] ss:$24 sps:$4 sm:$0xff]  }
 0x645   :  { %7257 = vst [vmem:[#allocation67_spill] sm:$0xff] %v6264_v38 }
 0x647   :  { %3008 = vmatpush1.bf16.msra.mxu1 %v6249_v62  ;;  %v2867_v62 = vld [vmem:[#allocation2 + $0x18] sm:$0x3f] }
 0x648   :  { %3009 = vmatprep.subr.bf16.mxu1 %v6252_v59  ;;  %v2877_v59 = vrot.slane %v2867_v62, 2  ;;  %v2868_v31 = vunpack.c.l.bf16 %v2867_v62 }
 0x64a   :  { %v2879_v27 = vunpack.c.l.bf16 %v2877_v59 }
 0x64b   :  { %3010 = vmatpush1.bf16.msra.mxu1 %v6255_v18 }
 0x64c   :  { %3011 = vmatprep.subr.bf16.mxu1 %v6258_v11 }
 0x64f   :  { %3012 = vmatpush1.bf16.msra.mxu1 %v6261_v61 }
 0x650   :  { %3137 = vmatprep.subr.bf16.mxu1 %v6264_v38 }
 0x6a5   :  { %v2777_v23 = vpop.f32.mrb[44].mxu1  ;;  %v2818_v37 = vpop.f32.mrb[44].mxu0 }
 0x6a6   :  { %v2778_v34 = vadd.f32 %v2777_v23, %v7208_v47  ;;  %v2779_v18 = vpop.f32.mrb[45].mxu1  ;;  %v2820_v33 = vpop.f32.mrb[45].mxu0  ;;  %v2888_v47 = vrot.slane %v2867_v62, 4 }
 0x6a7   :  { %v2780_v49 = vadd.f32 %v2779_v18, %v5379_v42  ;;  %v2781_v11 = vpop.f32.mrb[46].mxu1  ;;  %v2822_v63 = vpop.f32.mrb[46].mxu0  ;;  %v2821_v18 = vadd.f32 %v2820_v33, %v5389_v1 }
 0x6a8   :  { %v2869_v2 = vadd.f32 %v2868_v31, %v2778_v34  ;;  %v2782_v36 = vpop.f32.mrb[47].mxu1  ;;  %v2823_v61 = vpop.f32.mrb[47].mxu0  ;;  %v2819_v63 = vadd.f32 %v2818_v37, %v5386_v39  ;;  %v2890_v59 = vunpack.c.l.bf16 %v2888_v47  ;;  %v2908_v47 = vrot.slane %v2898_v57, 2 }
 0x6a9   :  { %v2880_v6 = vadd.f32 %v2879_v27, %v2780_v49  ;;  %v2899_v36 = vunpack.c.l.bf16 %v2898_v57 }
 0x6aa   :  { %v3774_v50 = vmul.f32 -1.442695, %v2869_v2 }
 0x6ab   :  { %v3775_v38 = vmul.f32 -1.442695, %v2880_v6  ;;  %v2900_v27 = vadd.f32 %v2899_v36, %v2821_v18  ;;  %v2910_v18 = vunpack.c.l.bf16 %v2908_v47 }
 0x6ac   :  { %4115 = vpow2.f32 %v3774_v50 }
 0x6ad   :  { %4117 = vpow2.f32 %v3775_v38  ;;  %v3776_v38 = vmul.f32 -1.442695, %v2900_v27 }
 0x6b6   :  { %v4116_v48 = vpop.eup %4115 }
 0x6b7   :  { %v2873_v55 = vadd.f32 1.0, %v4116_v48  ;;  %v4118_v23 = vpop.eup %4117 }
 0x6b8   :  { %v2884_v29 = vadd.f32 1.0, %v4118_v23 }
 0x6b9   :  { %4119 = vrcp.f32 %v2873_v55 }
 0x6ba   :  { %4121 = vrcp.f32 %v2884_v29 }
 0x6c3   :  { %v4120_v31 = vpop.eup %4119 }
 0x6c4   :  { %v2887_v34 = vmul.f32 %v4120_v31, %v2819_v63  ;;  %v4122_v48 = vpop.eup %4121 }
 0x6c5   :  { %v2893_v55 = vsub.f32 1.0, %v4122_v48  ;;  %v2895_v2 = vmul.f32 %v4122_v48, %v6023_v13  ;;  %v2919_v48 = vrot.slane %v2898_v57, 4 }
 0x6c6   :  { %v2891_v50 = vadd.f32 %v2890_v59, %v2887_v34 }
 0x6c8   :  { %4123 = vtanh.f32 %v2891_v50 }
 0x6c9   :  { %4125 = vpow2.f32 %v3776_v38 }
 0x6d2   :  { %v4124_v6 = vpop.eup %4123 }
 0x6d3   :  { %v2894_v62 = vmul.f32 %v4124_v6, %v2893_v55  ;;  %v4126_v33 = vpop.eup %4125  ;;  %v2921_v55 = vunpack.c.l.bf16 %v2919_v48  ;;  %v6337_v48 = vld [vmem:[#allocation15 + $0x100] ss:$24 sps:$4 sm:$0xff]  }
 0x6d4   :  { %v2904_v61 = vadd.f32 1.0, %v4126_v33 }
 0x6d5   :  { %v2896_v49 = vadd.f32 %v2895_v2, %v2894_v62 }
 0x6d6   :  { %4127 = vrcp.f32 %v2904_v61 }
 0x6d7   :  { %v2928_v37 = vsel %vm2734_vm3, %v2896_v49, 0.0 }
 0x6d8   :  { %v2929_v11 = vpack.c.bf16 %v2928_v37, %v2928_v37 }
 0x6da   :  { %2931 = vst [vmem:[#allocation16 + $0x8] sm:$0x3] %v2929_v11 }
 0x6e0   :  { %v4128_v34 = vpop.eup %4127 }
 0x6e5   :  { %v2859_v29 = vpop.f32.mrb[48].mxu1 }
 0x6e6   :  { %v2860_v23 = vadd.f32 %v2859_v29, %v5415_v45  ;;  %v2861_v63 = vpop.f32.mrb[49].mxu1 }
 0x6e7   :  { %v2862_v31 = vadd.f32 %v2861_v63, %v5418_v7  ;;  %v2863_v36 = vpop.f32.mrb[50].mxu1 }
 0x6e8   :  { %v2911_v59 = vadd.f32 %v2910_v18, %v2860_v23  ;;  %v2864_v27 = vpop.f32.mrb[51].mxu1  ;;  %v6280_v23 = vsel %vm2734_vm3, %v2896_v49, %v6023_v13  ;;  %v6305_v13 = vld [vmem:[#allocation15 + $0x40] ss:$24 sps:$4 sm:$0xff]   ;;  %v6313_v49 = vld [vmem:[#allocation15 + $0x70] ss:$24 sps:$4 sm:$0xff]  }
 0x6e9   :  { %v2918_v50 = vmul.f32 %v4128_v34, %v2862_v31  ;;  %v6293_v36 = vpack.c.bf16 %v6280_v23, %v6280_v23  ;;  %v6316_v34 = vld [vmem:[#allocation15 + $0xa4] ss:$24 sps:$4 sm:$0xff]   ;;  %v6324_v27 = vld [vmem:[#allocation15 + $0xd4] ss:$24 sps:$4 sm:$0xff]  }
 0x6ea   :  { %v3777_v38 = vmul.f32 -1.442695, %v2911_v59  ;;  %v6321_v59 = vld [vmem:[#allocation15 + $0xa0] ss:$24 sps:$4 sm:$0xff]  }
 0x6eb   :  { %v2922_v2 = vadd.f32 %v2921_v55, %v2918_v50  ;;  %v6329_v50 = vld [vmem:[#allocation15 + $0xd0] ss:$24 sps:$4 sm:$0xff]   ;;  %v6340_v55 = vld [vmem:[#allocation15 + $0x134] ss:$24 sps:$4 sm:$0xff]  }
 0x6ec   :  { %4129 = vpow2.f32 %v3777_v38  ;;  %v6332_v38 = vld [vmem:[#allocation15 + $0x104] ss:$24 sps:$4 sm:$0xff]  }
 0x6f6   :  { %v4130_v6 = vpop.eup %4129 }
 0x6f7   :  { %v2915_v62 = vadd.f32 1.0, %v4130_v6  ;;  %v6345_v6 = vld [vmem:[#allocation15 + $0x130] ss:$24 sps:$4 sm:$0xff]  }
 0x6f9   :  { %4131 = vrcp.f32 %v2915_v62  ;;  %v6348_v62 = vld [vmem:[#allocation15 + $0x164] ss:$24 sps:$4 sm:$0xff]  }
 0x6fa   :  { %4133 = vtanh.f32 %v2922_v2  ;;  %v6353_v2 = vld [vmem:[#allocation15 + $0x160] ss:$24 sps:$4 sm:$0xff]  }
 0x703   :  { %v4132_v33 = vpop.eup %4131 }
 0x704   :  { %v2924_v37 = vsub.f32 1.0, %v4132_v33  ;;  %v4134_v11 = vpop.eup %4133  ;;  %v2926_v47 = vmul.f32 %v4132_v33, %v6030_v52  ;;  %v6356_v33 = vld [vmem:[#allocation15 + $0x194] ss:$24 sps:$4 sm:$0xff]  }
 0x706   :  { %v2925_v61 = vmul.f32 %v4134_v11, %v2924_v37  ;;  %v6361_v37 = vld [vmem:[#allocation15 + $0x190] ss:$24 sps:$4 sm:$0xff]   ;;  %v6364_v11 = vld [vmem:[#allocation15 + $0x1c4] ss:$24 sps:$4 sm:$0xff]  }
 0x708   :  { %v2927_v29 = vadd.f32 %v2926_v47, %v2925_v61  ;;  %v6369_v61 = vld [vmem:[#allocation15 + $0x1c0] ss:$24 sps:$4 sm:$0xff]   ;;  %v6372_v47 = vld [vmem:[#allocation15 + $0x1f4] ss:$24 sps:$4 sm:$0xff]  }
 0x709   :  { %7258 = vst [vmem:[#allocation68_spill] sm:$0xff] %v6369_v61  ;;  %7259 = vst [vmem:[#allocation69_spill] sm:$0xff] %v6372_v47 }
 0x70a   :  { %v2932_v57 = vsel %vm2725_vm2, %v2927_v29, 0.0  ;;  %v6287_v18 = vsel %vm2725_vm2, %v2927_v29, %v6030_v52  ;;  %v6308_v52 = vld [vmem:[#allocation15 + $0x74] ss:$24 sps:$4 sm:$0xff]   ;;  %v6377_v29 = vld [vmem:[#allocation15 + $0x1f0] ss:$24 sps:$4 sm:$0xff]  }
 0x70b   :  { %v2933_v63 = vpack.c.bf16 %v2932_v57, %v2932_v57  ;;  %v2939_v31 = vpack.c.bf16 %v6287_v18, %v6287_v18  ;;  %7260 = vst [vmem:[#allocation70_spill] sm:$0xff] %v6377_v29  ;;  %v6380_v57 = vld [vmem:[#allocation15 + $0x224] ss:$24 sps:$4 sm:$0xff]  }
 0x70c   :  { %7261 = vst [vmem:[#allocation71_spill] sm:$0xff] %v6380_v57 }
 0x70d   :  { %2935 = vst [vmem:[#allocation17 + $0x6] sm:$0x3] %v2933_v63  ;;  %2972 = vmatprep.mubr.bf16.mxu0 %v2939_v31  ;;  %3013 = vmatprep.mubr.bf16.mxu1 %v2939_v31  ;;  %v6385_v63 = vld [vmem:[#allocation15 + $0x220] ss:$24 sps:$4 sm:$0xff]  }
 0x70e   :  { %2973 = vmatmul.mubr.bf16.vlgmr.msra.gmra.mrb[48].mxu0 %v6293_v36  ;;  %3014 = vmatmul.mubr.bf16.vlgmr.msra.gmra.mrb[52].mxu1 %v6293_v36  ;;  %7262 = vst [vmem:[#allocation72_spill] sm:$0xff] %v6385_v63 }
 0x70f   :  { %3023 = vmatpush1.bf16.msra.mxu0 %v6297_v35  ;;  %3054 = vmatprep.mubr.bf16.mxu0 %v2939_v31  ;;  %v6388_v31 = vld [vmem:[#allocation15 + $0x254] ss:$24 sps:$4 sm:$0xff]  }
 0x710   :  { %3024 = vmatprep.subr.bf16.mxu0 %v6300_v60  ;;  %3138 = vmatpush1.bf16.msra.mxu1 %v6042_v54  ;;  %7263 = vst [vmem:[#allocation73_spill] sm:$0xff] %v6388_v31 }
 0x711   :  { %3139 = vmatprep.subr.bf16.mxu1 %v6045_v4 }
 0x713   :  { %3025 = vmatpush1.bf16.msra.mxu0 %v6305_v13 }
 0x714   :  { %3026 = vmatprep.subr.bf16.mxu0 %v6308_v52  ;;  %3140 = vmatpush1.bf16.msra.mxu1 %v6050_v46 }
 0x715   :  { %3141 = vmatprep.subr.bf16.mxu1 %v6053_v56 }
 0x717   :  { %3027 = vmatpush1.bf16.msra.mxu0 %v6313_v49 }
 0x718   :  { %3028 = vmatprep.subr.bf16.mxu0 %v6316_v34  ;;  %3142 = vmatpush1.bf16.msra.mxu1 %v6058_v15 }
 0x719   :  { %3143 = vmatprep.subr.bf16.mxu1 %v6061_v40 }
 0x71b   :  { %3029 = vmatpush1.bf16.msra.mxu0 %v6321_v59 }
 0x71c   :  { %3030 = vmatprep.subr.bf16.mxu0 %v6324_v27  ;;  %3144 = vmatpush1.bf16.msra.mxu1 %v6066_v17 }
 0x71d   :  { %3145 = vmatprep.subr.bf16.mxu1 %v6069_v44 }
 0x71f   :  { %3031 = vmatpush1.bf16.msra.mxu0 %v6329_v50 }
 0x720   :  { %3032 = vmatprep.subr.bf16.mxu0 %v6332_v38  ;;  %3146 = vmatpush1.bf16.msra.mxu1 %v6074_v22 }
 0x721   :  { %3147 = vmatprep.subr.bf16.mxu1 %v6077_v58 }
 0x723   :  { %3033 = vmatpush1.bf16.msra.mxu0 %v6337_v48 }
 0x724   :  { %3034 = vmatprep.subr.bf16.mxu0 %v6340_v55  ;;  %3148 = vmatpush1.bf16.msra.mxu1 %v6082_v19 }
 0x725   :  { %3149 = vmatprep.subr.bf16.mxu1 %v6085_v5 }
 0x727   :  { %3035 = vmatpush1.bf16.msra.mxu0 %v6345_v6 }
 0x728   :  { %3036 = vmatprep.subr.bf16.mxu0 %v6348_v62  ;;  %3150 = vmatpush1.bf16.msra.mxu1 %v6090_v8 }
 0x729   :  { %3151 = vmatprep.subr.bf16.mxu1 %v6093_v32 }
 0x72b   :  { %3037 = vmatpush1.bf16.msra.mxu0 %v6353_v2 }
 0x72c   :  { %3038 = vmatprep.subr.bf16.mxu0 %v6356_v33  ;;  %3152 = vmatpush1.bf16.msra.mxu1 %v6098_v16 }
 0x72d   :  { %3153 = vmatprep.subr.bf16.mxu1 %v6101_v3 }
 0x72f   :  { %3039 = vmatpush1.bf16.msra.mxu0 %v6361_v37 }
 0x730   :  { %3040 = vmatprep.subr.bf16.mxu0 %v6364_v11  ;;  %3154 = vmatpush1.bf16.msra.mxu1 %v6106_v9  ;;  %v3095_v9 = vld [vmem:[#allocation3 + $0xc] sm:$0x3f] }
 0x731   :  { %3155 = vmatprep.subr.bf16.mxu1 %v6109_v10 }
 0x733   :  { %3041 = vmatpush1.bf16.msra.mxu0 %v6369_v61 }
 0x734   :  { %3042 = vmatprep.subr.bf16.mxu0 %v6372_v47  ;;  %3156 = vmatpush1.bf16.msra.mxu1 %v6114_v25 }
 0x735   :  { %3157 = vmatprep.subr.bf16.mxu1 %v6117_v30 }
 0x737   :  { %3043 = vmatpush1.bf16.msra.mxu0 %v6377_v29  ;;  %v6393_v29 = vld [vmem:[#allocation15 + $0x250] ss:$24 sps:$4 sm:$0xff]  }
 0x738   :  { %3044 = vmatprep.subr.bf16.mxu0 %v6380_v57  ;;  %3158 = vmatpush1.bf16.msra.mxu1 %v6122_v20  ;;  %7264 = vst [vmem:[#allocation74_spill] sm:$0xff] %v6393_v29  ;;  %v6396_v57 = vld [vmem:[#allocation15 + $0x284] ss:$24 sps:$4 sm:$0xff]  }
 0x739   :  { %3159 = vmatprep.subr.bf16.mxu1 %v6125_v21  ;;  %7265 = vst [vmem:[#allocation75_spill] sm:$0xff] %v6396_v57 }
 0x73b   :  { %3045 = vmatpush1.bf16.msra.mxu0 %v6385_v63  ;;  %v6401_v63 = vld [vmem:[#allocation15 + $0x280] ss:$24 sps:$4 sm:$0xff]  }
 0x73c   :  { %3046 = vmatprep.subr.bf16.mxu0 %v6388_v31  ;;  %3160 = vmatpush1.bf16.msra.mxu1 %v6130_v26  ;;  %7266 = vst [vmem:[#allocation76_spill] sm:$0xff] %v6401_v63  ;;  %v6404_v31 = vld [vmem:[#allocation15 + $0x2b4] ss:$24 sps:$4 sm:$0xff]  }
 0x73d   :  { %3161 = vmatprep.subr.bf16.mxu1 %v6133_v24  ;;  %7267 = vst [vmem:[#allocation77_spill] sm:$0xff] %v6404_v31 }
 0x73f   :  { %3047 = vmatpush1.bf16.msra.mxu0 %v6393_v29  ;;  %v6409_v29 = vld [vmem:[#allocation15 + $0x2b0] ss:$24 sps:$4 sm:$0xff]  }
 0x740   :  { %3048 = vmatprep.subr.bf16.mxu0 %v6396_v57  ;;  %3162 = vmatpush1.bf16.msra.mxu1 %v6138_v28  ;;  %7268 = vst [vmem:[#allocation78_spill] sm:$0xff] %v6409_v29  ;;  %v6412_v57 = vld [vmem:[#allocation15 + $0x2e4] ss:$24 sps:$4 sm:$0xff]  }
 0x741   :  { %3163 = vmatprep.subr.bf16.mxu1 %v6141_v12  ;;  %7269 = vst [vmem:[#allocation79_spill] sm:$0xff] %v6412_v57  ;;  %v7304_v28 = vld [vmem:[#allocation31_spill] sm:$0xff] }
 0x743   :  { %3049 = vmatpush1.bf16.msra.mxu0 %v6401_v63  ;;  %v6417_v63 = vld [vmem:[#allocation15 + $0x2e0] ss:$24 sps:$4 sm:$0xff]  }
 0x744   :  { %3050 = vmatprep.subr.bf16.mxu0 %v6404_v31  ;;  %3164 = vmatpush1.bf16.msra.mxu1 %v6146_v43  ;;  %7270 = vst [vmem:[#allocation80_spill] sm:$0xff] %v6417_v63  ;;  %v7273_v43 = vld [vmem:[#allocation91_spill] sm:$0xff]  ;;  %v7277_v31 = vld [vmem:[#allocation93_spill] sm:$0xff] }
 0x745   :  { %3165 = vmatprep.subr.bf16.mxu1 %v6149_v41  ;;  %v7271_v41 = vld [vmem:[#allocation39_spill] sm:$0xff] }
 0x747   :  { %3051 = vmatpush1.bf16.msra.mxu0 %v6409_v29  ;;  %v7272_v29 = vld [vmem:[#allocation41_spill] sm:$0xff] }
 0x748   :  { %3052 = vmatprep.subr.bf16.mxu0 %v6412_v57  ;;  %3166 = vmatpush1.bf16.msra.mxu1 %v6154_v51  ;;  %v7274_v57 = vld [vmem:[#allocation92_spill] sm:$0xff]  ;;  %v7275_v51 = vld [vmem:[#allocation42_spill] sm:$0xff] }
 0x749   :  { %3167 = vmatprep.subr.bf16.mxu1 %v6157_v53  ;;  %v7276_v53 = vld [vmem:[#allocation43_spill] sm:$0xff] }
 0x74b   :  { %3053 = vmatpush1.bf16.msra.mxu0 %v6417_v63  ;;  %v7278_v63 = vld [vmem:[#allocation94_spill] sm:$0xff] }
 0x74c   :  { %3178 = vmatprep.subr.bf16.mxu0 %v6161_v0  ;;  %3168 = vmatpush1.bf16.msra.mxu1 %v6164_v14  ;;  %v7279_v0 = vld [vmem:[#allocation44_spill] sm:$0xff]  ;;  %v7280_v14 = vld [vmem:[#allocation45_spill] sm:$0xff] }
 0x74d   :  { %3219 = vmatprep.subr.bf16.mxu1 %v7271_v41  ;;  %v7281_v41 = vld [vmem:[#allocation95_spill] sm:$0xff] }
 0x74e   :  { %3055 = vmatmul.mubr.bf16.vlgmr.msra.gmra.mrb[52].mxu0 %v6293_v36  ;;  %v7282_v36 = vld [vmem:[#allocation46_spill] sm:$0xff] }
 0x74f   :  { %3179 = vmatpush1.bf16.msra.mxu0 %v7272_v29  ;;  %v7283_v29 = vld [vmem:[#allocation47_spill] sm:$0xff] }
 0x750   :  { %3180 = vmatprep.subr.bf16.mxu0 %v7273_v43  ;;  %v7284_v43 = vld [vmem:[#allocation48_spill] sm:$0xff] }
 0x753   :  { %3181 = vmatpush1.bf16.msra.mxu0 %v7274_v57  ;;  %v7285_v57 = vld [vmem:[#allocation49_spill] sm:$0xff] }
 0x754   :  { %3182 = vmatprep.subr.bf16.mxu0 %v7275_v51  ;;  %v7286_v51 = vld [vmem:[#allocation50_spill] sm:$0xff] }
 0x757   :  { %3183 = vmatpush1.bf16.msra.mxu0 %v7276_v53  ;;  %v7287_v53 = vld [vmem:[#allocation51_spill] sm:$0xff] }
 0x758   :  { %3184 = vmatprep.subr.bf16.mxu0 %v7277_v31  ;;  %v7288_v31 = vld [vmem:[#allocation52_spill] sm:$0xff] }
 0x75b   :  { %3185 = vmatpush1.bf16.msra.mxu0 %v7278_v63  ;;  %v7289_v63 = vld [vmem:[#allocation53_spill] sm:$0xff] }
 0x75c   :  { %3186 = vmatprep.subr.bf16.mxu0 %v7279_v0  ;;  %v7290_v0 = vld [vmem:[#allocation54_spill] sm:$0xff] }
 0x75f   :  { %3187 = vmatpush1.bf16.msra.mxu0 %v7280_v14  ;;  %v7291_v14 = vld [vmem:[#allocation55_spill] sm:$0xff] }
 0x760   :  { %3188 = vmatprep.subr.bf16.mxu0 %v7281_v41  ;;  %v7292_v41 = vld [vmem:[#allocation56_spill] sm:$0xff] }
 0x763   :  { %3189 = vmatpush1.bf16.msra.mxu0 %v7282_v36  ;;  %v7293_v36 = vld [vmem:[#allocation57_spill] sm:$0xff] }
 0x764   :  { %3190 = vmatprep.subr.bf16.mxu0 %v7283_v29  ;;  %v7294_v29 = vld [vmem:[#allocation58_spill] sm:$0xff] }
 0x767   :  { %3191 = vmatpush1.bf16.msra.mxu0 %v7284_v43  ;;  %v7295_v43 = vld [vmem:[#allocation59_spill] sm:$0xff] }
 0x768   :  { %3192 = vmatprep.subr.bf16.mxu0 %v7285_v57  ;;  %v7296_v57 = vld [vmem:[#allocation60_spill] sm:$0xff] }
 0x76b   :  { %3193 = vmatpush1.bf16.msra.mxu0 %v7286_v51  ;;  %v7297_v51 = vld [vmem:[#allocation61_spill] sm:$0xff] }
 0x76c   :  { %3194 = vmatprep.subr.bf16.mxu0 %v7287_v53  ;;  %v7298_v53 = vld [vmem:[#allocation62_spill] sm:$0xff] }
 0x76f   :  { %3195 = vmatpush1.bf16.msra.mxu0 %v7288_v31  ;;  %v7299_v31 = vld [vmem:[#allocation63_spill] sm:$0xff] }
 0x770   :  { %3196 = vmatprep.subr.bf16.mxu0 %v7289_v63  ;;  %v7300_v63 = vld [vmem:[#allocation64_spill] sm:$0xff] }
 0x773   :  { %3197 = vmatpush1.bf16.msra.mxu0 %v7290_v0  ;;  %v7301_v0 = vld [vmem:[#allocation65_spill] sm:$0xff] }
 0x774   :  { %3198 = vmatprep.subr.bf16.mxu0 %v7291_v14  ;;  %v7302_v14 = vld [vmem:[#allocation66_spill] sm:$0xff] }
 0x777   :  { %3199 = vmatpush1.bf16.msra.mxu0 %v7292_v41  ;;  %v7303_v41 = vld [vmem:[#allocation67_spill] sm:$0xff] }
 0x778   :  { %3200 = vmatprep.subr.bf16.mxu0 %v7293_v36  ;;  %v3064_v36 = vld [vmem:[#allocation2 + $0x1e] sm:$0x3f] }
 0x779   :  { %v3065_v24 = vunpack.c.l.bf16 %v3064_v36 }
 0x77b   :  { %3201 = vmatpush1.bf16.msra.mxu0 %v7294_v29 }
 0x77c   :  { %3202 = vmatprep.subr.bf16.mxu0 %v7295_v43  ;;  %v3074_v43 = vrot.slane %v3064_v36, 2 }
 0x77e   :  { %v3076_v30 = vunpack.c.l.bf16 %v3074_v43 }
 0x77f   :  { %3203 = vmatpush1.bf16.msra.mxu0 %v7296_v57 }
 0x780   :  { %3204 = vmatprep.subr.bf16.mxu0 %v7297_v51 }
 0x783   :  { %3205 = vmatpush1.bf16.msra.mxu0 %v7298_v53 }
 0x784   :  { %3206 = vmatprep.subr.bf16.mxu0 %v7299_v31 }
 0x787   :  { %3207 = vmatpush1.bf16.msra.mxu0 %v7300_v63 }
 0x788   :  { %3208 = vmatprep.subr.bf16.mxu0 %v7301_v0 }
 0x78b   :  { %3209 = vmatpush1.bf16.msra.mxu0 %v7302_v14 }
 0x78c   :  { %3334 = vmatprep.subr.bf16.mxu0 %v7303_v41 }
 0x7e1   :  { %v2974_v29 = vpop.f32.mrb[48].mxu0  ;;  %v3015_v12 = vpop.f32.mrb[52].mxu1 }
 0x7e2   :  { %v2975_v57 = vadd.f32 %v2974_v29, %v7304_v28  ;;  %v2976_v51 = vpop.f32.mrb[49].mxu0  ;;  %v3017_v26 = vpop.f32.mrb[53].mxu1  ;;  %v3085_v28 = vrot.slane %v3064_v36, 4  ;;  %v7326_v36 = vld [vmem:[#allocation77_spill] sm:$0xff] }
 0x7e3   :  { %v2977_v53 = vadd.f32 %v2976_v51, %v5379_v42  ;;  %v2978_v31 = vpop.f32.mrb[50].mxu0  ;;  %v3019_v21 = vpop.f32.mrb[54].mxu1  ;;  %v3018_v51 = vadd.f32 %v3017_v26, %v5389_v1 }
 0x7e4   :  { %v3066_v63 = vadd.f32 %v3065_v24, %v2975_v57  ;;  %v2979_v20 = vpop.f32.mrb[51].mxu0  ;;  %v3020_v0 = vpop.f32.mrb[55].mxu1  ;;  %v3016_v21 = vadd.f32 %v3015_v12, %v5386_v39  ;;  %v3087_v43 = vunpack.c.l.bf16 %v3085_v28 }
 0x7e5   :  { %v3077_v25 = vadd.f32 %v3076_v30, %v2977_v53  ;;  %v3096_v20 = vunpack.c.l.bf16 %v3095_v9 }
 0x7e6   :  { %v3778_v14 = vmul.f32 -1.442695, %v3066_v63 }
 0x7e7   :  { %v3779_v41 = vmul.f32 -1.442695, %v3077_v25  ;;  %v3097_v30 = vadd.f32 %v3096_v20, %v3018_v51 }
 0x7e8   :  { %4135 = vpow2.f32 %v3778_v14 }
 0x7e9   :  { %4137 = vpow2.f32 %v3779_v41  ;;  %v3780_v25 = vmul.f32 -1.442695, %v3097_v30 }
 0x7f2   :  { %v4136_v47 = vpop.eup %4135 }
 0x7f3   :  { %v3070_v61 = vadd.f32 1.0, %v4136_v47  ;;  %v4138_v29 = vpop.eup %4137 }
 0x7f4   :  { %v3081_v10 = vadd.f32 1.0, %v4138_v29 }
 0x7f5   :  { %4139 = vrcp.f32 %v3070_v61 }
 0x7f6   :  { %4141 = vrcp.f32 %v3081_v10  ;;  %v3105_v10 = vrot.slane %v3095_v9, 2 }
 0x7ff   :  { %v4140_v24 = vpop.eup %4139 }
 0x800   :  { %v3084_v0 = vmul.f32 %v4140_v24, %v3016_v21  ;;  %v4142_v14 = vpop.eup %4141  ;;  %v3107_v21 = vunpack.c.l.bf16 %v3105_v10 }
 0x801   :  { %v3090_v61 = vsub.f32 1.0, %v4142_v14  ;;  %v3092_v63 = vmul.f32 %v4142_v14, %v6280_v23 }
 0x802   :  { %v3088_v53 = vadd.f32 %v3087_v43, %v3084_v0 }
 0x804   :  { %4143 = vtanh.f32 %v3088_v53 }
 0x805   :  { %4145 = vpow2.f32 %v3780_v25 }
 0x80e   :  { %v4144_v47 = vpop.eup %4143 }
 0x80f   :  { %v3091_v57 = vmul.f32 %v4144_v47, %v3090_v61  ;;  %v4146_v26 = vpop.eup %4145  ;;  %v3116_v61 = vrot.slane %v3095_v9, 4 }
 0x810   :  { %v3101_v29 = vadd.f32 1.0, %v4146_v26 }
 0x811   :  { %v3093_v31 = vadd.f32 %v3092_v63, %v3091_v57  ;;  %v3118_v47 = vunpack.c.l.bf16 %v3116_v61  ;;  %v7330_v61 = vld [vmem:[#allocation79_spill] sm:$0xff] }
 0x812   :  { %4147 = vrcp.f32 %v3101_v29 }
 0x813   :  { %v3125_v12 = vsel %vm2525_vm1, %v3093_v31, 0.0 }
 0x814   :  { %v3126_v41 = vpack.c.bf16 %v3125_v12, %v3125_v12 }
 0x816   :  { %3128 = vst [vmem:[#allocation16 + $0xa] sm:$0x3] %v3126_v41 }
 0x81c   :  { %v4148_v43 = vpop.eup %4147 }
 0x821   :  { %v3056_v28 = vpop.f32.mrb[52].mxu0 }
 0x822   :  { %v3057_v51 = vadd.f32 %v3056_v28, %v5415_v45  ;;  %v3058_v24 = vpop.f32.mrb[53].mxu0 }
 0x823   :  { %v3059_v20 = vadd.f32 %v3058_v24, %v5418_v7  ;;  %v3060_v0 = vpop.f32.mrb[54].mxu0 }
 0x824   :  { %v3108_v30 = vadd.f32 %v3107_v21, %v3057_v51  ;;  %v3061_v53 = vpop.f32.mrb[55].mxu0  ;;  %v6469_v51 = vsel %vm2525_vm1, %v3093_v31, %v6280_v23  ;;  %v7323_v23 = vld [vmem:[#allocation37_spill] sm:$0xff]  ;;  %v7325_v31 = vld [vmem:[#allocation76_spill] sm:$0xff]  ;;  %v7341_v21 = vld [vmem:[#allocation43_spill] sm:$0xff] }
 0x825   :  { %v3115_v25 = vmul.f32 %v4148_v43, %v3059_v20  ;;  %v7327_v53 = vld [vmem:[#allocation87_spill] sm:$0xff] }
 0x826   :  { %v3781_v14 = vmul.f32 -1.442695, %v3108_v30  ;;  %v6482_v30 = vpack.c.bf16 %v6469_v51, %v6469_v51 }
 0x827   :  { %v3119_v26 = vadd.f32 %v3118_v47, %v3115_v25  ;;  %v7328_v25 = vld [vmem:[#allocation88_spill] sm:$0xff] }
 0x828   :  { %4149 = vpow2.f32 %v3781_v14  ;;  %v7329_v14 = vld [vmem:[#allocation78_spill] sm:$0xff]  ;;  %v7331_v47 = vld [vmem:[#allocation40_spill] sm:$0xff] }
 0x832   :  { %v4150_v57 = vpop.eup %4149 }
 0x833   :  { %v3112_v63 = vadd.f32 1.0, %v4150_v57  ;;  %v7332_v57 = vld [vmem:[#allocation30_spill] sm:$0xff] }
 0x835   :  { %4151 = vrcp.f32 %v3112_v63  ;;  %v7333_v63 = vld [vmem:[#allocation80_spill] sm:$0xff] }
 0x836   :  { %4153 = vtanh.f32 %v3119_v26  ;;  %v7334_v26 = vld [vmem:[#allocation89_spill] sm:$0xff] }
 0x83f   :  { %v4152_v12 = vpop.eup %4151 }
 0x840   :  { %v3121_v41 = vsub.f32 1.0, %v4152_v12  ;;  %v4154_v29 = vpop.eup %4153  ;;  %v3123_v28 = vmul.f32 %v4152_v12, %v6287_v18  ;;  %v7335_v12 = vld [vmem:[#allocation90_spill] sm:$0xff] }
 0x842   :  { %v3122_v10 = vmul.f32 %v4154_v29, %v3121_v41  ;;  %v7336_v41 = vld [vmem:[#allocation39_spill] sm:$0xff]  ;;  %v7337_v29 = vld [vmem:[#allocation41_spill] sm:$0xff] }
 0x844   :  { %v3124_v24 = vadd.f32 %v3123_v28, %v3122_v10  ;;  %v7338_v10 = vld [vmem:[#allocation91_spill] sm:$0xff]  ;;  %v7339_v28 = vld [vmem:[#allocation92_spill] sm:$0xff] }
 0x846   :  { %v3129_v9 = vsel %vm2516_vm0, %v3124_v24, 0.0  ;;  %v6476_v20 = vsel %vm2516_vm0, %v3124_v24, %v6287_v18  ;;  %v7324_v18 = vld [vmem:[#allocation38_spill] sm:$0xff] }
 0x847   :  { %v3130_v0 = vpack.c.bf16 %v3129_v9, %v3129_v9  ;;  %v3136_v43 = vpack.c.bf16 %v6476_v20, %v6476_v20  ;;  %v7340_v24 = vld [vmem:[#allocation42_spill] sm:$0xff]  ;;  %v7342_v9 = vld [vmem:[#allocation93_spill] sm:$0xff] }
 0x849   :  { %3132 = vst [vmem:[#allocation17 + $0x4] sm:$0x3] %v3130_v0  ;;  %3169 = vmatprep.mubr.bf16.mxu1 %v3136_v43  ;;  %3210 = vmatprep.mubr.bf16.mxu0 %v3136_v43  ;;  %v7343_v0 = vld [vmem:[#allocation94_spill] sm:$0xff] }
 0x84a   :  { %3170 = vmatmul.mubr.bf16.vlgmr.msra.gmra.mrb[56].mxu1 %v6482_v30  ;;  %3211 = vmatmul.mubr.bf16.vlgmr.msra.gmra.mrb[56].mxu0 %v6482_v30 }
 0x84b   :  { %3220 = vmatpush1.bf16.msra.mxu1 %v6297_v35  ;;  %3251 = vmatprep.mubr.bf16.mxu1 %v3136_v43  ;;  %v7344_v43 = vld [vmem:[#allocation44_spill] sm:$0xff] }
 0x84c   :  { %3221 = vmatprep.subr.bf16.mxu1 %v6300_v60  ;;  %3335 = vmatpush1.bf16.msra.mxu0 %v6042_v54  ;;  %v7307_v54 = vld [vmem:[#allocation34_spill] sm:$0xff] }
 0x84d   :  { %3336 = vmatprep.subr.bf16.mxu0 %v6045_v4  ;;  %v7308_v4 = vld [vmem:[#allocation35_spill] sm:$0xff] }
 0x84f   :  { %3222 = vmatpush1.bf16.msra.mxu1 %v6305_v13 }
 0x850   :  { %3223 = vmatprep.subr.bf16.mxu1 %v6308_v52  ;;  %3337 = vmatpush1.bf16.msra.mxu0 %v6050_v46  ;;  %v7309_v46 = vld [vmem:[#allocation68_spill] sm:$0xff] }
 0x851   :  { %3338 = vmatprep.subr.bf16.mxu0 %v6053_v56  ;;  %v7310_v56 = vld [vmem:[#allocation69_spill] sm:$0xff] }
 0x853   :  { %3224 = vmatpush1.bf16.msra.mxu1 %v6313_v49 }
 0x854   :  { %3225 = vmatprep.subr.bf16.mxu1 %v6316_v34  ;;  %3339 = vmatpush1.bf16.msra.mxu0 %v6058_v15  ;;  %v7311_v15 = vld [vmem:[#allocation83_spill] sm:$0xff] }
 0x855   :  { %3340 = vmatprep.subr.bf16.mxu0 %v6061_v40  ;;  %v7312_v40 = vld [vmem:[#allocation84_spill] sm:$0xff] }
 0x857   :  { %3226 = vmatpush1.bf16.msra.mxu1 %v6321_v59 }
 0x858   :  { %3227 = vmatprep.subr.bf16.mxu1 %v6324_v27  ;;  %3341 = vmatpush1.bf16.msra.mxu0 %v6066_v17  ;;  %v7313_v17 = vld [vmem:[#allocation70_spill] sm:$0xff] }
 0x859   :  { %3342 = vmatprep.subr.bf16.mxu0 %v6069_v44  ;;  %v7314_v44 = vld [vmem:[#allocation71_spill] sm:$0xff] }
 0x85b   :  { %3228 = vmatpush1.bf16.msra.mxu1 %v6329_v50 }
 0x85c   :  { %3229 = vmatprep.subr.bf16.mxu1 %v6332_v38  ;;  %3343 = vmatpush1.bf16.msra.mxu0 %v6074_v22  ;;  %v7315_v22 = vld [vmem:[#allocation36_spill] sm:$0xff] }
 0x85d   :  { %3344 = vmatprep.subr.bf16.mxu0 %v6077_v58  ;;  %v7316_v58 = vld [vmem:[#allocation29_spill] sm:$0xff] }
 0x85f   :  { %3230 = vmatpush1.bf16.msra.mxu1 %v6337_v48 }
 0x860   :  { %3231 = vmatprep.subr.bf16.mxu1 %v6340_v55  ;;  %3345 = vmatpush1.bf16.msra.mxu0 %v6082_v19  ;;  %v7317_v19 = vld [vmem:[#allocation72_spill] sm:$0xff] }
 0x861   :  { %3346 = vmatprep.subr.bf16.mxu0 %v6085_v5  ;;  %v7318_v5 = vld [vmem:[#allocation73_spill] sm:$0xff] }
 0x863   :  { %3232 = vmatpush1.bf16.msra.mxu1 %v6345_v6 }
 0x864   :  { %3233 = vmatprep.subr.bf16.mxu1 %v6348_v62  ;;  %3347 = vmatpush1.bf16.msra.mxu0 %v6090_v8  ;;  %v7319_v8 = vld [vmem:[#allocation85_spill] sm:$0xff] }
 0x865   :  { %3348 = vmatprep.subr.bf16.mxu0 %v6093_v32  ;;  %v7320_v32 = vld [vmem:[#allocation86_spill] sm:$0xff] }
 0x867   :  { %3234 = vmatpush1.bf16.msra.mxu1 %v6353_v2 }
 0x868   :  { %3235 = vmatprep.subr.bf16.mxu1 %v6356_v33  ;;  %3349 = vmatpush1.bf16.msra.mxu0 %v6098_v16  ;;  %v7321_v16 = vld [vmem:[#allocation74_spill] sm:$0xff] }
 0x869   :  { %3350 = vmatprep.subr.bf16.mxu0 %v6101_v3  ;;  %v7322_v3 = vld [vmem:[#allocation75_spill] sm:$0xff] }
 0x86b   :  { %3236 = vmatpush1.bf16.msra.mxu1 %v6361_v37 }
 0x86c   :  { %3237 = vmatprep.subr.bf16.mxu1 %v6364_v11  ;;  %3351 = vmatpush1.bf16.msra.mxu0 %v7307_v54  ;;  %v7345_v54 = vld [vmem:[#allocation45_spill] sm:$0xff] }
 0x86d   :  { %3352 = vmatprep.subr.bf16.mxu0 %v7308_v4  ;;  %v7346_v4 = vld [vmem:[#allocation95_spill] sm:$0xff] }
 0x86f   :  { %3238 = vmatpush1.bf16.msra.mxu1 %v7309_v46 }
 0x870   :  { %3239 = vmatprep.subr.bf16.mxu1 %v7310_v56  ;;  %3353 = vmatpush1.bf16.msra.mxu0 %v7311_v15  ;;  %v7348_v15 = vld [vmem:[#allocation47_spill] sm:$0xff] }
 0x871   :  { %3354 = vmatprep.subr.bf16.mxu0 %v7312_v40  ;;  %v7349_v40 = vld [vmem:[#allocation48_spill] sm:$0xff] }
 0x873   :  { %3240 = vmatpush1.bf16.msra.mxu1 %v7313_v17 }
 0x874   :  { %3241 = vmatprep.subr.bf16.mxu1 %v7314_v44  ;;  %3355 = vmatpush1.bf16.msra.mxu0 %v7315_v22  ;;  %v7350_v22 = vld [vmem:[#allocation49_spill] sm:$0xff] }
 0x875   :  { %3356 = vmatprep.subr.bf16.mxu0 %v7316_v58  ;;  %v7351_v58 = vld [vmem:[#allocation50_spill] sm:$0xff] }
 0x877   :  { %3242 = vmatpush1.bf16.msra.mxu1 %v7317_v19 }
 0x878   :  { %3243 = vmatprep.subr.bf16.mxu1 %v7318_v5  ;;  %3357 = vmatpush1.bf16.msra.mxu0 %v7319_v8  ;;  %v7352_v8 = vld [vmem:[#allocation51_spill] sm:$0xff] }
 0x879   :  { %3358 = vmatprep.subr.bf16.mxu0 %v7320_v32  ;;  %v7353_v32 = vld [vmem:[#allocation52_spill] sm:$0xff] }
 0x87b   :  { %3244 = vmatpush1.bf16.msra.mxu1 %v7321_v16 }
 0x87c   :  { %3245 = vmatprep.subr.bf16.mxu1 %v7322_v3  ;;  %3359 = vmatpush1.bf16.msra.mxu0 %v7323_v23  ;;  %v7354_v23 = vld [vmem:[#allocation53_spill] sm:$0xff] }
 0x87d   :  { %3360 = vmatprep.subr.bf16.mxu0 %v7324_v18  ;;  %v7355_v18 = vld [vmem:[#allocation54_spill] sm:$0xff] }
 0x87f   :  { %3246 = vmatpush1.bf16.msra.mxu1 %v7325_v31 }
 0x880   :  { %3247 = vmatprep.subr.bf16.mxu1 %v7326_v36  ;;  %3361 = vmatpush1.bf16.msra.mxu0 %v7327_v53  ;;  %v7356_v53 = vld [vmem:[#allocation55_spill] sm:$0xff] }
 0x881   :  { %3362 = vmatprep.subr.bf16.mxu0 %v7328_v25  ;;  %v7357_v25 = vld [vmem:[#allocation56_spill] sm:$0xff] }
 0x883   :  { %3248 = vmatpush1.bf16.msra.mxu1 %v7329_v14 }
 0x884   :  { %3249 = vmatprep.subr.bf16.mxu1 %v7330_v61  ;;  %3363 = vmatpush1.bf16.msra.mxu0 %v7331_v47  ;;  %v7358_v47 = vld [vmem:[#allocation57_spill] sm:$0xff] }
 0x885   :  { %3364 = vmatprep.subr.bf16.mxu0 %v7332_v57  ;;  %v7359_v57 = vld [vmem:[#allocation58_spill] sm:$0xff] }
 0x887   :  { %3250 = vmatpush1.bf16.msra.mxu1 %v7333_v63 }
 0x888   :  { %3375 = vmatprep.subr.bf16.mxu1 %v7334_v26  ;;  %3365 = vmatpush1.bf16.msra.mxu0 %v7335_v12  ;;  %v7360_v26 = vld [vmem:[#allocation59_spill] sm:$0xff]  ;;  %v7361_v12 = vld [vmem:[#allocation60_spill] sm:$0xff] }
 0x889   :  { %3416 = vmatprep.subr.bf16.mxu0 %v7336_v41  ;;  %v7362_v41 = vld [vmem:[#allocation61_spill] sm:$0xff] }
 0x88a   :  { %3252 = vmatmul.mubr.bf16.vlgmr.msra.gmra.mrb[60].mxu1 %v6482_v30  ;;  %v7347_v30 = vld [vmem:[#allocation46_spill] sm:$0xff] }
 0x88b   :  { %3376 = vmatpush1.bf16.msra.mxu1 %v7337_v29  ;;  %v7363_v29 = vld [vmem:[#allocation62_spill] sm:$0xff] }
 0x88c   :  { %3377 = vmatprep.subr.bf16.mxu1 %v7338_v10  ;;  %v7364_v10 = vld [vmem:[#allocation63_spill] sm:$0xff] }
 0x88f   :  { %3378 = vmatpush1.bf16.msra.mxu1 %v7339_v28  ;;  %v7365_v28 = vld [vmem:[#allocation64_spill] sm:$0xff] }
 0x890   :  { %3379 = vmatprep.subr.bf16.mxu1 %v7340_v24  ;;  %v7366_v24 = vld [vmem:[#allocation65_spill] sm:$0xff] }
 0x893   :  { %3380 = vmatpush1.bf16.msra.mxu1 %v7341_v21  ;;  %v7367_v21 = vld [vmem:[#allocation66_spill] sm:$0xff] }
 0x894   :  { %3381 = vmatprep.subr.bf16.mxu1 %v7342_v9  ;;  %v3261_v9 = vld [vmem:[#allocation2 + $0x24] sm:$0x3f] }
 0x897   :  { %3382 = vmatpush1.bf16.msra.mxu1 %v7343_v0 }
 0x898   :  { %3383 = vmatprep.subr.bf16.mxu1 %v7344_v43 }
 0x89b   :  { %3384 = vmatpush1.bf16.msra.mxu1 %v7345_v54  ;;  %v3271_v54 = vrot.slane %v3261_v9, 2 }
 0x89c   :  { %3385 = vmatprep.subr.bf16.mxu1 %v7346_v4  ;;  %v7368_v4 = vld [vmem:[#allocation31_spill] sm:$0xff] }
 0x89f   :  { %3386 = vmatpush1.bf16.msra.mxu1 %v7347_v30 }
 0x8a0   :  { %3387 = vmatprep.subr.bf16.mxu1 %v7348_v15  ;;  %v3262_v15 = vunpack.c.l.bf16 %v3261_v9 }
 0x8a3   :  { %3388 = vmatpush1.bf16.msra.mxu1 %v7349_v40 }
 0x8a4   :  { %3389 = vmatprep.subr.bf16.mxu1 %v7350_v22 }
 0x8a7   :  { %3390 = vmatpush1.bf16.msra.mxu1 %v7351_v58 }
 0x8a8   :  { %3391 = vmatprep.subr.bf16.mxu1 %v7352_v8 }
 0x8ab   :  { %3392 = vmatpush1.bf16.msra.mxu1 %v7353_v32 }
 0x8ac   :  { %3393 = vmatprep.subr.bf16.mxu1 %v7354_v23 }
 0x8af   :  { %3394 = vmatpush1.bf16.msra.mxu1 %v7355_v18 }
 0x8b0   :  { %3395 = vmatprep.subr.bf16.mxu1 %v7356_v53 }
 0x8b3   :  { %3396 = vmatpush1.bf16.msra.mxu1 %v7357_v25  ;;  %v3273_v25 = vunpack.c.l.bf16 %v3271_v54 }
 0x8b4   :  { %3397 = vmatprep.subr.bf16.mxu1 %v7358_v47 }
 0x8b7   :  { %3398 = vmatpush1.bf16.msra.mxu1 %v7359_v57 }
 0x8b8   :  { %3399 = vmatprep.subr.bf16.mxu1 %v7360_v26 }
 0x8bb   :  { %3400 = vmatpush1.bf16.msra.mxu1 %v7361_v12 }
 0x8bc   :  { %3401 = vmatprep.subr.bf16.mxu1 %v7362_v41 }
 0x8bf   :  { %3402 = vmatpush1.bf16.msra.mxu1 %v7363_v29 }
 0x8c0   :  { %3403 = vmatprep.subr.bf16.mxu1 %v7364_v10  ;;  %v3282_v10 = vrot.slane %v3261_v9, 4 }
 0x8c2   :  { %v3284_v54 = vunpack.c.l.bf16 %v3282_v10 }
 0x8c3   :  { %3404 = vmatpush1.bf16.msra.mxu1 %v7365_v28 }
 0x8c4   :  { %3405 = vmatprep.subr.bf16.mxu1 %v7366_v24  ;;  %v3292_v24 = vld [vmem:[#allocation3 + $0x6] sm:$0x3f] }
 0x8c7   :  { %3406 = vmatpush1.bf16.msra.mxu1 %v7367_v21 }
 0x91d   :  { %v3171_v0 = vpop.f32.mrb[56].mxu1  ;;  %v3212_v43 = vpop.f32.mrb[56].mxu0 }
 0x91e   :  { %v3172_v30 = vadd.f32 %v3171_v0, %v7368_v4  ;;  %v3173_v40 = vpop.f32.mrb[57].mxu1  ;;  %v3214_v22 = vpop.f32.mrb[57].mxu0  ;;  %v3213_v0 = vadd.f32 %v3212_v43, %v5386_v39 }
 0x91f   :  { %v3174_v58 = vadd.f32 %v3173_v40, %v5379_v42  ;;  %v3175_v8 = vpop.f32.mrb[58].mxu1  ;;  %v3216_v32 = vpop.f32.mrb[58].mxu0  ;;  %v3215_v21 = vadd.f32 %v3214_v22, %v5389_v1 }
 0x920   :  { %v3263_v23 = vadd.f32 %v3262_v15, %v3172_v30  ;;  %v3176_v18 = vpop.f32.mrb[59].mxu1  ;;  %v3217_v53 = vpop.f32.mrb[59].mxu0  ;;  %v3293_v15 = vunpack.c.l.bf16 %v3292_v24 }
 0x921   :  { %v3274_v57 = vadd.f32 %v3273_v25, %v3174_v58 }
 0x922   :  { %v3782_v47 = vmul.f32 -1.442695, %v3263_v23  ;;  %v3294_v58 = vadd.f32 %v3293_v15, %v3215_v21 }
 0x923   :  { %v3783_v26 = vmul.f32 -1.442695, %v3274_v57 }
 0x924   :  { %4155 = vpow2.f32 %v3782_v47  ;;  %v3784_v32 = vmul.f32 -1.442695, %v3294_v58 }
 0x925   :  { %4157 = vpow2.f32 %v3783_v26 }
 0x92e   :  { %v4156_v12 = vpop.eup %4155 }
 0x92f   :  { %v3267_v41 = vadd.f32 1.0, %v4156_v12  ;;  %v4158_v29 = vpop.eup %4157 }
 0x930   :  { %v3278_v28 = vadd.f32 1.0, %v4158_v29 }
 0x931   :  { %4159 = vrcp.f32 %v3267_v41  ;;  %v3302_v41 = vrot.slane %v3292_v24, 2 }
 0x932   :  { %4161 = vrcp.f32 %v3278_v28 }
 0x933   :  { %v3304_v28 = vunpack.c.l.bf16 %v3302_v41 }
 0x93b   :  { %v4160_v30 = vpop.eup %4159 }
 0x93c   :  { %v3281_v40 = vmul.f32 %v4160_v30, %v3213_v0  ;;  %v4162_v23 = vpop.eup %4161 }
 0x93d   :  { %v3287_v18 = vsub.f32 1.0, %v4162_v23  ;;  %v3289_v25 = vmul.f32 %v4162_v23, %v6469_v51 }
 0x93e   :  { %v3285_v8 = vadd.f32 %v3284_v54, %v3281_v40 }
 0x940   :  { %4163 = vtanh.f32 %v3285_v8 }
 0x941   :  { %4165 = vpow2.f32 %v3784_v32  ;;  %v3313_v32 = vrot.slane %v3292_v24, 4 }
 0x943   :  { %v3315_v23 = vunpack.c.l.bf16 %v3313_v32 }
 0x94a   :  { %v4164_v53 = vpop.eup %4163 }
 0x94b   :  { %v3288_v9 = vmul.f32 %v4164_v53, %v3287_v18  ;;  %v4166_v22 = vpop.eup %4165 }
 0x94c   :  { %v3298_v12 = vadd.f32 1.0, %v4166_v22 }
 0x94d   :  { %v3290_v47 = vadd.f32 %v3289_v25, %v3288_v9 }
 0x94e   :  { %4167 = vrcp.f32 %v3298_v12 }
 0x94f   :  { %v3322_v43 = vsel %vm2316_vm15, %v3290_v47, 0.0 }
 0x950   :  { %v3323_v26 = vpack.c.bf16 %v3322_v43, %v3322_v43 }
 0x952   :  { %3325 = vst [vmem:[#allocation16 + $0xc] sm:$0x3] %v3323_v26 }
 0x958   :  { %v4168_v15 = vpop.eup %4167 }
 0x95d   :  { %v3253_v29 = vpop.f32.mrb[60].mxu1 }
 0x95e   :  { %v3254_v10 = vadd.f32 %v3253_v29, %v5415_v45  ;;  %v3255_v21 = vpop.f32.mrb[61].mxu1  ;;  %v6595_v29 = vsel %vm2316_vm15, %v3290_v47, %v6469_v51 }
 0x95f   :  { %v3256_v0 = vadd.f32 %v3255_v21, %v5418_v7  ;;  %v3257_v30 = vpop.f32.mrb[62].mxu1 }
 0x960   :  { %v3305_v40 = vadd.f32 %v3304_v28, %v3254_v10  ;;  %v3258_v54 = vpop.f32.mrb[63].mxu1  ;;  %v3332_v30 = vpack.c.bf16 %v6595_v29, %v6595_v29 }
 0x961   :  { %v3312_v58 = vmul.f32 %v4168_v15, %v3256_v0 }
 0x962   :  { %v3785_v8 = vmul.f32 -1.442695, %v3305_v40 }
 0x963   :  { %v3316_v9 = vadd.f32 %v3315_v23, %v3312_v58 }
 0x964   :  { %4169 = vpow2.f32 %v3785_v8 }
 0x96e   :  { %v4170_v18 = vpop.eup %4169 }
 0x96f   :  { %v3309_v53 = vadd.f32 1.0, %v4170_v18 }
 0x971   :  { %4171 = vrcp.f32 %v3309_v53 }
 0x972   :  { %4173 = vtanh.f32 %v3316_v9 }
 0x97b   :  { %v4172_v25 = vpop.eup %4171 }
 0x97c   :  { %v3318_v22 = vsub.f32 1.0, %v4172_v25  ;;  %v4174_v43 = vpop.eup %4173  ;;  %v3320_v12 = vmul.f32 %v4172_v25, %v6476_v20 }
 0x97e   :  { %v3319_v26 = vmul.f32 %v4174_v43, %v3318_v22 }
 0x980   :  { %v3321_v41 = vadd.f32 %v3320_v12, %v3319_v26 }
 0x982   :  { %v3326_v24 = vsel %vm2307_vm14, %v3321_v41, 0.0  ;;  %v6602_v28 = vsel %vm2307_vm14, %v3321_v41, %v6476_v20 }
 0x983   :  { %v3327_v21 = vpack.c.bf16 %v3326_v24, %v3326_v24  ;;  %v3333_v0 = vpack.c.bf16 %v6602_v28, %v6602_v28 }
 0x985   :  { %3329 = vst [vmem:[#allocation17 + $0x2] sm:$0x3] %v3327_v21  ;;  %3366 = vmatprep.mubr.bf16.mxu0 %v3333_v0  ;;  %3407 = vmatprep.mubr.bf16.mxu1 %v3333_v0 }
 0x986   :  { %3367 = vmatmul.mubr.bf16.vlgmr.msra.gmra.mrb[60].mxu0 %v3332_v30  ;;  %3408 = vmatmul.mubr.bf16.vlgmr.msra.gmra.mrb[64].mxu1 %v3332_v30 }
 0x987   :  { %3417 = vmatpush1.bf16.msra.mxu0 %v6297_v35  ;;  %3448 = vmatprep.mubr.bf16.mxu0 %v3333_v0  ;;  %v3458_v35 = vld [vmem:[#allocation2 + $0x2a] sm:$0x3f] }
 0x988   :  { %3418 = vmatprep.subr.bf16.mxu0 %v6300_v60 }
 0x98b   :  { %3419 = vmatpush1.bf16.msra.mxu0 %v6305_v13 }
 0x98c   :  { %3420 = vmatprep.subr.bf16.mxu0 %v6308_v52  ;;  %v3468_v52 = vrot.slane %v3458_v35, 2 }
 0x98f   :  { %3421 = vmatpush1.bf16.msra.mxu0 %v6313_v49 }
 0x990   :  { %3422 = vmatprep.subr.bf16.mxu0 %v6316_v34  ;;  %v3459_v34 = vunpack.c.l.bf16 %v3458_v35 }
 0x993   :  { %3423 = vmatpush1.bf16.msra.mxu0 %v6321_v59 }
 0x994   :  { %3424 = vmatprep.subr.bf16.mxu0 %v6324_v27 }
 0x997   :  { %3425 = vmatpush1.bf16.msra.mxu0 %v6329_v50 }
 0x998   :  { %3426 = vmatprep.subr.bf16.mxu0 %v6332_v38 }
 0x99b   :  { %3427 = vmatpush1.bf16.msra.mxu0 %v6337_v48 }
 0x99c   :  { %3428 = vmatprep.subr.bf16.mxu0 %v6340_v55 }
 0x99f   :  { %3429 = vmatpush1.bf16.msra.mxu0 %v6345_v6 }
 0x9a0   :  { %3430 = vmatprep.subr.bf16.mxu0 %v6348_v62 }
 0x9a3   :  { %3431 = vmatpush1.bf16.msra.mxu0 %v6353_v2  ;;  %v3470_v2 = vunpack.c.l.bf16 %v3468_v52 }
 0x9a4   :  { %3432 = vmatprep.subr.bf16.mxu0 %v6356_v33 }
 0x9a7   :  { %3433 = vmatpush1.bf16.msra.mxu0 %v6361_v37 }
 0x9a8   :  { %3434 = vmatprep.subr.bf16.mxu0 %v6364_v11 }
 0x9ab   :  { %3435 = vmatpush1.bf16.msra.mxu0 %v7309_v46 }
 0x9ac   :  { %3436 = vmatprep.subr.bf16.mxu0 %v7310_v56  ;;  %v3479_v56 = vrot.slane %v3458_v35, 4 }
 0x9af   :  { %3437 = vmatpush1.bf16.msra.mxu0 %v7313_v17 }
 0x9b0   :  { %3438 = vmatprep.subr.bf16.mxu0 %v7314_v44  ;;  %v3488_v44 = vld [vmem:[#allocation3] sm:$0x3f] }
 0x9b3   :  { %3439 = vmatpush1.bf16.msra.mxu0 %v7317_v19 }
 0x9b4   :  { %3440 = vmatprep.subr.bf16.mxu0 %v7318_v5 }
 0x9b7   :  { %3441 = vmatpush1.bf16.msra.mxu0 %v7321_v16  ;;  %v3489_v16 = vunpack.c.l.bf16 %v3488_v44 }
 0x9b8   :  { %3442 = vmatprep.subr.bf16.mxu0 %v7322_v3 }
 0x9bb   :  { %3443 = vmatpush1.bf16.msra.mxu0 %v7325_v31  ;;  %v3481_v31 = vunpack.c.l.bf16 %v3479_v56 }
 0x9bc   :  { %3444 = vmatprep.subr.bf16.mxu0 %v7326_v36 }
 0x9bf   :  { %3445 = vmatpush1.bf16.msra.mxu0 %v7329_v14 }
 0x9c0   :  { %3446 = vmatprep.subr.bf16.mxu0 %v7330_v61 }
 0x9c3   :  { %3447 = vmatpush1.bf16.msra.mxu0 %v7333_v63 }
 0x9c6   :  { %3449 = vmatmul.mubr.bf16.vlgmr.msra.gmra.mrb[64].mxu0 %v3332_v30 }
 0xa59   :  { %v3368_v60 = vpop.f32.mrb[60].mxu0  ;;  %v3409_v13 = vpop.f32.mrb[64].mxu1 }
 0xa5a   :  { %v3369_v49 = vadd.f32 %v3368_v60, %v7368_v4  ;;  %v3370_v59 = vpop.f32.mrb[61].mxu0  ;;  %v3411_v27 = vpop.f32.mrb[65].mxu1  ;;  %v3410_v19 = vadd.f32 %v3409_v13, %v5386_v39 }
 0xa5b   :  { %v3371_v50 = vadd.f32 %v3370_v59, %v5379_v42  ;;  %v3372_v38 = vpop.f32.mrb[62].mxu0  ;;  %v3413_v48 = vpop.f32.mrb[66].mxu1  ;;  %v3412_v42 = vadd.f32 %v3411_v27, %v5389_v1 }
 0xa5c   :  { %v3460_v55 = vadd.f32 %v3459_v34, %v3369_v49  ;;  %v3373_v6 = vpop.f32.mrb[63].mxu0  ;;  %v3414_v62 = vpop.f32.mrb[67].mxu1 }
 0xa5d   :  { %v3471_v37 = vadd.f32 %v3470_v2, %v3371_v50  ;;  %v3490_v36 = vadd.f32 %v3489_v16, %v3412_v42 }
 0xa5e   :  { %v3786_v33 = vmul.f32 -1.442695, %v3460_v55 }
 0xa5f   :  { %v3787_v11 = vmul.f32 -1.442695, %v3471_v37  ;;  %v3788_v61 = vmul.f32 -1.442695, %v3490_v36 }
 0xa60   :  { %4175 = vpow2.f32 %v3786_v33 }
 0xa61   :  { %4177 = vpow2.f32 %v3787_v11 }
 0xa6a   :  { %v4176_v51 = vpop.eup %4175 }
 0xa6b   :  { %v3464_v20 = vadd.f32 1.0, %v4176_v51  ;;  %v4178_v46 = vpop.eup %4177 }
 0xa6c   :  { %v3475_v17 = vadd.f32 1.0, %v4178_v46 }
 0xa6d   :  { %4179 = vrcp.f32 %v3464_v20 }
 0xa6e   :  { %4181 = vrcp.f32 %v3475_v17 }
 0xa77   :  { %v4180_v5 = vpop.eup %4179 }
 0xa78   :  { %v3478_v3 = vmul.f32 %v4180_v5, %v3410_v19  ;;  %v4182_v63 = vpop.eup %4181 }
 0xa79   :  { %v3484_v4 = vsub.f32 1.0, %v4182_v63  ;;  %v3486_v15 = vmul.f32 %v4182_v63, %v6595_v29 }
 0xa7a   :  { %v3482_v14 = vadd.f32 %v3481_v31, %v3478_v3 }
 0xa7c   :  { %4183 = vtanh.f32 %v3482_v14 }
 0xa7d   :  { %4185 = vpow2.f32 %v3788_v61 }
 0xa86   :  { %v4184_v47 = vpop.eup %4183 }
 0xa87   :  { %v3485_v57 = vmul.f32 %v4184_v47, %v3484_v4  ;;  %v4186_v39 = vpop.eup %4185 }
 0xa88   :  { %v3494_v32 = vadd.f32 1.0, %v4186_v39 }
 0xa89   :  { %v3487_v40 = vadd.f32 %v3486_v15, %v3485_v57 }
 0xa8b   :  { %v3518_v54 = vsel %vm2111_vm11, %v3487_v40, 0.0  ;;  %v3525_v58 = vsel %vm2111_vm11, %v3487_v40, %v6595_v29 }
 0xa8c   :  { %v3519_v8 = vpack.c.bf16 %v3518_v54, %v3518_v54  ;;  %3527 = vst [vmem:[#allocation19] sm:$0xf] %v3525_v58 }
 0xa8e   :  { %3521 = vst [vmem:[#allocation16 + $0xe] sm:$0x3] %v3519_v8 }
 0xa8f   :  { %4552 = shalt.err (!%p4549_p4)
}
 0xa90   :  { %s4553_s29 = scalar_lea.hbm %s6736_s11, 256 }
 0xa91   :  { %p4554_p5 = scmp.ne.s32.totalorder %s6736_s11, %s4553_s29  ;;  %p4557_p6 = scmp.lt.u32.totalorder %s4553_s29, %s6736_s11 }
 0xa93   :  { %p4559_p7 = pnand %p4557_p6, %p4554_p5 }
 0xa95   :  { %4562 = shalt.err (!%p4559_p7)
}
 0xa96   :  { %3540 = dma.vmem_to_hbm [thread:$0]  %s3535_s3, 256, %s6736_s11, [#allocation6], %s4649_s7, %s4649_s7, %s4650_s28   ;;  %4187 = vrcp.f32 %v3494_v32  ;;  %v3498_v23 = vrot.slane %v3488_v44, 2  ;;  %v3509_v24 = vrot.slane %v3488_v44, 4 }
 0xa97   :  { %s4661_s11 = smov [#allocation20]   ;;  %s4662_s6 = smov [#allocation17]  }
 0xa98   :  { %v3500_v9 = vunpack.c.l.bf16 %v3498_v23  ;;  %v3511_v21 = vunpack.c.l.bf16 %v3509_v24  ;;  %s3569_s26 = sshll.u32 %s4661_s11, 4  ;;  %s3546_s30 = sshll.u32 %s4662_s6, 4  ;;  %s3570_s26 = int_to_ptr.vmem [resolvable:$true] %s3569_s26  ;;  %s6672_s30 = int_to_ptr.vmem [resolvable:$true] %s3546_s30 }
 0xa99   :  { %v3450_v18 = vpop.f32.mrb[64].mxu0  ;;  %s4663_s21 = smov [#allocation19]   ;;  %s4563_s9 = scalar_lea.vmem %s3570_s26, 64 }
 0xa9a   :  { %v3451_v53 = vadd.f32 %v3450_v18, %v5415_v45  ;;  %v3452_v25 = vpop.f32.mrb[65].mxu0  ;;  %s3559_s19 = sshll.u32 %s4663_s21, 4  ;;  %p4564_p8 = scmp.ne.s32.totalorder %s3570_s26, %s4563_s9  ;;  %s6674_s19 = int_to_ptr.vmem [resolvable:$true] %s3559_s19 }
 0xa9b   :  { %v3453_v22 = vadd.f32 %v3452_v25, %v5418_v7  ;;  %v3454_v43 = vpop.f32.mrb[66].mxu0  ;;  %p4568_p9 = scmp.lt.s32.totalorder %s3570_s26, %s3570_s26  ;;  %p4569_p10 = scmp.lt.s32.totalorder %s4563_s9, %s4563_s9 }
 0xa9c   :  { %v3501_v12 = vadd.f32 %v3500_v9, %v3451_v53  ;;  %v3455_v41 = vpop.f32.mrb[67].mxu0 }
 0xa9d   :  { %p4570_p11 = por %p4569_p10, %p4568_p9 }
 0xa9e   :  { %v3789_v10 = vmul.f32 -1.442695, %v3501_v12 }
 0xa9f   :  { %p4571_p12 = pnand %p4570_p11, %p4564_p8 }
 0xaa0   :  { %v4188_v26 = vpop.eup %4187  ;;  %4189 = vpow2.f32 %v3789_v10 }
 0xaa1   :  { %v3508_v29 = vmul.f32 %v4188_v26, %v3453_v22 }
 0xaa3   :  { %v3512_v35 = vadd.f32 %v3511_v21, %v3508_v29 }
 0xaaa   :  { %v4190_v0 = vpop.eup %4189 }
 0xaab   :  { %v3505_v30 = vadd.f32 1.0, %v4190_v0 }
 0xaad   :  { %4191 = vrcp.f32 %v3505_v30 }
 0xaae   :  { %4193 = vtanh.f32 %v3512_v35 }
 0xab7   :  { %v4192_v60 = vpop.eup %4191 }
 0xab8   :  { %v3514_v45 = vsub.f32 1.0, %v4192_v60  ;;  %v4194_v13 = vpop.eup %4193  ;;  %v3516_v52 = vmul.f32 %v4192_v60, %v6602_v28 }
 0xaba   :  { %v3515_v7 = vmul.f32 %v4194_v13, %v3514_v45 }
 0xabc   :  { %v3517_v49 = vadd.f32 %v3516_v52, %v3515_v7 }
 0xabe   :  { %v3522_v59 = vsel %vm2103_vm9, %v3517_v49, 0.0  ;;  %v3526_v27 = vsel %vm2103_vm9, %v3517_v49, %v6602_v28 }
 0xabf   :  { %v3523_v50 = vpack.c.bf16 %v3522_v59, %v3522_v59  ;;  %3528 = vst [vmem:[#allocation20] sm:$0xf] %v3526_v27 }
 0xac0   :  { %4574 = shalt.err (!%p4571_p12)
}
 0xac1   :  { %s4575_s22 = scalar_lea.hbm %s6739_s14, 64 }
 0xac2   :  { %p4576_p13 = scmp.ne.s32.totalorder %s6739_s14, %s4575_s22  ;;  %p4579_p0 = scmp.lt.u32.totalorder %s4575_s22, %s6739_s14 }
 0xac4   :  { %p4581_p1 = pnand %p4579_p0, %p4576_p13 }
 0xac6   :  { %4584 = shalt.err (!%p4581_p1)
}
 0xac7   :  { %3572 = dma.vmem_to_hbm [thread:$0]  %s3570_s26, 64, %s6739_s14, [#allocation21]   ;;  %3524 = vst [vmem:[#allocation17] sm:$0x3] %v3523_v50 }
 0xac8   :  { %s4585_s4 = scalar_lea.vmem %s6672_s30, 256  ;;  %p4590_p3 = scmp.lt.s32.totalorder %s6672_s30, %s6672_s30 }
 0xac9   :  { %p4586_p2 = scmp.ne.s32.totalorder %s6672_s30, %s4585_s4  ;;  %p4591_p4 = scmp.lt.s32.totalorder %s4585_s4, %s4585_s4 }
 0xacb   :  { %p4592_p5 = por %p4591_p4, %p4590_p3 }
 0xacd   :  { %p4593_p6 = pnand %p4592_p5, %p4586_p2 }
 0xacf   :  { %4596 = shalt.err (!%p4593_p6)
}
 0xad0   :  { %s4597_s29 = scalar_lea.hbm %s6737_s12, 256 }
 0xad1   :  { %p4598_p7 = scmp.ne.s32.totalorder %s6737_s12, %s4597_s29  ;;  %p4601_p8 = scmp.lt.u32.totalorder %s4597_s29, %s6737_s12 }
 0xad3   :  { %p4603_p9 = pnand %p4601_p8, %p4598_p7 }
 0xad5   :  { %4606 = shalt.err (!%p4603_p9)
}
 0xad6   :  { %3552 = dma.vmem_to_hbm [thread:$0]  %s6672_s30, 256, %s6737_s12, [#allocation18], %s4649_s7, %s4649_s7, %s4650_s28  }
 0xad7   :  { %s4607_s18 = scalar_lea.vmem %s6674_s19, 64  ;;  %p4612_p11 = scmp.lt.s32.totalorder %s6674_s19, %s6674_s19 }
 0xad8   :  { %p4608_p10 = scmp.ne.s32.totalorder %s6674_s19, %s4607_s18  ;;  %p4613_p12 = scmp.lt.s32.totalorder %s4607_s18, %s4607_s18 }
 0xada   :  { %p4614_p13 = por %p4613_p12, %p4612_p11 }
 0xadc   :  { %p4615_p0 = pnand %p4614_p13, %p4608_p10 }
 0xade   :  { %4618 = shalt.err (!%p4615_p0)
}
 0xadf   :  { %s4619_s6 = scalar_lea.hbm %s6738_s13, 64 }
 0xae0   :  { %p4620_p1 = scmp.ne.s32.totalorder %s6738_s13, %s4619_s6  ;;  %p4623_p2 = scmp.lt.u32.totalorder %s4619_s6, %s6738_s13 }
 0xae2   :  { %p4625_p3 = pnand %p4623_p2, %p4620_p1 }
 0xae4   :  { %4628 = shalt.err (!%p4625_p3)
}
 0xae5   :  { %3562 = dma.vmem_to_hbm [thread:$0]  %s6674_s19, 64, %s6738_s13, [#allocation18]  }
 0xae6   :  { %4637 = dma.done.wait [#allocation6], 256  }
 0xae7   :  { %4638 = vsyncadd [#allocation6], 4294967040 }
 0xae8   :  { %4639 = dma.done.wait [#allocation18], 320  }
 0xae9   :  { %4640 = vsyncadd [#allocation18], 4294966976 }
 0xaea   :  { %4641 = dma.done.wait [#allocation21], 64  }
 0xaeb   :  { %4642 = vsyncadd [#allocation21], 4294967232 }
 0xaec   :  { %3585 = vsyncpa [#allocation5], 1 }
 0xaed   :  { %3586 = vsyncpa [#allocation8], 1 }
 0xaee   :  { %3587 = vsyncpa [#allocation11], 1 }
 0xaef   :  { %3588 = vsyncpa [#allocation14], 1 }
 0xaf0   :  { %3589 = vsyncpa [#allocation6], 1 }
 0xaf1   :  { %3590 = vsyncpa [#allocation18], 1 }
 0xaf2   :  { %3591 = vsyncpa [#allocation21], 1 }

</bundles_post_ra>
